<compile_context>
chip_gen: v6e
topology: v6e:2x2x1
jax: 0.10.0
libtpu: 0.0.40
codegen_flags: <defaults>
</compile_context>

<pallas_src>
import jax
import jax.numpy as jnp
from jax.experimental import pallas as pl
from jax.experimental.pallas import tpu as pltpu


def downsample_kernel(x_ref, w1_ref, w2_ref, o_ref, pad_ref):
    # x_ref  : (1, H, W, Cin)        input image block (NHWC)
    # w1_ref : (9, Cin, Cin)         conv1 taps, tap-major, already (in, out) oriented
    # w2_ref : (9, Cin, Cout)        conv2 taps
    # o_ref  : (1, H//2, W//2, Cout) pooled output block
    # pad_ref: (H+2, W+2, Cin)       reflect-padded scratch, reused by both convs
    _, H, W, Cin = x_ref.shape
    Cout = w2_ref.shape[2]
    H2, W2 = H // 2, W // 2

    def reflect_pad_into_scratch(img):
        # img: (H, W, Cin) f32 -> pad_ref = reflect-pad-1 of img (PyTorch 'reflect')
        pad_ref[1:H + 1, 1:W + 1, :] = img
        pad_ref[0:1, 1:W + 1, :] = img[1:2]                    # top    <- row 1
        pad_ref[H + 1:H + 2, 1:W + 1, :] = img[H - 2:H - 1]    # bottom <- row H-2
        pad_ref[:, 0:1, :] = pad_ref[:, 2:3, :]                # left   <- col 1
        pad_ref[:, W + 1:W + 2, :] = pad_ref[:, W - 1:W, :]    # right  <- col W-2

    def conv3x3(img, w_ref):
        # img: (H, W, Cin) f32 -> (H*W, cout) f32; 9 shifted MXU matmuls, f32 accum.
        cout = w_ref.shape[2]
        reflect_pad_into_scratch(img)
        acc = jnp.zeros((H * W, cout), jnp.float32)
        for dh in range(3):
            for dw in range(3):
                sl = pad_ref[dh:dh + H, dw:dw + W, :]          # (H, W, Cin)
                sl2 = sl.reshape(H * W, Cin)                   # pixels on sublanes
                acc = acc + jnp.dot(sl2, w_ref[dh * 3 + dw],
                                    preferred_element_type=jnp.float32)
        return acc

    x = x_ref[0].astype(jnp.float32)                           # (H, W, Cin)
    h1 = conv3x3(x, w1_ref).reshape(H, W, Cin)                 # conv1: Cin -> Cin
    y = conv3x3(h1, w2_ref)                                    # conv2: (H*W, Cout)

    # Fused 2x2 / stride-2 max pool.
    yr = y.reshape(H2, 2, W, Cout)                             # split row pairs (major dim)
    zh = jnp.maximum(yr[:, 0], yr[:, 1])                       # (H2, W, Cout)
    for j in range(W2):                                        # column pairs (static slices)
        piece = jnp.maximum(zh[:, 2 * j:2 * j + 1, :],
                            zh[:, 2 * j + 1:2 * j + 2, :])     # (H2, 1, Cout)
        o_ref[0, :, j:j + 1, :] = piece.astype(o_ref.dtype)


def downsample_forward(x, w1, w2):
    """x: (N, Cin, H, W); w1: (Cin, Cin, 3, 3); w2: (Cout, Cin, 3, 3).
    Returns (N, Cout, H//2, W//2), matching DownSample.forward (NCHW)."""
    N, Cin, H, W = x.shape
    Cout = w2.shape[0]
    assert w1.shape == (Cin, Cin, 3, 3) and w2.shape[1:] == (Cin, 3, 3)
    # requirements of the in-kernel (pure-relabel) reshapes and the 2x2 pool
    assert H % 2 == 0 and W % 2 == 0 and W % 8 == 0, \
        "this implementation needs even H, W and W a multiple of 8"

    # glue (trace-time): NCHW -> NHWC once; taps to (9, in, out) f32, resident in VMEM.
    x_nhwc = jnp.transpose(x, (0, 2, 3, 1))
    w1_r = jnp.transpose(w1, (2, 3, 1, 0)).reshape(9, Cin, Cin).astype(jnp.float32)
    w2_r = jnp.transpose(w2, (2, 3, 1, 0)).reshape(9, Cin, Cout).astype(jnp.float32)

    out_nhwc = pl.pallas_call(
        downsample_kernel,
        out_shape=jax.ShapeDtypeStruct((N, H // 2, W // 2, Cout), x.dtype),
        grid_spec=pltpu.PrefetchScalarGridSpec(
            num_scalar_prefetch=0,
            grid=(N,),
            in_specs=[
                pl.BlockSpec((1, H, W, Cin), lambda n: (n, 0, 0, 0)),
                pl.BlockSpec((9, Cin, Cin), lambda n: (0, 0, 0)),
                pl.BlockSpec((9, Cin, Cout), lambda n: (0, 0, 0)),
            ],
            out_specs=pl.BlockSpec((1, H // 2, W // 2, Cout),
                                   lambda n: (n, 0, 0, 0)),
            scratch_shapes=[pltpu.VMEM((H + 2, W + 2, Cin), jnp.float32)],
        ),
        compiler_params=pltpu.CompilerParams(
            dimension_semantics=("parallel",)),
    )(x_nhwc, w1_r, w2_r)

    # glue: NHWC -> NCHW (quarter-resolution tensor)
    return jnp.transpose(out_nhwc, (0, 3, 1, 2))


def downsample_reference(x, w1, w2):
    """Pure-JAX reference of the PyTorch forward (NCHW, reflect pad, no bias)."""
    hp = jax.lax.Precision.HIGHEST
    xp = jnp.pad(x, ((0, 0), (0, 0), (1, 1), (1, 1)), mode="reflect")
    h1 = jax.lax.conv_general_dilated(
        xp, w1, window_strides=(1, 1), padding="VALID",
        dimension_numbers=("NCHW", "OIHW", "NCHW"), precision=hp)
    h1p = jnp.pad(h1, ((0, 0), (0, 0), (1, 1), (1, 1)), mode="reflect")
    y = jax.lax.conv_general_dilated(
        h1p, w2, window_strides=(1, 1), padding="VALID",
        dimension_numbers=("NCHW", "OIHW", "NCHW"), precision=hp)
    return jax.lax.reduce_window(
        y, -jnp.inf, jax.lax.max,
        window_dimensions=(1, 1, 2, 2), window_strides=(1, 1, 2, 2),
        padding="VALID")


if __name__ == "__main__":
    key = jax.random.PRNGKey(0)
    kx, k1, k2 = jax.random.split(key, 3)

    N, Cin, Cout, H, W = 2, 4, 8, 16, 16
    x = jax.random.normal(kx, (N, Cin, H, W), jnp.float32)

    # PyTorch Conv2d default init: U(+-1/sqrt(fan_in)), fan_in = Cin * 3 * 3, bias=False.
    bound = 1.0 / jnp.sqrt(jnp.float32(Cin * 9))
    w1 = jax.random.uniform(k1, (Cin, Cin, 3, 3), jnp.float32, -bound, bound)
    w2 = jax.random.uniform(k2, (Cout, Cin, 3, 3), jnp.float32, -bound, bound)

    out = jax.jit(downsample_forward)(x, w1, w2)
    out = jax.block_until_ready(out)

    ref = downsample_reference(x, w1, w2)
    assert out.shape == (N, Cout, H // 2, W // 2)
    assert jnp.allclose(out, ref, atol=1e-4, rtol=1e-4), "mismatch vs reference"

    print("KERNEL_OK")
</pallas_src>

<mosaic_0001>
module attributes {stable_mosaic.version = 11 : i64} {
  func.func @downsample_kernel(%arg0: i32, %arg1: memref<1x16x16x4xf32, #tpu.memory_space<vmem>>, %arg2: memref<9x4x4xf32, #tpu.memory_space<vmem>>, %arg3: memref<9x4x8xf32, #tpu.memory_space<vmem>>, %arg4: memref<1x8x8x8xf32, #tpu.memory_space<vmem>>, %arg5: memref<18x18x4xf32, #tpu.memory_space<vmem>>) attributes {dimension_semantics = [#tpu.dimension_semantics<parallel>], iteration_bounds = array<i64: 2>, scalar_prefetch = 0 : i64, scratch_operands = 1 : i64, tpu.core_type = #tpu.core_type<tc>, window_params = [{transform_indices = @transform_0, window_bounds = array<i64: 1, 16, 16, 4>}, {pipeline_mode = #tpu.pipeline_mode<synchronous>, transform_indices = @transform_1, window_bounds = array<i64: 9, 4, 4>}, {pipeline_mode = #tpu.pipeline_mode<synchronous>, transform_indices = @transform_2, window_bounds = array<i64: 9, 4, 8>}, {transform_indices = @transform_3, window_bounds = array<i64: 1, 8, 8, 8>}]} {
    %c0 = arith.constant 0 : index
    %c0_0 = arith.constant 0 : index
    %c0_1 = arith.constant 0 : index
    %c0_2 = arith.constant 0 : index
    %0 = vector.load %arg1[%c0, %c0_0, %c0_1, %c0_2] : memref<1x16x16x4xf32, #tpu.memory_space<vmem>>, vector<1x16x16x4xf32>
    %1 = vector.shape_cast %0 : vector<1x16x16x4xf32> to vector<16x16x4xf32>
    %c1 = arith.constant 1 : index
    %c1_3 = arith.constant 1 : index
    %c0_4 = arith.constant 0 : index
    %2 = vector.load %arg5[%c1, %c1_3, %c0_4] : memref<18x18x4xf32, #tpu.memory_space<vmem>>, vector<16x16x4xf32>
    tpu.vector_store %arg5[%c1, %c1_3, %c0_4], %1 {strides = array<i32>} : memref<18x18x4xf32, #tpu.memory_space<vmem>>, vector<16x16x4xf32>,
    %3 = vector.extract_strided_slice %1 {offsets = [1, 0, 0], sizes = [1, 16, 4], strides = [1, 1, 1]} : vector<16x16x4xf32> to vector<1x16x4xf32>
    %c0_5 = arith.constant 0 : index
    %c1_6 = arith.constant 1 : index
    %c0_7 = arith.constant 0 : index
    %4 = vector.load %arg5[%c0_5, %c1_6, %c0_7] : memref<18x18x4xf32, #tpu.memory_space<vmem>>, vector<1x16x4xf32>
    tpu.vector_store %arg5[%c0_5, %c1_6, %c0_7], %3 {strides = array<i32>} : memref<18x18x4xf32, #tpu.memory_space<vmem>>, vector<1x16x4xf32>,
    %5 = vector.extract_strided_slice %1 {offsets = [14, 0, 0], sizes = [1, 16, 4], strides = [1, 1, 1]} : vector<16x16x4xf32> to vector<1x16x4xf32>
    %c17 = arith.constant 17 : index
    %c1_8 = arith.constant 1 : index
    %c0_9 = arith.constant 0 : index
    %6 = vector.load %arg5[%c17, %c1_8, %c0_9] : memref<18x18x4xf32, #tpu.memory_space<vmem>>, vector<1x16x4xf32>
    tpu.vector_store %arg5[%c17, %c1_8, %c0_9], %5 {strides = array<i32>} : memref<18x18x4xf32, #tpu.memory_space<vmem>>, vector<1x16x4xf32>,
    %c0_10 = arith.constant 0 : index
    %c2 = arith.constant 2 : index
    %c0_11 = arith.constant 0 : index
    %7 = vector.load %arg5[%c0_10, %c2, %c0_11] : memref<18x18x4xf32, #tpu.memory_space<vmem>>, vector<18x1x4xf32>
    %c0_12 = arith.constant 0 : index
    %c0_13 = arith.constant 0 : index
    %c0_14 = arith.constant 0 : index
    %8 = vector.load %arg5[%c0_12, %c0_13, %c0_14] : memref<18x18x4xf32, #tpu.memory_space<vmem>>, vector<18x1x4xf32>
    tpu.vector_store %arg5[%c0_12, %c0_13, %c0_14], %7 {strides = array<i32>} : memref<18x18x4xf32, #tpu.memory_space<vmem>>, vector<18x1x4xf32>,
    %c0_15 = arith.constant 0 : index
    %c15 = arith.constant 15 : index
    %c0_16 = arith.constant 0 : index
    %9 = vector.load %arg5[%c0_15, %c15, %c0_16] : memref<18x18x4xf32, #tpu.memory_space<vmem>>, vector<18x1x4xf32>
    %c0_17 = arith.constant 0 : index
    %c17_18 = arith.constant 17 : index
    %c0_19 = arith.constant 0 : index
    %10 = vector.load %arg5[%c0_17, %c17_18, %c0_19] : memref<18x18x4xf32, #tpu.memory_space<vmem>>, vector<18x1x4xf32>
    tpu.vector_store %arg5[%c0_17, %c17_18, %c0_19], %9 {strides = array<i32>} : memref<18x18x4xf32, #tpu.memory_space<vmem>>, vector<18x1x4xf32>,
    %cst = arith.constant 0.000000e+00 : f32
    %11 = vector.broadcast %cst : f32 to vector<256x4xf32>
    %c0_20 = arith.constant 0 : index
    %c0_21 = arith.constant 0 : index
    %c0_22 = arith.constant 0 : index
    %12 = vector.load %arg5[%c0_20, %c0_21, %c0_22] : memref<18x18x4xf32, #tpu.memory_space<vmem>>, vector<16x16x4xf32>
    %13 = vector.shape_cast %12 : vector<16x16x4xf32> to vector<256x4xf32>
    %c0_23 = arith.constant 0 : index
    %c0_24 = arith.constant 0 : index
    %c0_25 = arith.constant 0 : index
    %14 = vector.load %arg2[%c0_23, %c0_24, %c0_25] : memref<9x4x4xf32, #tpu.memory_space<vmem>>, vector<1x4x4xf32>
    %15 = vector.shape_cast %14 : vector<1x4x4xf32> to vector<4x4xf32>
    %cst_26 = arith.constant dense<0.000000e+00> : vector<256x4xf32>
    %16 = tpu.matmul %13, %15, %cst_26 {dimension_numbers = #tpu.dot_dimension_numbers<[1], [0], [0], [1], [0, 0, 1, 1], [], []>} : vector<256x4xf32>, vector<4x4xf32>, vector<256x4xf32> -> vector<256x4xf32>
    %17 = arith.addf %11, %16 : vector<256x4xf32>
    %c0_27 = arith.constant 0 : index
    %c1_28 = arith.constant 1 : index
    %c0_29 = arith.constant 0 : index
    %18 = vector.load %arg5[%c0_27, %c1_28, %c0_29] : memref<18x18x4xf32, #tpu.memory_space<vmem>>, vector<16x16x4xf32>
    %19 = vector.shape_cast %18 : vector<16x16x4xf32> to vector<256x4xf32>
    %c1_30 = arith.constant 1 : index
    %c0_31 = arith.constant 0 : index
    %c0_32 = arith.constant 0 : index
    %20 = vector.load %arg2[%c1_30, %c0_31, %c0_32] : memref<9x4x4xf32, #tpu.memory_space<vmem>>, vector<1x4x4xf32>
    %21 = vector.shape_cast %20 : vector<1x4x4xf32> to vector<4x4xf32>
    %cst_33 = arith.constant dense<0.000000e+00> : vector<256x4xf32>
    %22 = tpu.matmul %19, %21, %cst_33 {dimension_numbers = #tpu.dot_dimension_numbers<[1], [0], [0], [1], [0, 0, 1, 1], [], []>} : vector<256x4xf32>, vector<4x4xf32>, vector<256x4xf32> -> vector<256x4xf32>
    %23 = arith.addf %17, %22 : vector<256x4xf32>
    %c0_34 = arith.constant 0 : index
    %c2_35 = arith.constant 2 : index
    %c0_36 = arith.constant 0 : index
    %24 = vector.load %arg5[%c0_34, %c2_35, %c0_36] : memref<18x18x4xf32, #tpu.memory_space<vmem>>, vector<16x16x4xf32>
    %25 = vector.shape_cast %24 : vector<16x16x4xf32> to vector<256x4xf32>
    %c2_37 = arith.constant 2 : index
    %c0_38 = arith.constant 0 : index
    %c0_39 = arith.constant 0 : index
    %26 = vector.load %arg2[%c2_37, %c0_38, %c0_39] : memref<9x4x4xf32, #tpu.memory_space<vmem>>, vector<1x4x4xf32>
    %27 = vector.shape_cast %26 : vector<1x4x4xf32> to vector<4x4xf32>
    %cst_40 = arith.constant dense<0.000000e+00> : vector<256x4xf32>
    %28 = tpu.matmul %25, %27, %cst_40 {dimension_numbers = #tpu.dot_dimension_numbers<[1], [0], [0], [1], [0, 0, 1, 1], [], []>} : vector<256x4xf32>, vector<4x4xf32>, vector<256x4xf32> -> vector<256x4xf32>
    %29 = arith.addf %23, %28 : vector<256x4xf32>
    %c1_41 = arith.constant 1 : index
    %c0_42 = arith.constant 0 : index
    %c0_43 = arith.constant 0 : index
    %30 = vector.load %arg5[%c1_41, %c0_42, %c0_43] : memref<18x18x4xf32, #tpu.memory_space<vmem>>, vector<16x16x4xf32>
    %31 = vector.shape_cast %30 : vector<16x16x4xf32> to vector<256x4xf32>
    %c3 = arith.constant 3 : index
    %c0_44 = arith.constant 0 : index
    %c0_45 = arith.constant 0 : index
    %32 = vector.load %arg2[%c3, %c0_44, %c0_45] : memref<9x4x4xf32, #tpu.memory_space<vmem>>, vector<1x4x4xf32>
    %33 = vector.shape_cast %32 : vector<1x4x4xf32> to vector<4x4xf32>
    %cst_46 = arith.constant dense<0.000000e+00> : vector<256x4xf32>
    %34 = tpu.matmul %31, %33, %cst_46 {dimension_numbers = #tpu.dot_dimension_numbers<[1], [0], [0], [1], [0, 0, 1, 1], [], []>} : vector<256x4xf32>, vector<4x4xf32>, vector<256x4xf32> -> vector<256x4xf32>
    %35 = arith.addf %29, %34 : vector<256x4xf32>
    %c1_47 = arith.constant 1 : index
    %c1_48 = arith.constant 1 : index
    %c0_49 = arith.constant 0 : index
    %36 = vector.load %arg5[%c1_47, %c1_48, %c0_49] : memref<18x18x4xf32, #tpu.memory_space<vmem>>, vector<16x16x4xf32>
    %37 = vector.shape_cast %36 : vector<16x16x4xf32> to vector<256x4xf32>
    %c4 = arith.constant 4 : index
    %c0_50 = arith.constant 0 : index
    %c0_51 = arith.constant 0 : index
    %38 = vector.load %arg2[%c4, %c0_50, %c0_51] : memref<9x4x4xf32, #tpu.memory_space<vmem>>, vector<1x4x4xf32>
    %39 = vector.shape_cast %38 : vector<1x4x4xf32> to vector<4x4xf32>
    %cst_52 = arith.constant dense<0.000000e+00> : vector<256x4xf32>
    %40 = tpu.matmul %37, %39, %cst_52 {dimension_numbers = #tpu.dot_dimension_numbers<[1], [0], [0], [1], [0, 0, 1, 1], [], []>} : vector<256x4xf32>, vector<4x4xf32>, vector<256x4xf32> -> vector<256x4xf32>
    %41 = arith.addf %35, %40 : vector<256x4xf32>
    %c1_53 = arith.constant 1 : index
    %c2_54 = arith.constant 2 : index
    %c0_55 = arith.constant 0 : index
    %42 = vector.load %arg5[%c1_53, %c2_54, %c0_55] : memref<18x18x4xf32, #tpu.memory_space<vmem>>, vector<16x16x4xf32>
    %43 = vector.shape_cast %42 : vector<16x16x4xf32> to vector<256x4xf32>
    %c5 = arith.constant 5 : index
    %c0_56 = arith.constant 0 : index
    %c0_57 = arith.constant 0 : index
    %44 = vector.load %arg2[%c5, %c0_56, %c0_57] : memref<9x4x4xf32, #tpu.memory_space<vmem>>, vector<1x4x4xf32>
    %45 = vector.shape_cast %44 : vector<1x4x4xf32> to vector<4x4xf32>
    %cst_58 = arith.constant dense<0.000000e+00> : vector<256x4xf32>
    %46 = tpu.matmul %43, %45, %cst_58 {dimension_numbers = #tpu.dot_dimension_numbers<[1], [0], [0], [1], [0, 0, 1, 1], [], []>} : vector<256x4xf32>, vector<4x4xf32>, vector<256x4xf32> -> vector<256x4xf32>
    %47 = arith.addf %41, %46 : vector<256x4xf32>
    %c2_59 = arith.constant 2 : index
    %c0_60 = arith.constant 0 : index
    %c0_61 = arith.constant 0 : index
    %48 = vector.load %arg5[%c2_59, %c0_60, %c0_61] : memref<18x18x4xf32, #tpu.memory_space<vmem>>, vector<16x16x4xf32>
    %49 = vector.shape_cast %48 : vector<16x16x4xf32> to vector<256x4xf32>
    %c6 = arith.constant 6 : index
    %c0_62 = arith.constant 0 : index
    %c0_63 = arith.constant 0 : index
    %50 = vector.load %arg2[%c6, %c0_62, %c0_63] : memref<9x4x4xf32, #tpu.memory_space<vmem>>, vector<1x4x4xf32>
    %51 = vector.shape_cast %50 : vector<1x4x4xf32> to vector<4x4xf32>
    %cst_64 = arith.constant dense<0.000000e+00> : vector<256x4xf32>
    %52 = tpu.matmul %49, %51, %cst_64 {dimension_numbers = #tpu.dot_dimension_numbers<[1], [0], [0], [1], [0, 0, 1, 1], [], []>} : vector<256x4xf32>, vector<4x4xf32>, vector<256x4xf32> -> vector<256x4xf32>
    %53 = arith.addf %47, %52 : vector<256x4xf32>
    %c2_65 = arith.constant 2 : index
    %c1_66 = arith.constant 1 : index
    %c0_67 = arith.constant 0 : index
    %54 = vector.load %arg5[%c2_65, %c1_66, %c0_67] : memref<18x18x4xf32, #tpu.memory_space<vmem>>, vector<16x16x4xf32>
    %55 = vector.shape_cast %54 : vector<16x16x4xf32> to vector<256x4xf32>
    %c7 = arith.constant 7 : index
    %c0_68 = arith.constant 0 : index
    %c0_69 = arith.constant 0 : index
    %56 = vector.load %arg2[%c7, %c0_68, %c0_69] : memref<9x4x4xf32, #tpu.memory_space<vmem>>, vector<1x4x4xf32>
    %57 = vector.shape_cast %56 : vector<1x4x4xf32> to vector<4x4xf32>
    %cst_70 = arith.constant dense<0.000000e+00> : vector<256x4xf32>
    %58 = tpu.matmul %55, %57, %cst_70 {dimension_numbers = #tpu.dot_dimension_numbers<[1], [0], [0], [1], [0, 0, 1, 1], [], []>} : vector<256x4xf32>, vector<4x4xf32>, vector<256x4xf32> -> vector<256x4xf32>
    %59 = arith.addf %53, %58 : vector<256x4xf32>
    %c2_71 = arith.constant 2 : index
    %c2_72 = arith.constant 2 : index
    %c0_73 = arith.constant 0 : index
    %60 = vector.load %arg5[%c2_71, %c2_72, %c0_73] : memref<18x18x4xf32, #tpu.memory_space<vmem>>, vector<16x16x4xf32>
    %61 = vector.shape_cast %60 : vector<16x16x4xf32> to vector<256x4xf32>
    %c8 = arith.constant 8 : index
    %c0_74 = arith.constant 0 : index
    %c0_75 = arith.constant 0 : index
    %62 = vector.load %arg2[%c8, %c0_74, %c0_75] : memref<9x4x4xf32, #tpu.memory_space<vmem>>, vector<1x4x4xf32>
    %63 = vector.shape_cast %62 : vector<1x4x4xf32> to vector<4x4xf32>
    %cst_76 = arith.constant dense<0.000000e+00> : vector<256x4xf32>
    %64 = tpu.matmul %61, %63, %cst_76 {dimension_numbers = #tpu.dot_dimension_numbers<[1], [0], [0], [1], [0, 0, 1, 1], [], []>} : vector<256x4xf32>, vector<4x4xf32>, vector<256x4xf32> -> vector<256x4xf32>
    %65 = arith.addf %59, %64 : vector<256x4xf32>
    %66 = vector.shape_cast %65 : vector<256x4xf32> to vector<16x16x4xf32>
    %c1_77 = arith.constant 1 : index
    %c1_78 = arith.constant 1 : index
    %c0_79 = arith.constant 0 : index
    %67 = vector.load %arg5[%c1_77, %c1_78, %c0_79] : memref<18x18x4xf32, #tpu.memory_space<vmem>>, vector<16x16x4xf32>
    tpu.vector_store %arg5[%c1_77, %c1_78, %c0_79], %66 {strides = array<i32>} : memref<18x18x4xf32, #tpu.memory_space<vmem>>, vector<16x16x4xf32>,
    %68 = vector.extract_strided_slice %66 {offsets = [1, 0, 0], sizes = [1, 16, 4], strides = [1, 1, 1]} : vector<16x16x4xf32> to vector<1x16x4xf32>
    %c0_80 = arith.constant 0 : index
    %c1_81 = arith.constant 1 : index
    %c0_82 = arith.constant 0 : index
    %69 = vector.load %arg5[%c0_80, %c1_81, %c0_82] : memref<18x18x4xf32, #tpu.memory_space<vmem>>, vector<1x16x4xf32>
    tpu.vector_store %arg5[%c0_80, %c1_81, %c0_82], %68 {strides = array<i32>} : memref<18x18x4xf32, #tpu.memory_space<vmem>>, vector<1x16x4xf32>,
    %70 = vector.extract_strided_slice %66 {offsets = [14, 0, 0], sizes = [1, 16, 4], strides = [1, 1, 1]} : vector<16x16x4xf32> to vector<1x16x4xf32>
    %c17_83 = arith.constant 17 : index
    %c1_84 = arith.constant 1 : index
    %c0_85 = arith.constant 0 : index
    %71 = vector.load %arg5[%c17_83, %c1_84, %c0_85] : memref<18x18x4xf32, #tpu.memory_space<vmem>>, vector<1x16x4xf32>
    tpu.vector_store %arg5[%c17_83, %c1_84, %c0_85], %70 {strides = array<i32>} : memref<18x18x4xf32, #tpu.memory_space<vmem>>, vector<1x16x4xf32>,
    %c0_86 = arith.constant 0 : index
    %c2_87 = arith.constant 2 : index
    %c0_88 = arith.constant 0 : index
    %72 = vector.load %arg5[%c0_86, %c2_87, %c0_88] : memref<18x18x4xf32, #tpu.memory_space<vmem>>, vector<18x1x4xf32>
    %c0_89 = arith.constant 0 : index
    %c0_90 = arith.constant 0 : index
    %c0_91 = arith.constant 0 : index
    %73 = vector.load %arg5[%c0_89, %c0_90, %c0_91] : memref<18x18x4xf32, #tpu.memory_space<vmem>>, vector<18x1x4xf32>
    tpu.vector_store %arg5[%c0_89, %c0_90, %c0_91], %72 {strides = array<i32>} : memref<18x18x4xf32, #tpu.memory_space<vmem>>, vector<18x1x4xf32>,
    %c0_92 = arith.constant 0 : index
    %c15_93 = arith.constant 15 : index
    %c0_94 = arith.constant 0 : index
    %74 = vector.load %arg5[%c0_92, %c15_93, %c0_94] : memref<18x18x4xf32, #tpu.memory_space<vmem>>, vector<18x1x4xf32>
    %c0_95 = arith.constant 0 : index
    %c17_96 = arith.constant 17 : index
    %c0_97 = arith.constant 0 : index
    %75 = vector.load %arg5[%c0_95, %c17_96, %c0_97] : memref<18x18x4xf32, #tpu.memory_space<vmem>>, vector<18x1x4xf32>
    tpu.vector_store %arg5[%c0_95, %c17_96, %c0_97], %74 {strides = array<i32>} : memref<18x18x4xf32, #tpu.memory_space<vmem>>, vector<18x1x4xf32>,
    %cst_98 = arith.constant 0.000000e+00 : f32
    %76 = vector.broadcast %cst_98 : f32 to vector<256x8xf32>
    %c0_99 = arith.constant 0 : index
    %c0_100 = arith.constant 0 : index
    %c0_101 = arith.constant 0 : index
    %77 = vector.load %arg5[%c0_99, %c0_100, %c0_101] : memref<18x18x4xf32, #tpu.memory_space<vmem>>, vector<16x16x4xf32>
    %78 = vector.shape_cast %77 : vector<16x16x4xf32> to vector<256x4xf32>
    %c0_102 = arith.constant 0 : index
    %c0_103 = arith.constant 0 : index
    %c0_104 = arith.constant 0 : index
    %79 = vector.load %arg3[%c0_102, %c0_103, %c0_104] : memref<9x4x8xf32, #tpu.memory_space<vmem>>, vector<1x4x8xf32>
    %80 = vector.shape_cast %79 : vector<1x4x8xf32> to vector<4x8xf32>
    %cst_105 = arith.constant dense<0.000000e+00> : vector<256x8xf32>
    %81 = tpu.matmul %78, %80, %cst_105 {dimension_numbers = #tpu.dot_dimension_numbers<[1], [0], [0], [1], [0, 0, 1, 1], [], []>} : vector<256x4xf32>, vector<4x8xf32>, vector<256x8xf32> -> vector<256x8xf32>
    %82 = arith.addf %76, %81 : vector<256x8xf32>
    %c0_106 = arith.constant 0 : index
    %c1_107 = arith.constant 1 : index
    %c0_108 = arith.constant 0 : index
    %83 = vector.load %arg5[%c0_106, %c1_107, %c0_108] : memref<18x18x4xf32, #tpu.memory_space<vmem>>, vector<16x16x4xf32>
    %84 = vector.shape_cast %83 : vector<16x16x4xf32> to vector<256x4xf32>
    %c1_109 = arith.constant 1 : index
    %c0_110 = arith.constant 0 : index
    %c0_111 = arith.constant 0 : index
    %85 = vector.load %arg3[%c1_109, %c0_110, %c0_111] : memref<9x4x8xf32, #tpu.memory_space<vmem>>, vector<1x4x8xf32>
    %86 = vector.shape_cast %85 : vector<1x4x8xf32> to vector<4x8xf32>
    %cst_112 = arith.constant dense<0.000000e+00> : vector<256x8xf32>
    %87 = tpu.matmul %84, %86, %cst_112 {dimension_numbers = #tpu.dot_dimension_numbers<[1], [0], [0], [1], [0, 0, 1, 1], [], []>} : vector<256x4xf32>, vector<4x8xf32>, vector<256x8xf32> -> vector<256x8xf32>
    %88 = arith.addf %82, %87 : vector<256x8xf32>
    %c0_113 = arith.constant 0 : index
    %c2_114 = arith.constant 2 : index
    %c0_115 = arith.constant 0 : index
    %89 = vector.load %arg5[%c0_113, %c2_114, %c0_115] : memref<18x18x4xf32, #tpu.memory_space<vmem>>, vector<16x16x4xf32>
    %90 = vector.shape_cast %89 : vector<16x16x4xf32> to vector<256x4xf32>
    %c2_116 = arith.constant 2 : index
    %c0_117 = arith.constant 0 : index
    %c0_118 = arith.constant 0 : index
    %91 = vector.load %arg3[%c2_116, %c0_117, %c0_118] : memref<9x4x8xf32, #tpu.memory_space<vmem>>, vector<1x4x8xf32>
    %92 = vector.shape_cast %91 : vector<1x4x8xf32> to vector<4x8xf32>
    %cst_119 = arith.constant dense<0.000000e+00> : vector<256x8xf32>
    %93 = tpu.matmul %90, %92, %cst_119 {dimension_numbers = #tpu.dot_dimension_numbers<[1], [0], [0], [1], [0, 0, 1, 1], [], []>} : vector<256x4xf32>, vector<4x8xf32>, vector<256x8xf32> -> vector<256x8xf32>
    %94 = arith.addf %88, %93 : vector<256x8xf32>
    %c1_120 = arith.constant 1 : index
    %c0_121 = arith.constant 0 : index
    %c0_122 = arith.constant 0 : index
    %95 = vector.load %arg5[%c1_120, %c0_121, %c0_122] : memref<18x18x4xf32, #tpu.memory_space<vmem>>, vector<16x16x4xf32>
    %96 = vector.shape_cast %95 : vector<16x16x4xf32> to vector<256x4xf32>
    %c3_123 = arith.constant 3 : index
    %c0_124 = arith.constant 0 : index
    %c0_125 = arith.constant 0 : index
    %97 = vector.load %arg3[%c3_123, %c0_124, %c0_125] : memref<9x4x8xf32, #tpu.memory_space<vmem>>, vector<1x4x8xf32>
    %98 = vector.shape_cast %97 : vector<1x4x8xf32> to vector<4x8xf32>
    %cst_126 = arith.constant dense<0.000000e+00> : vector<256x8xf32>
    %99 = tpu.matmul %96, %98, %cst_126 {dimension_numbers = #tpu.dot_dimension_numbers<[1], [0], [0], [1], [0, 0, 1, 1], [], []>} : vector<256x4xf32>, vector<4x8xf32>, vector<256x8xf32> -> vector<256x8xf32>
    %100 = arith.addf %94, %99 : vector<256x8xf32>
    %c1_127 = arith.constant 1 : index
    %c1_128 = arith.constant 1 : index
    %c0_129 = arith.constant 0 : index
    %101 = vector.load %arg5[%c1_127, %c1_128, %c0_129] : memref<18x18x4xf32, #tpu.memory_space<vmem>>, vector<16x16x4xf32>
    %102 = vector.shape_cast %101 : vector<16x16x4xf32> to vector<256x4xf32>
    %c4_130 = arith.constant 4 : index
    %c0_131 = arith.constant 0 : index
    %c0_132 = arith.constant 0 : index
    %103 = vector.load %arg3[%c4_130, %c0_131, %c0_132] : memref<9x4x8xf32, #tpu.memory_space<vmem>>, vector<1x4x8xf32>
    %104 = vector.shape_cast %103 : vector<1x4x8xf32> to vector<4x8xf32>
    %cst_133 = arith.constant dense<0.000000e+00> : vector<256x8xf32>
    %105 = tpu.matmul %102, %104, %cst_133 {dimension_numbers = #tpu.dot_dimension_numbers<[1], [0], [0], [1], [0, 0, 1, 1], [], []>} : vector<256x4xf32>, vector<4x8xf32>, vector<256x8xf32> -> vector<256x8xf32>
    %106 = arith.addf %100, %105 : vector<256x8xf32>
    %c1_134 = arith.constant 1 : index
    %c2_135 = arith.constant 2 : index
    %c0_136 = arith.constant 0 : index
    %107 = vector.load %arg5[%c1_134, %c2_135, %c0_136] : memref<18x18x4xf32, #tpu.memory_space<vmem>>, vector<16x16x4xf32>
    %108 = vector.shape_cast %107 : vector<16x16x4xf32> to vector<256x4xf32>
    %c5_137 = arith.constant 5 : index
    %c0_138 = arith.constant 0 : index
    %c0_139 = arith.constant 0 : index
    %109 = vector.load %arg3[%c5_137, %c0_138, %c0_139] : memref<9x4x8xf32, #tpu.memory_space<vmem>>, vector<1x4x8xf32>
    %110 = vector.shape_cast %109 : vector<1x4x8xf32> to vector<4x8xf32>
    %cst_140 = arith.constant dense<0.000000e+00> : vector<256x8xf32>
    %111 = tpu.matmul %108, %110, %cst_140 {dimension_numbers = #tpu.dot_dimension_numbers<[1], [0], [0], [1], [0, 0, 1, 1], [], []>} : vector<256x4xf32>, vector<4x8xf32>, vector<256x8xf32> -> vector<256x8xf32>
    %112 = arith.addf %106, %111 : vector<256x8xf32>
    %c2_141 = arith.constant 2 : index
    %c0_142 = arith.constant 0 : index
    %c0_143 = arith.constant 0 : index
    %113 = vector.load %arg5[%c2_141, %c0_142, %c0_143] : memref<18x18x4xf32, #tpu.memory_space<vmem>>, vector<16x16x4xf32>
    %114 = vector.shape_cast %113 : vector<16x16x4xf32> to vector<256x4xf32>
    %c6_144 = arith.constant 6 : index
    %c0_145 = arith.constant 0 : index
    %c0_146 = arith.constant 0 : index
    %115 = vector.load %arg3[%c6_144, %c0_145, %c0_146] : memref<9x4x8xf32, #tpu.memory_space<vmem>>, vector<1x4x8xf32>
    %116 = vector.shape_cast %115 : vector<1x4x8xf32> to vector<4x8xf32>
    %cst_147 = arith.constant dense<0.000000e+00> : vector<256x8xf32>
    %117 = tpu.matmul %114, %116, %cst_147 {dimension_numbers = #tpu.dot_dimension_numbers<[1], [0], [0], [1], [0, 0, 1, 1], [], []>} : vector<256x4xf32>, vector<4x8xf32>, vector<256x8xf32> -> vector<256x8xf32>
    %118 = arith.addf %112, %117 : vector<256x8xf32>
    %c2_148 = arith.constant 2 : index
    %c1_149 = arith.constant 1 : index
    %c0_150 = arith.constant 0 : index
    %119 = vector.load %arg5[%c2_148, %c1_149, %c0_150] : memref<18x18x4xf32, #tpu.memory_space<vmem>>, vector<16x16x4xf32>
    %120 = vector.shape_cast %119 : vector<16x16x4xf32> to vector<256x4xf32>
    %c7_151 = arith.constant 7 : index
    %c0_152 = arith.constant 0 : index
    %c0_153 = arith.constant 0 : index
    %121 = vector.load %arg3[%c7_151, %c0_152, %c0_153] : memref<9x4x8xf32, #tpu.memory_space<vmem>>, vector<1x4x8xf32>
    %122 = vector.shape_cast %121 : vector<1x4x8xf32> to vector<4x8xf32>
    %cst_154 = arith.constant dense<0.000000e+00> : vector<256x8xf32>
    %123 = tpu.matmul %120, %122, %cst_154 {dimension_numbers = #tpu.dot_dimension_numbers<[1], [0], [0], [1], [0, 0, 1, 1], [], []>} : vector<256x4xf32>, vector<4x8xf32>, vector<256x8xf32> -> vector<256x8xf32>
    %124 = arith.addf %118, %123 : vector<256x8xf32>
    %c2_155 = arith.constant 2 : index
    %c2_156 = arith.constant 2 : index
    %c0_157 = arith.constant 0 : index
    %125 = vector.load %arg5[%c2_155, %c2_156, %c0_157] : memref<18x18x4xf32, #tpu.memory_space<vmem>>, vector<16x16x4xf32>
    %126 = vector.shape_cast %125 : vector<16x16x4xf32> to vector<256x4xf32>
    %c8_158 = arith.constant 8 : index
    %c0_159 = arith.constant 0 : index
    %c0_160 = arith.constant 0 : index
    %127 = vector.load %arg3[%c8_158, %c0_159, %c0_160] : memref<9x4x8xf32, #tpu.memory_space<vmem>>, vector<1x4x8xf32>
    %128 = vector.shape_cast %127 : vector<1x4x8xf32> to vector<4x8xf32>
    %cst_161 = arith.constant dense<0.000000e+00> : vector<256x8xf32>
    %129 = tpu.matmul %126, %128, %cst_161 {dimension_numbers = #tpu.dot_dimension_numbers<[1], [0], [0], [1], [0, 0, 1, 1], [], []>} : vector<256x4xf32>, vector<4x8xf32>, vector<256x8xf32> -> vector<256x8xf32>
    %130 = arith.addf %124, %129 : vector<256x8xf32>
    %131 = vector.shape_cast %130 : vector<256x8xf32> to vector<8x2x16x8xf32>
    %132 = vector.extract_strided_slice %131 {offsets = [0, 0, 0, 0], sizes = [8, 1, 16, 8], strides = [1, 1, 1, 1]} : vector<8x2x16x8xf32> to vector<8x1x16x8xf32>
    %133 = vector.shape_cast %132 : vector<8x1x16x8xf32> to vector<8x16x8xf32>
    %134 = vector.extract_strided_slice %131 {offsets = [0, 1, 0, 0], sizes = [8, 1, 16, 8], strides = [1, 1, 1, 1]} : vector<8x2x16x8xf32> to vector<8x1x16x8xf32>
    %135 = vector.shape_cast %134 : vector<8x1x16x8xf32> to vector<8x16x8xf32>
    %136 = arith.maximumf %133, %135 : vector<8x16x8xf32>
    %137 = vector.extract_strided_slice %136 {offsets = [0, 0, 0], sizes = [8, 1, 8], strides = [1, 1, 1]} : vector<8x16x8xf32> to vector<8x1x8xf32>
    %138 = vector.extract_strided_slice %136 {offsets = [0, 1, 0], sizes = [8, 1, 8], strides = [1, 1, 1]} : vector<8x16x8xf32> to vector<8x1x8xf32>
    %139 = arith.maximumf %137, %138 : vector<8x1x8xf32>
    %c0_162 = arith.constant 0 : index
    %c0_163 = arith.constant 0 : index
    %c0_164 = arith.constant 0 : index
    %c0_165 = arith.constant 0 : index
    %140 = vector.load %arg4[%c0_162, %c0_163, %c0_164, %c0_165] : memref<1x8x8x8xf32, #tpu.memory_space<vmem>>, vector<1x8x1x8xf32>
    %141 = vector.shape_cast %140 : vector<1x8x1x8xf32> to vector<8x1x8xf32>
    %142 = vector.shape_cast %139 : vector<8x1x8xf32> to vector<1x8x1x8xf32>
    tpu.vector_store %arg4[%c0_162, %c0_163, %c0_164, %c0_165], %142 {strides = array<i32>} : memref<1x8x8x8xf32, #tpu.memory_space<vmem>>, vector<1x8x1x8xf32>,
    %143 = vector.extract_strided_slice %136 {offsets = [0, 2, 0], sizes = [8, 1, 8], strides = [1, 1, 1]} : vector<8x16x8xf32> to vector<8x1x8xf32>
    %144 = vector.extract_strided_slice %136 {offsets = [0, 3, 0], sizes = [8, 1, 8], strides = [1, 1, 1]} : vector<8x16x8xf32> to vector<8x1x8xf32>
    %145 = arith.maximumf %143, %144 : vector<8x1x8xf32>
    %c0_166 = arith.constant 0 : index
    %c0_167 = arith.constant 0 : index
    %c1_168 = arith.constant 1 : index
    %c0_169 = arith.constant 0 : index
    %146 = vector.load %arg4[%c0_166, %c0_167, %c1_168, %c0_169] : memref<1x8x8x8xf32, #tpu.memory_space<vmem>>, vector<1x8x1x8xf32>
    %147 = vector.shape_cast %146 : vector<1x8x1x8xf32> to vector<8x1x8xf32>
    %148 = vector.shape_cast %145 : vector<8x1x8xf32> to vector<1x8x1x8xf32>
    tpu.vector_store %arg4[%c0_166, %c0_167, %c1_168, %c0_169], %148 {strides = array<i32>} : memref<1x8x8x8xf32, #tpu.memory_space<vmem>>, vector<1x8x1x8xf32>,
    %149 = vector.extract_strided_slice %136 {offsets = [0, 4, 0], sizes = [8, 1, 8], strides = [1, 1, 1]} : vector<8x16x8xf32> to vector<8x1x8xf32>
    %150 = vector.extract_strided_slice %136 {offsets = [0, 5, 0], sizes = [8, 1, 8], strides = [1, 1, 1]} : vector<8x16x8xf32> to vector<8x1x8xf32>
    %151 = arith.maximumf %149, %150 : vector<8x1x8xf32>
    %c0_170 = arith.constant 0 : index
    %c0_171 = arith.constant 0 : index
    %c2_172 = arith.constant 2 : index
    %c0_173 = arith.constant 0 : index
    %152 = vector.load %arg4[%c0_170, %c0_171, %c2_172, %c0_173] : memref<1x8x8x8xf32, #tpu.memory_space<vmem>>, vector<1x8x1x8xf32>
    %153 = vector.shape_cast %152 : vector<1x8x1x8xf32> to vector<8x1x8xf32>
    %154 = vector.shape_cast %151 : vector<8x1x8xf32> to vector<1x8x1x8xf32>
    tpu.vector_store %arg4[%c0_170, %c0_171, %c2_172, %c0_173], %154 {strides = array<i32>} : memref<1x8x8x8xf32, #tpu.memory_space<vmem>>, vector<1x8x1x8xf32>,
    %155 = vector.extract_strided_slice %136 {offsets = [0, 6, 0], sizes = [8, 1, 8], strides = [1, 1, 1]} : vector<8x16x8xf32> to vector<8x1x8xf32>
    %156 = vector.extract_strided_slice %136 {offsets = [0, 7, 0], sizes = [8, 1, 8], strides = [1, 1, 1]} : vector<8x16x8xf32> to vector<8x1x8xf32>
    %157 = arith.maximumf %155, %156 : vector<8x1x8xf32>
    %c0_174 = arith.constant 0 : index
    %c0_175 = arith.constant 0 : index
    %c3_176 = arith.constant 3 : index
    %c0_177 = arith.constant 0 : index
    %158 = vector.load %arg4[%c0_174, %c0_175, %c3_176, %c0_177] : memref<1x8x8x8xf32, #tpu.memory_space<vmem>>, vector<1x8x1x8xf32>
    %159 = vector.shape_cast %158 : vector<1x8x1x8xf32> to vector<8x1x8xf32>
    %160 = vector.shape_cast %157 : vector<8x1x8xf32> to vector<1x8x1x8xf32>
    tpu.vector_store %arg4[%c0_174, %c0_175, %c3_176, %c0_177], %160 {strides = array<i32>} : memref<1x8x8x8xf32, #tpu.memory_space<vmem>>, vector<1x8x1x8xf32>,
    %161 = vector.extract_strided_slice %136 {offsets = [0, 8, 0], sizes = [8, 1, 8], strides = [1, 1, 1]} : vector<8x16x8xf32> to vector<8x1x8xf32>
    %162 = vector.extract_strided_slice %136 {offsets = [0, 9, 0], sizes = [8, 1, 8], strides = [1, 1, 1]} : vector<8x16x8xf32> to vector<8x1x8xf32>
    %163 = arith.maximumf %161, %162 : vector<8x1x8xf32>
    %c0_178 = arith.constant 0 : index
    %c0_179 = arith.constant 0 : index
    %c4_180 = arith.constant 4 : index
    %c0_181 = arith.constant 0 : index
    %164 = vector.load %arg4[%c0_178, %c0_179, %c4_180, %c0_181] : memref<1x8x8x8xf32, #tpu.memory_space<vmem>>, vector<1x8x1x8xf32>
    %165 = vector.shape_cast %164 : vector<1x8x1x8xf32> to vector<8x1x8xf32>
    %166 = vector.shape_cast %163 : vector<8x1x8xf32> to vector<1x8x1x8xf32>
    tpu.vector_store %arg4[%c0_178, %c0_179, %c4_180, %c0_181], %166 {strides = array<i32>} : memref<1x8x8x8xf32, #tpu.memory_space<vmem>>, vector<1x8x1x8xf32>,
    %167 = vector.extract_strided_slice %136 {offsets = [0, 10, 0], sizes = [8, 1, 8], strides = [1, 1, 1]} : vector<8x16x8xf32> to vector<8x1x8xf32>
    %168 = vector.extract_strided_slice %136 {offsets = [0, 11, 0], sizes = [8, 1, 8], strides = [1, 1, 1]} : vector<8x16x8xf32> to vector<8x1x8xf32>
    %169 = arith.maximumf %167, %168 : vector<8x1x8xf32>
    %c0_182 = arith.constant 0 : index
    %c0_183 = arith.constant 0 : index
    %c5_184 = arith.constant 5 : index
    %c0_185 = arith.constant 0 : index
    %170 = vector.load %arg4[%c0_182, %c0_183, %c5_184, %c0_185] : memref<1x8x8x8xf32, #tpu.memory_space<vmem>>, vector<1x8x1x8xf32>
    %171 = vector.shape_cast %170 : vector<1x8x1x8xf32> to vector<8x1x8xf32>
    %172 = vector.shape_cast %169 : vector<8x1x8xf32> to vector<1x8x1x8xf32>
    tpu.vector_store %arg4[%c0_182, %c0_183, %c5_184, %c0_185], %172 {strides = array<i32>} : memref<1x8x8x8xf32, #tpu.memory_space<vmem>>, vector<1x8x1x8xf32>,
    %173 = vector.extract_strided_slice %136 {offsets = [0, 12, 0], sizes = [8, 1, 8], strides = [1, 1, 1]} : vector<8x16x8xf32> to vector<8x1x8xf32>
    %174 = vector.extract_strided_slice %136 {offsets = [0, 13, 0], sizes = [8, 1, 8], strides = [1, 1, 1]} : vector<8x16x8xf32> to vector<8x1x8xf32>
    %175 = arith.maximumf %173, %174 : vector<8x1x8xf32>
    %c0_186 = arith.constant 0 : index
    %c0_187 = arith.constant 0 : index
    %c6_188 = arith.constant 6 : index
    %c0_189 = arith.constant 0 : index
    %176 = vector.load %arg4[%c0_186, %c0_187, %c6_188, %c0_189] : memref<1x8x8x8xf32, #tpu.memory_space<vmem>>, vector<1x8x1x8xf32>
    %177 = vector.shape_cast %176 : vector<1x8x1x8xf32> to vector<8x1x8xf32>
    %178 = vector.shape_cast %175 : vector<8x1x8xf32> to vector<1x8x1x8xf32>
    tpu.vector_store %arg4[%c0_186, %c0_187, %c6_188, %c0_189], %178 {strides = array<i32>} : memref<1x8x8x8xf32, #tpu.memory_space<vmem>>, vector<1x8x1x8xf32>,
    %179 = vector.extract_strided_slice %136 {offsets = [0, 14, 0], sizes = [8, 1, 8], strides = [1, 1, 1]} : vector<8x16x8xf32> to vector<8x1x8xf32>
    %180 = vector.extract_strided_slice %136 {offsets = [0, 15, 0], sizes = [8, 1, 8], strides = [1, 1, 1]} : vector<8x16x8xf32> to vector<8x1x8xf32>
    %181 = arith.maximumf %179, %180 : vector<8x1x8xf32>
    %c0_190 = arith.constant 0 : index
    %c0_191 = arith.constant 0 : index
    %c7_192 = arith.constant 7 : index
    %c0_193 = arith.constant 0 : index
    %182 = vector.load %arg4[%c0_190, %c0_191, %c7_192, %c0_193] : memref<1x8x8x8xf32, #tpu.memory_space<vmem>>, vector<1x8x1x8xf32>
    %183 = vector.shape_cast %182 : vector<1x8x1x8xf32> to vector<8x1x8xf32>
    %184 = vector.shape_cast %181 : vector<8x1x8xf32> to vector<1x8x1x8xf32>
    tpu.vector_store %arg4[%c0_190, %c0_191, %c7_192, %c0_193], %184 {strides = array<i32>} : memref<1x8x8x8xf32, #tpu.memory_space<vmem>>, vector<1x8x1x8xf32>,
    return
  }
  func.func @transform_0(%arg0: i32) -> (i32, i32, i32, i32) {
    %c0_i32 = arith.constant 0 : i32
    %c0_i32_0 = arith.constant 0 : i32
    %c0_i32_1 = arith.constant 0 : i32
    %c0_i32_2 = arith.constant 0 : i32
    return %arg0, %c0_i32, %c0_i32_0, %c0_i32_1 : i32, i32, i32, i32
  }
  func.func @transform_1(%arg0: i32) -> (i32, i32, i32) {
    %c0_i32 = arith.constant 0 : i32
    %c0_i32_0 = arith.constant 0 : i32
    %c0_i32_1 = arith.constant 0 : i32
    %c0_i32_2 = arith.constant 0 : i32
    return %c0_i32, %c0_i32_0, %c0_i32_1 : i32, i32, i32
  }
  func.func @transform_2(%arg0: i32) -> (i32, i32, i32) {
    %c0_i32 = arith.constant 0 : i32
    %c0_i32_0 = arith.constant 0 : i32
    %c0_i32_1 = arith.constant 0 : i32
    %c0_i32_2 = arith.constant 0 : i32
    return %c0_i32, %c0_i32_0, %c0_i32_1 : i32, i32, i32
  }
  func.func @transform_3(%arg0: i32) -> (i32, i32, i32, i32) {
    %c0_i32 = arith.constant 0 : i32
    %c0_i32_0 = arith.constant 0 : i32
    %c0_i32_1 = arith.constant 0 : i32
    %c0_i32_2 = arith.constant 0 : i32
    return %arg0, %c0_i32, %c0_i32_0, %c0_i32_1 : i32, i32, i32, i32
  }
}

</mosaic_0001>

<bundles_post_ra>
// kernel: downsample_forward.1
= control target key start
LH: loop header
LB: loop body
LE: loop exit
PB: predicated region body
PF: predicated region fallthrough
CT: control target
= control target key end

     0   :  { %s9671_s12 = smov 0   ;;  %s12679_s0 = inlined_call_operand.vmem [shape: f32[2,16,16,4], index: 0, kind: input, shape index: {}]   ;;  %s12680_s1 = inlined_call_operand.vmem [shape: f32[9,4,4], index: 1, kind: input, shape index: {}]   ;;  %s12681_s2 = inlined_call_operand.vmem [shape: f32[9,4,8], index: 2, kind: input, shape index: {}]   ;;  %s12682_s3 = inlined_call_operand.vmem [shape: f32[2,8,8,8], index: 3, kind: output, shape index: {}]  }
   0x1 LB: > { %s7518_s13 = sadd.s32 4294967295, %s9649_s12   ;;  %p7522_p0 = scmp.ge.s32.totalorder %s9649_s12, 1  ;;  %s9649_s12 = sphi %s9671_s12, %s13_s12  }
   0x2   : > { %p137_p1 = scmp.lt.s32.totalorder %s9649_s12, 3 }
   0x4   : > { %p138_p2 = pnand %p7522_p0, %p137_p1 }
   0x6   : > { %141 = sbr.rel (%p138_p2) target bundleno = 1025 (0x401), region = 32 }
   0xb   : > { %v7527_v0 = vld [vmem:[%s12680_s1 + $0x4] sm:$0xf]  ;;  %vm478_vm0 = vcmask 1043456   ;;  %p161_p3 = scmp.lt.s32.totalorder %s7518_s13, 1  ;;  %v9686_v1 = vld [vmem:[%s12680_s1 + $0x8] sm:$0xf] }
   0xc   : > { %8735 = vmatprep.subr.msk.mxu0 %vm478_vm0, %v7527_v0  ;;  %v347_v2 = vld [vmem:[%s12680_s1] sm:$0xf]  ;;  %v9694_v3 = vld [vmem:[%s12680_s1 + $0xc] sm:$0xf]  ;;  %vm204_vm1 = vcmask 31744   ;;  %vm260_vm2 = vcmask 24576  }
   0xd   : > { %8736 = vmatpush3.msk.msra.mxu0 %vm478_vm0, %v7527_v0  ;;  %s13124_s13 = smov (!%p161_p3, %s7518_s13), 1  ;;  %8785 = vmatprep.subr.msk.mxu1 %vm478_vm0, %v347_v2  ;;  %v9767_v32 = vld [vmem:[%s12680_s1 + $0x10] sm:$0xf]  ;;  %vm7363_vm3 = vcmask 57344   ;;  %vm7372_vm4 = vcmask 59394   ;;  %vm7381_vm5 = vcmask 61444  }
   0xe   : > { %8835 = vmatprep.subr.msk.mxu0 %vm478_vm0, %v9686_v1  ;;  %8786 = vmatpush3.msk.msra.mxu1 %vm478_vm0, %v347_v2  ;;  %s8139_s22 = sshll.u32 %s13124_s13, 8  ;;  %s8140_s29 = sshll.u32 %s13124_s13, 6  ;;  %vm7390_vm6 = vcmask 63494  }
   0xf   : > { %8885 = vmatprep.subr.msk.mxu1 %vm478_vm0, %v9694_v3  ;;  %s9709_s25 = scalar_lea.vmem %s12679_s0, %s8139_s22  ;;  %s12459_s5 = scalar_lea.vmem %s12682_s3, %s8140_s29 }
  0x10   : > { %v173_v4 = vld [vmem:[%s9709_s25 + $0x10] sm:$0xff]  ;;  %v174_v5 = vld [vmem:[%s9709_s25 + $0x18] sm:$0xff]  ;;  %v171_v6 = vld [vmem:[%s9709_s25] sm:$0xff] }
  0x11   : > { %207 = vst.msk [vmem:[#allocation2 + $0x31] sm:$0xff] %vm204_vm1, %v173_v4  ;;  %237 = vst.msk [vmem:[#allocation2 + $0x1] sm:$0xff] %vm204_vm1, %v173_v4  ;;  %v172_v7 = vld [vmem:[%s9709_s25 + $0x8] sm:$0xff]  ;;  %v175_v8 = vld [vmem:[%s9709_s25 + $0x20] sm:$0xff] }
  0x12   : > { %238 = vst.msk [vmem:[#allocation2 + $0x9] sm:$0xff] %vm204_vm1, %v174_v5  ;;  %208 = vst.msk [vmem:[#allocation2 + $0x39] sm:$0xff] %vm204_vm1, %v174_v5  ;;  %v176_v9 = vld [vmem:[%s9709_s25 + $0x28] sm:$0xff]  ;;  %v177_v10 = vld [vmem:[%s9709_s25 + $0x30] sm:$0xff] }
  0x13   : > { %205 = vst.msk [vmem:[#allocation2 + $0x19] sm:$0xff] %vm204_vm1, %v171_v6  ;;  %206 = vst.msk [vmem:[#allocation2 + $0x21] sm:$0xff] %vm204_vm1, %v172_v7  ;;  %v178_v11 = vld [vmem:[%s9709_s25 + $0x38] sm:$0xff]  ;;  %v179_v12 = vld [vmem:[%s9709_s25 + $0x40] sm:$0xff] }
  0x14   : > { %209 = vst.msk [vmem:[#allocation2 + $0x49] sm:$0xff] %vm204_vm1, %v175_v8  ;;  %210 = vst.msk [vmem:[#allocation2 + $0x51] sm:$0xff] %vm204_vm1, %v176_v9  ;;  %v180_v13 = vld [vmem:[%s9709_s25 + $0x48] sm:$0xff]  ;;  %v181_v14 = vld [vmem:[%s9709_s25 + $0x50] sm:$0xff] }
  0x15   : > { %211 = vst.msk [vmem:[#allocation2 + $0x61] sm:$0xff] %vm204_vm1, %v177_v10  ;;  %212 = vst.msk [vmem:[#allocation2 + $0x69] sm:$0xff] %vm204_vm1, %v178_v11  ;;  %v182_v15 = vld [vmem:[%s9709_s25 + $0x58] sm:$0xff]  ;;  %v183_v16 = vld [vmem:[%s9709_s25 + $0x60] sm:$0xff] }
  0x16   : > { %213 = vst.msk [vmem:[#allocation2 + $0x79] sm:$0xff] %vm204_vm1, %v179_v12  ;;  %214 = vst.msk [vmem:[#allocation2 + $0x81] sm:$0xff] %vm204_vm1, %v180_v13  ;;  %v184_v17 = vld [vmem:[%s9709_s25 + $0x68] sm:$0xff]  ;;  %v185_v18 = vld [vmem:[%s9709_s25 + $0x70] sm:$0xff] }
  0x17   : > { %215 = vst.msk [vmem:[#allocation2 + $0x91] sm:$0xff] %vm204_vm1, %v181_v14  ;;  %216 = vst.msk [vmem:[#allocation2 + $0x99] sm:$0xff] %vm204_vm1, %v182_v15  ;;  %v186_v19 = vld [vmem:[%s9709_s25 + $0x78] sm:$0xff]  ;;  %v187_v20 = vld [vmem:[%s9709_s25 + $0x80] sm:$0xff] }
  0x18   : > { %217 = vst.msk [vmem:[#allocation2 + $0xa9] sm:$0xff] %vm204_vm1, %v183_v16  ;;  %218 = vst.msk [vmem:[#allocation2 + $0xb1] sm:$0xff] %vm204_vm1, %v184_v17  ;;  %v188_v21 = vld [vmem:[%s9709_s25 + $0x88] sm:$0xff]  ;;  %v189_v22 = vld [vmem:[%s9709_s25 + $0x90] sm:$0xff] }
  0x19   : > { %219 = vst.msk [vmem:[#allocation2 + $0xc1] sm:$0xff] %vm204_vm1, %v185_v18  ;;  %220 = vst.msk [vmem:[#allocation2 + $0xc9] sm:$0xff] %vm204_vm1, %v186_v19  ;;  %v190_v23 = vld [vmem:[%s9709_s25 + $0x98] sm:$0xff]  ;;  %v191_v24 = vld [vmem:[%s9709_s25 + $0xa0] sm:$0xff] }
  0x1a   : > { %221 = vst.msk [vmem:[#allocation2 + $0xd9] sm:$0xff] %vm204_vm1, %v187_v20  ;;  %222 = vst.msk [vmem:[#allocation2 + $0xe1] sm:$0xff] %vm204_vm1, %v188_v21  ;;  %v192_v25 = vld [vmem:[%s9709_s25 + $0xa8] sm:$0xff]  ;;  %v193_v26 = vld [vmem:[%s9709_s25 + $0xb0] sm:$0xff] }
  0x1b   : > { %223 = vst.msk [vmem:[#allocation2 + $0xf1] sm:$0xff] %vm204_vm1, %v189_v22  ;;  %224 = vst.msk [vmem:[#allocation2 + $0xf9] sm:$0xff] %vm204_vm1, %v190_v23  ;;  %v194_v27 = vld [vmem:[%s9709_s25 + $0xb8] sm:$0xff]  ;;  %v348_v28 = vld [vmem:[#allocation2 + $0x1] sm:$0xff] }
  0x1c   : > { %225 = vst.msk [vmem:[#allocation2 + $0x109] sm:$0xff] %vm204_vm1, %v191_v24  ;;  %v349_v29 = vld [vmem:[#allocation2 + $0x9] sm:$0xff]  ;;  %v9758_v30 = vld [vmem:[#allocation2 + $0x19] sm:$0xff]  ;;  %226 = vst.msk [vmem:[#allocation2 + $0x111] sm:$0xff] %vm204_vm1, %v192_v25  ;;  %8737 = vmatprep.mubr.msk.f32.mxu0 %vm204_vm1, %v348_v28 }
  0x1d   : > { %227 = vst.msk [vmem:[#allocation2 + $0x121] sm:$0xff] %vm204_vm1, %v193_v26  ;;  %228 = vst.msk [vmem:[#allocation2 + $0x129] sm:$0xff] %vm204_vm1, %v194_v27  ;;  %v242_v31 = vld [vmem:[#allocation2 + $0x2] sm:$0x1]  ;;  %8738 = vmatmul.mubr.msk.f32.vlgmr.msra.gmra.mxu0 %vm204_vm1, %v349_v29  ;;  %v243_v34 = vld [vmem:[#allocation2 + $0x1a] sm:$0x1] }
  0x1e   : > { %261 = vst.msk [vmem:[#allocation2] sm:$0x1] %vm260_vm2, %v242_v31  ;;  %8836 = vmatpush3.msk.msra.mxu0 %vm478_vm0, %v9686_v1  ;;  %8740 = vmatprep.mubr.msk.f32.mxu0 %vm204_vm1, %v9758_v30  ;;  %v9775_v33 = vld [vmem:[#allocation2 + $0x21] sm:$0xff]  ;;  %v9777_v35 = vld [vmem:[#allocation2 + $0x31] sm:$0xff]  ;;  %262 = vst.msk [vmem:[#allocation2 + $0x18] sm:$0x1] %vm260_vm2, %v243_v34 }
  0x1f   : > { %v244_v36 = vld [vmem:[#allocation2 + $0x32] sm:$0x1]  ;;  %8935 = vmatprep.subr.msk.mxu0 %vm478_vm0, %v9767_v32  ;;  %v245_v37 = vld [vmem:[#allocation2 + $0x4a] sm:$0x1]  ;;  %v9788_v38 = vld [vmem:[#allocation2 + $0x39] sm:$0xff] }
  0x20   : > { %263 = vst.msk [vmem:[#allocation2 + $0x30] sm:$0x1] %vm260_vm2, %v244_v36  ;;  %264 = vst.msk [vmem:[#allocation2 + $0x48] sm:$0x1] %vm260_vm2, %v245_v37  ;;  %v246_v39 = vld [vmem:[#allocation2 + $0x62] sm:$0x1] }
  0x21   : > { %8741 = vmatmul.mubr.msk.f32.gmra.mxu0 %vm204_vm1, %v9775_v33  ;;  %v316_v40 = vld [vmem:[#allocation2 + $0x8] sm:$0xff]  ;;  %265 = vst.msk [vmem:[#allocation2 + $0x60] sm:$0x1] %vm260_vm2, %v246_v39  ;;  %v247_v42 = vld [vmem:[#allocation2 + $0x7a] sm:$0x1]  ;;  %v9802_v46 = vld [vmem:[#allocation2 + $0x51] sm:$0xff] }
  0x22   : > { %8743 = vmatprep.mubr.msk.f32.mxu0 %vm204_vm1, %v9777_v35  ;;  %v9790_v41 = vld [vmem:[#allocation2 + $0x49] sm:$0xff]  ;;  %266 = vst.msk [vmem:[#allocation2 + $0x78] sm:$0x1] %vm260_vm2, %v247_v42  ;;  %v248_v44 = vld [vmem:[#allocation2 + $0x92] sm:$0x1]  ;;  %v9807_v48 = vld [vmem:[#allocation2 + $0x20] sm:$0xff] }
  0x23   : > { %267 = vst.msk [vmem:[#allocation2 + $0x90] sm:$0x1] %vm260_vm2, %v248_v44  ;;  %v249_v47 = vld [vmem:[#allocation2 + $0xaa] sm:$0x1]  ;;  %v9809_v49 = vld [vmem:[#allocation2 + $0x61] sm:$0xff]  ;;  %v9827_v54 = vld [vmem:[#allocation2 + $0x38] sm:$0xff] }
  0x24   : > { %268 = vst.msk [vmem:[#allocation2 + $0xa8] sm:$0x1] %vm260_vm2, %v249_v47  ;;  %v250_v51 = vld [vmem:[#allocation2 + $0xc2] sm:$0x1]  ;;  %v9823_v52 = vld [vmem:[#allocation2 + $0x69] sm:$0xff]  ;;  %12742 = vst [vmem:[#allocation4_spill] sm:$0xff] %v9827_v54 }
  0x25   : > { %v315_v43 = vld [vmem:[#allocation2] sm:$0xff]  ;;  %8744 = vmatmul.mubr.msk.f32.gmra.mxu0 %vm204_vm1, %v9788_v38  ;;  %v9800_v45 = vld [vmem:[#allocation2 + $0x18] sm:$0xff]  ;;  %269 = vst.msk [vmem:[#allocation2 + $0xc0] sm:$0x1] %vm260_vm2, %v250_v51  ;;  %v252_v57 = vld [vmem:[#allocation2 + $0xf2] sm:$0x1] }
  0x26   : > { %8787 = vmatprep.mubr.msk.f32.mxu1 %vm204_vm1, %v315_v43  ;;  %8746 = vmatprep.mubr.msk.f32.mxu0 %vm204_vm1, %v9790_v41  ;;  %v251_v53 = vld [vmem:[#allocation2 + $0xda] sm:$0x1]  ;;  %v9836_v58 = vld [vmem:[#allocation2 + $0x81] sm:$0xff]  ;;  %271 = vst.msk [vmem:[#allocation2 + $0xf0] sm:$0x1] %vm260_vm2, %v252_v57  ;;  %v9844_v61 = vld [vmem:[#allocation2 + $0x50] sm:$0xff] }
  0x27   : > { %8788 = vmatmul.mubr.msk.f32.vlgmr.msra.gmra.mxu1 %vm204_vm1, %v316_v40  ;;  %v9814_v50 = vld [vmem:[#allocation2 + $0x30] sm:$0xff]  ;;  %v9829_v55 = vld [vmem:[#allocation2 + $0x79] sm:$0xff]  ;;  %270 = vst.msk [vmem:[#allocation2 + $0xd8] sm:$0x1] %vm260_vm2, %v251_v53  ;;  %v9832_v56 = vld [vmem:[#allocation2 + $0x48] sm:$0xff] }
  0x28   : > { %8790 = vmatprep.mubr.msk.f32.mxu1 %vm204_vm1, %v9800_v45  ;;  %8886 = vmatpush3.msk.msra.mxu1 %vm478_vm0, %v9694_v3  ;;  %12741 = vst [vmem:[#allocation3_spill] sm:$0xff] %v9814_v50  ;;  %12743 = vst [vmem:[#allocation5_spill] sm:$0xff] %v9832_v56  ;;  %v195_v59 = vld [vmem:[%s9709_s25 + $0xc0] sm:$0xff]  ;;  %v253_v60 = vld [vmem:[#allocation2 + $0x10a] sm:$0x1] }
  0x29   : > { %8747 = vmatmul.mubr.msk.f32.gmra.mxu0 %vm204_vm1, %v9802_v46  ;;  %12744 = vst [vmem:[#allocation6_spill] sm:$0xff] %v9844_v61  ;;  %v9846_v62 = vld [vmem:[#allocation2 + $0x91] sm:$0xff]  ;;  %229 = vst.msk [vmem:[#allocation2 + $0x139] sm:$0xff] %vm204_vm1, %v195_v59  ;;  %v196_v63 = vld [vmem:[%s9709_s25 + $0xc8] sm:$0xff] }
  0x2a   : > { %8749 = vmatprep.mubr.msk.f32.mxu0 %vm204_vm1, %v9809_v49  ;;  %272 = vst.msk [vmem:[#allocation2 + $0x108] sm:$0x1] %vm260_vm2, %v253_v60  ;;  %v197_v0 = vld [vmem:[%s9709_s25 + $0xd0] sm:$0xff]  ;;  %v254_v1 = vld [vmem:[#allocation2 + $0x122] sm:$0x1]  ;;  %v198_v2 = vld [vmem:[%s9709_s25 + $0xd8] sm:$0xff] }
  0x2b   : > { %8791 = vmatmul.mubr.msk.f32.gmra.mxu1 %vm204_vm1, %v9807_v48  ;;  %230 = vst.msk [vmem:[#allocation2 + $0x141] sm:$0xff] %vm204_vm1, %v196_v63  ;;  %v9856_v3 = vld [vmem:[#allocation2 + $0x60] sm:$0xff]  ;;  %231 = vst.msk [vmem:[#allocation2 + $0x151] sm:$0xff] %vm204_vm1, %v197_v0  ;;  %v200_v5 = vld [vmem:[%s9709_s25 + $0xe8] sm:$0xff] }
  0x2c   : > { %8793 = vmatprep.mubr.msk.f32.mxu1 %vm204_vm1, %v9814_v50  ;;  %12745 = vst [vmem:[#allocation7_spill] sm:$0xff] %v9856_v3  ;;  %273 = vst.msk [vmem:[#allocation2 + $0x120] sm:$0x1] %vm260_vm2, %v254_v1  ;;  %v199_v4 = vld [vmem:[%s9709_s25 + $0xe0] sm:$0xff]  ;;  %v279_v6 = vld [vmem:[#allocation2 + $0xf] sm:$0x1] }
  0x2d   : > { %8750 = vmatmul.mubr.msk.f32.gmra.mxu0 %vm204_vm1, %v9823_v52  ;;  %232 = vst.msk [vmem:[#allocation2 + $0x159] sm:$0xff] %vm204_vm1, %v198_v2  ;;  %233 = vst.msk [vmem:[#allocation2 + $0x169] sm:$0xff] %vm204_vm1, %v199_v4  ;;  %v9871_v7 = vld [vmem:[#allocation2 + $0x99] sm:$0xff]  ;;  %v280_v8 = vld [vmem:[#allocation2 + $0x27] sm:$0x1] }
  0x2e   : > { %8752 = vmatprep.mubr.msk.f32.mxu0 %vm204_vm1, %v9829_v55  ;;  %240 = vst.msk [vmem:[#allocation2 + $0x199] sm:$0xff] %vm204_vm1, %v199_v4  ;;  %234 = vst.msk [vmem:[#allocation2 + $0x171] sm:$0xff] %vm204_vm1, %v200_v5  ;;  %v9878_v9 = vld [vmem:[#allocation2 + $0x68] sm:$0xff]  ;;  %v281_v11 = vld [vmem:[#allocation2 + $0x3f] sm:$0x1] }
  0x2f   : > { %8794 = vmatmul.mubr.msk.f32.gmra.mxu1 %vm204_vm1, %v9827_v54  ;;  %241 = vst.msk [vmem:[#allocation2 + $0x1a1] sm:$0xff] %vm204_vm1, %v200_v5  ;;  %12746 = vst [vmem:[#allocation8_spill] sm:$0xff] %v9878_v9  ;;  %v9880_v10 = vld [vmem:[#allocation2 + $0xa9] sm:$0xff]  ;;  %v9883_v12 = vld [vmem:[#allocation2 + $0x78] sm:$0xff] }
  0x30   : > { %8796 = vmatprep.mubr.msk.f32.mxu1 %vm204_vm1, %v9832_v56  ;;  %297 = vst.msk [vmem:[#allocation2 + $0x11] sm:$0x1] %vm260_vm2, %v279_v6  ;;  %298 = vst.msk [vmem:[#allocation2 + $0x29] sm:$0x1] %vm260_vm2, %v280_v8  ;;  %v282_v13 = vld [vmem:[#allocation2 + $0x57] sm:$0x1] }
  0x31   : > { %8753 = vmatmul.mubr.msk.f32.gmra.mxu0 %vm204_vm1, %v9836_v58  ;;  %12747 = vst [vmem:[#allocation9_spill] sm:$0xff] %v9883_v12  ;;  %299 = vst.msk [vmem:[#allocation2 + $0x41] sm:$0x1] %vm260_vm2, %v281_v11  ;;  %v255_v14 = vld [vmem:[#allocation2 + $0x13a] sm:$0x1]  ;;  %v9893_v15 = vld [vmem:[#allocation2 + $0xb1] sm:$0xff] }
  0x32   : > { %8755 = vmatprep.mubr.msk.f32.mxu0 %vm204_vm1, %v9846_v62  ;;  %300 = vst.msk [vmem:[#allocation2 + $0x59] sm:$0x1] %vm260_vm2, %v282_v13  ;;  %274 = vst.msk [vmem:[#allocation2 + $0x138] sm:$0x1] %vm260_vm2, %v255_v14  ;;  %v283_v16 = vld [vmem:[#allocation2 + $0x6f] sm:$0x1] }
  0x33   : > { %8797 = vmatmul.mubr.msk.f32.gmra.mxu1 %vm204_vm1, %v9844_v61  ;;  %v9898_v17 = vld [vmem:[#allocation2 + $0x80] sm:$0xff]  ;;  %301 = vst.msk [vmem:[#allocation2 + $0x71] sm:$0x1] %vm260_vm2, %v283_v16  ;;  %v9903_v19 = vld [vmem:[#allocation2 + $0x90] sm:$0xff]  ;;  %v9917_v23 = vld [vmem:[#allocation2 + $0x98] sm:$0xff] }
  0x34   : > { %8799 = vmatprep.mubr.msk.f32.mxu1 %vm204_vm1, %v9856_v3  ;;  %12748 = vst [vmem:[#allocation10_spill] sm:$0xff] %v9898_v17  ;;  %v9900_v18 = vld [vmem:[#allocation2 + $0xc1] sm:$0xff]  ;;  %12749 = vst [vmem:[#allocation11_spill] sm:$0xff] %v9903_v19  ;;  %v256_v20 = vld [vmem:[#allocation2 + $0x152] sm:$0x1] }
  0x35   : > { %8756 = vmatmul.mubr.msk.f32.gmra.mxu0 %vm204_vm1, %v9871_v7  ;;  %275 = vst.msk [vmem:[#allocation2 + $0x150] sm:$0x1] %vm260_vm2, %v256_v20  ;;  %v257_v21 = vld [vmem:[#allocation2 + $0x16a] sm:$0x1]  ;;  %12750 = vst [vmem:[#allocation12_spill] sm:$0xff] %v9917_v23  ;;  %v9919_v24 = vld [vmem:[#allocation2 + $0xd9] sm:$0xff] }
  0x36   : > { %8758 = vmatprep.mubr.msk.f32.mxu0 %vm204_vm1, %v9880_v10  ;;  %v9912_v22 = vld [vmem:[#allocation2 + $0xc9] sm:$0xff]  ;;  %276 = vst.msk [vmem:[#allocation2 + $0x168] sm:$0x1] %vm260_vm2, %v257_v21  ;;  %v284_v25 = vld [vmem:[#allocation2 + $0x87] sm:$0x1]  ;;  %v9938_v36 = vld [vmem:[#allocation2 + $0xf1] sm:$0xff] }
  0x37   : > { %8800 = vmatmul.mubr.msk.f32.gmra.mxu1 %vm204_vm1, %v9878_v9  ;;  %v9921_v26 = vld [vmem:[#allocation2 + $0xa8] sm:$0xff]  ;;  %302 = vst.msk [vmem:[#allocation2 + $0x89] sm:$0x1] %vm260_vm2, %v284_v25  ;;  %v285_v27 = vld [vmem:[#allocation2 + $0x9f] sm:$0x1]  ;;  %v9933_v31 = vld [vmem:[#allocation2 + $0xb0] sm:$0xff] }
  0x38   : > { %8802 = vmatprep.mubr.msk.f32.mxu1 %vm204_vm1, %v9883_v12  ;;  %12751 = vst [vmem:[#allocation13_spill] sm:$0xff] %v9921_v26  ;;  %303 = vst.msk [vmem:[#allocation2 + $0xa1] sm:$0x1] %vm260_vm2, %v285_v27  ;;  %v286_v28 = vld [vmem:[#allocation2 + $0xb7] sm:$0x1]  ;;  %v9931_v29 = vld [vmem:[#allocation2 + $0xe1] sm:$0xff] }
  0x39   : > { %8759 = vmatmul.mubr.msk.f32.gmra.mxu0 %vm204_vm1, %v9893_v15  ;;  %12752 = vst [vmem:[#allocation14_spill] sm:$0xff] %v9933_v31  ;;  %304 = vst.msk [vmem:[#allocation2 + $0xb9] sm:$0x1] %vm260_vm2, %v286_v28  ;;  %v287_v34 = vld [vmem:[#allocation2 + $0xcf] sm:$0x1]  ;;  %v9941_v40 = vld [vmem:[#allocation2 + $0xc0] sm:$0xff] }
  0x3a   : > { %8761 = vmatprep.mubr.msk.f32.mxu0 %vm204_vm1, %v9900_v18  ;;  %305 = vst.msk [vmem:[#allocation2 + $0xd1] sm:$0x1] %vm260_vm2, %v287_v34  ;;  %v288_v37 = vld [vmem:[#allocation2 + $0xe7] sm:$0x1]  ;;  %v289_v39 = vld [vmem:[#allocation2 + $0xff] sm:$0x1] }
  0x3b   : > { %8803 = vmatmul.mubr.msk.f32.gmra.mxu1 %vm204_vm1, %v9898_v17  ;;  %12753 = vst [vmem:[#allocation15_spill] sm:$0xff] %v9941_v40  ;;  %306 = vst.msk [vmem:[#allocation2 + $0xe9] sm:$0x1] %vm260_vm2, %v288_v37  ;;  %v290_v42 = vld [vmem:[#allocation2 + $0x117] sm:$0x1]  ;;  %v9952_v44 = vld [vmem:[#allocation2 + $0xf9] sm:$0xff] }
  0x3c   : > { %8805 = vmatprep.mubr.msk.f32.mxu1 %vm204_vm1, %v9903_v19  ;;  %307 = vst.msk [vmem:[#allocation2 + $0x101] sm:$0x1] %vm260_vm2, %v289_v39  ;;  %308 = vst.msk [vmem:[#allocation2 + $0x119] sm:$0x1] %vm260_vm2, %v290_v42  ;;  %v291_v43 = vld [vmem:[#allocation2 + $0x12f] sm:$0x1] }
  0x3d   : > { %8762 = vmatmul.mubr.msk.f32.gmra.mxu0 %vm204_vm1, %v9912_v22  ;;  %309 = vst.msk [vmem:[#allocation2 + $0x131] sm:$0x1] %vm260_vm2, %v291_v43  ;;  %v292_v47 = vld [vmem:[#allocation2 + $0x147] sm:$0x1]  ;;  %v9957_v51 = vld [vmem:[#allocation2 + $0xc8] sm:$0xff]  ;;  %v9962_v59 = vld [vmem:[#allocation2 + $0xd8] sm:$0xff] }
  0x3e   : > { %8764 = vmatprep.mubr.msk.f32.mxu0 %vm204_vm1, %v9919_v24  ;;  %12754 = vst [vmem:[#allocation16_spill] sm:$0xff] %v9957_v51  ;;  %v9959_v53 = vld [vmem:[#allocation2 + $0x109] sm:$0xff]  ;;  %310 = vst.msk [vmem:[#allocation2 + $0x149] sm:$0x1] %vm260_vm2, %v292_v47  ;;  %v293_v57 = vld [vmem:[#allocation2 + $0x15f] sm:$0x1] }
  0x3f   : > { %8806 = vmatmul.mubr.msk.f32.gmra.mxu1 %vm204_vm1, %v9917_v23  ;;  %12755 = vst [vmem:[#allocation17_spill] sm:$0xff] %v9962_v59  ;;  %311 = vst.msk [vmem:[#allocation2 + $0x161] sm:$0x1] %vm260_vm2, %v293_v57  ;;  %v294_v60 = vld [vmem:[#allocation2 + $0x177] sm:$0x1]  ;;  %v202_v2 = vld [vmem:[%s9709_s25 + $0xf8] sm:$0xff] }
  0x40   : > { %8808 = vmatprep.mubr.msk.f32.mxu1 %vm204_vm1, %v9921_v26  ;;  %v9968_v63 = vld [vmem:[%s12680_s1 + $0x14] sm:$0xf]  ;;  %312 = vst.msk [vmem:[#allocation2 + $0x179] sm:$0x1] %vm260_vm2, %v294_v60  ;;  %v9986_v4 = vld [vmem:[#allocation2 + $0xe0] sm:$0xff]  ;;  %v9999_v8 = vld [vmem:[#allocation2 + $0x129] sm:$0xff] }
  0x41   : > { %8765 = vmatmul.mubr.msk.f32.gmra.mxu0 %vm204_vm1, %v9931_v29  ;;  %8985 = vmatprep.subr.msk.mxu1 %vm478_vm0, %v9968_v63  ;;  %v201_v0 = vld [vmem:[%s9709_s25 + $0xf0] sm:$0xff]  ;;  %12756 = vst [vmem:[#allocation18_spill] sm:$0xff] %v9986_v4  ;;  %v9988_v5 = vld [vmem:[#allocation2 + $0x121] sm:$0xff]  ;;  %236 = vst.msk [vmem:[#allocation2 + $0x189] sm:$0xff] %vm204_vm1, %v202_v2 }
  0x42   : > { %8767 = vmatprep.mubr.msk.f32.mxu0 %vm204_vm1, %v9938_v36  ;;  %v9980_v1 = vld [vmem:[#allocation2 + $0x111] sm:$0xff]  ;;  %235 = vst.msk [vmem:[#allocation2 + $0x181] sm:$0xff] %vm204_vm1, %v201_v0  ;;  %v10005_v13 = vld [vmem:[#allocation2 + $0x139] sm:$0xff]  ;;  %v10007_v14 = vld [vmem:[#allocation2 + $0x108] sm:$0xff] }
  0x43   : > { %8809 = vmatmul.mubr.msk.f32.gmra.mxu1 %vm204_vm1, %v9933_v31  ;;  %v9991_v6 = vld [vmem:[#allocation2 + $0xf0] sm:$0xff]  ;;  %v10003_v11 = vld [vmem:[#allocation2 + $0xf8] sm:$0xff]  ;;  %v10015_v20 = vld [vmem:[#allocation2 + $0x141] sm:$0xff] }
  0x44   : > { %8811 = vmatprep.mubr.msk.f32.mxu1 %vm204_vm1, %v9941_v40  ;;  %12757 = vst [vmem:[#allocation19_spill] sm:$0xff] %v9991_v6  ;;  %12758 = vst [vmem:[#allocation20_spill] sm:$0xff] %v10003_v11  ;;  %v10020_v21 = vld [vmem:[#allocation2 + $0x110] sm:$0xff]  ;;  %v10024_v27 = vld [vmem:[#allocation2 + $0x120] sm:$0xff] }
  0x45   : > { %8768 = vmatmul.mubr.msk.f32.gmra.mxu0 %vm204_vm1, %v9952_v44  ;;  %12759 = vst [vmem:[#allocation21_spill] sm:$0xff] %v10015_v20  ;;  %12760 = vst [vmem:[#allocation22_spill] sm:$0xff] %v10020_v21  ;;  %v10022_v25 = vld [vmem:[#allocation2 + $0x151] sm:$0xff]  ;;  %v10032_v28 = vld [vmem:[#allocation2 + $0x159] sm:$0xff] }
  0x46   : > { %8770 = vmatprep.mubr.msk.f32.mxu0 %vm204_vm1, %v9959_v53  ;;  %12761 = vst [vmem:[#allocation23_spill] sm:$0xff] %v10022_v25  ;;  %12762 = vst [vmem:[#allocation24_spill] sm:$0xff] %v10024_v27  ;;  %v10036_v34 = vld [vmem:[#allocation2 + $0x128] sm:$0xff]  ;;  %v10040_v39 = vld [vmem:[#allocation2 + $0x138] sm:$0xff] }
  0x47   : > { %8812 = vmatmul.mubr.msk.f32.gmra.mxu1 %vm204_vm1, %v9957_v51  ;;  %12763 = vst [vmem:[#allocation25_spill] sm:$0xff] %v10032_v28  ;;  %v10038_v37 = vld [vmem:[#allocation2 + $0x169] sm:$0xff]  ;;  %v10048_v42 = vld [vmem:[#allocation2 + $0x171] sm:$0xff]  ;;  %v10052_v43 = vld [vmem:[#allocation2 + $0x140] sm:$0xff] }
  0x48   : > { %8814 = vmatprep.mubr.msk.f32.mxu1 %vm204_vm1, %v9962_v59  ;;  %12764 = vst [vmem:[#allocation26_spill] sm:$0xff] %v10038_v37  ;;  %12765 = vst [vmem:[#allocation27_spill] sm:$0xff] %v10048_v42  ;;  %v1031_v47 = vld [vmem:[#allocation2 + $0x2] sm:$0xff]  ;;  %v10054_v57 = vld [vmem:[#allocation2 + $0x150] sm:$0xff] }
  0x49   : > { %8771 = vmatmul.mubr.msk.f32.gmra.mxu0 %vm204_vm1, %v9980_v1  ;;  %v258_v16 = vld [vmem:[#allocation2 + $0x182] sm:$0x1]  ;;  %12766 = vst [vmem:[#allocation28_spill] sm:$0xff] %v10052_v43  ;;  %12767 = vst [vmem:[#allocation29_spill] sm:$0xff] %v10054_v57  ;;  %v295_v60 = vld [vmem:[#allocation2 + $0x18f] sm:$0x1] }
  0x4a   : > { %8773 = vmatprep.mubr.msk.f32.mxu0 %vm204_vm1, %v9988_v5  ;;  %277 = vst.msk [vmem:[#allocation2 + $0x180] sm:$0x1] %vm260_vm2, %v258_v16  ;;  %v1032_v0 = vld [vmem:[#allocation2 + $0xa] sm:$0xff]  ;;  %313 = vst.msk [vmem:[#allocation2 + $0x191] sm:$0x1] %vm260_vm2, %v295_v60  ;;  %v10064_v2 = vld [vmem:[#allocation2 + $0x158] sm:$0xff] }
  0x4b   : > { %8815 = vmatmul.mubr.msk.f32.gmra.mxu1 %vm204_vm1, %v9986_v4  ;;  %v10066_v16 = vld [vmem:[#allocation2 + $0x168] sm:$0xff]  ;;  %v10086_v60 = vld [vmem:[#allocation2 + $0x170] sm:$0xff] }
  0x4c   : > { %8817 = vmatprep.mubr.msk.f32.mxu1 %vm204_vm1, %v9991_v6 }
  0x4d   : > { %8774 = vmatmul.mubr.msk.f32.gmra.mxu0 %vm204_vm1, %v9999_v8 }
  0x4e   : > { %8776 = vmatprep.mubr.msk.f32.mxu0 %vm204_vm1, %v10005_v13 }
  0x4f   : > { %8818 = vmatmul.mubr.msk.f32.gmra.mxu1 %vm204_vm1, %v10003_v11 }
  0x50   : > { %8820 = vmatprep.mubr.msk.f32.mxu1 %vm204_vm1, %v10007_v14 }
  0x51   : > { %8777 = vmatmul.mubr.msk.f32.gmra.mxu0 %vm204_vm1, %v10015_v20  ;;  %v10115_v20 = vld [vmem:[#allocation2 + $0x52] sm:$0xff] }
  0x52   : > { %8779 = vmatprep.mubr.msk.f32.mxu0 %vm204_vm1, %v10022_v25  ;;  %v10109_v25 = vld [vmem:[%s12680_s1 + $0x1c] sm:$0xf] }
  0x53   : > { %8821 = vmatmul.mubr.msk.f32.gmra.mxu1 %vm204_vm1, %v10020_v21 }
  0x54   : > { %8823 = vmatprep.mubr.msk.f32.mxu1 %vm204_vm1, %v10024_v27 }
  0x55   : > { %8780 = vmatmul.mubr.msk.f32.gmra.mxu0 %vm204_vm1, %v10032_v28  ;;  %v10102_v28 = vld [vmem:[#allocation2 + $0x4a] sm:$0xff] }
  0x56   : > { %8782 = vmatprep.mubr.msk.f32.mxu0 %vm204_vm1, %v10038_v37  ;;  %v10068_v37 = vld [vmem:[#allocation2 + $0x1a] sm:$0xff] }
  0x57   : > { %8824 = vmatmul.mubr.msk.f32.gmra.mxu1 %vm204_vm1, %v10036_v34 }
  0x58   : > { %8826 = vmatprep.mubr.msk.f32.mxu1 %vm204_vm1, %v10040_v39 }
  0x59   : > { %8783 = vmatmul.mubr.msk.f32.gmra.mxu0 %vm204_vm1, %v10048_v42  ;;  %v10074_v42 = vld [vmem:[%s12680_s1 + $0x18] sm:$0xf] }
  0x5a   : > { %8837 = vmatprep.mubr.msk.f32.mxu0 %vm204_vm1, %v1031_v47  ;;  %v10080_v47 = vld [vmem:[#allocation2 + $0x22] sm:$0xff] }
  0x5b   : > { %8827 = vmatmul.mubr.msk.f32.gmra.mxu1 %vm204_vm1, %v10052_v43 }
  0x5c   : > { %8829 = vmatprep.mubr.msk.f32.mxu1 %vm204_vm1, %v10054_v57 }
  0x5d   : > { %8838 = vmatmul.mubr.msk.f32.vlgmr.msra.gmra.mxu0 %vm204_vm1, %v1032_v0  ;;  %v10088_v0 = vld [vmem:[#allocation2 + $0x32] sm:$0xff] }
  0x5e   : > { %8936 = vmatpush3.msk.msra.mxu0 %vm478_vm0, %v9767_v32  ;;  %8840 = vmatprep.mubr.msk.f32.mxu0 %vm204_vm1, %v10068_v37  ;;  %v10098_v32 = vld [vmem:[#allocation2 + $0x3a] sm:$0xff] }
  0x5f   : > { %8830 = vmatmul.mubr.msk.f32.gmra.mxu1 %vm204_vm1, %v10064_v2  ;;  %9035 = vmatprep.subr.msk.mxu0 %vm478_vm0, %v10074_v42 }
  0x60   : > { %8832 = vmatprep.mubr.msk.f32.mxu1 %vm204_vm1, %v10066_v16 }
  0x61   : > { %8841 = vmatmul.mubr.msk.f32.gmra.mxu0 %vm204_vm1, %v10080_v47 }
  0x62   : > { %8843 = vmatprep.mubr.msk.f32.mxu0 %vm204_vm1, %v10088_v0 }
  0x63   : > { %8833 = vmatmul.mubr.msk.f32.gmra.mxu1 %vm204_vm1, %v10086_v60 }
  0x64   : > { %8887 = vmatprep.mubr.msk.f32.mxu1 %vm204_vm1, %v9800_v45  ;;  %v10119_v45 = vld [vmem:[#allocation2 + $0x62] sm:$0xff] }
  0x65   : > { %8844 = vmatmul.mubr.msk.f32.gmra.mxu0 %vm204_vm1, %v10098_v32 }
  0x66   : > { %8846 = vmatprep.mubr.msk.f32.mxu0 %vm204_vm1, %v10102_v28 }
  0x67   : > { %8888 = vmatmul.mubr.msk.f32.vlgmr.msra.gmra.mxu1 %vm204_vm1, %v9807_v48  ;;  %v10131_v48 = vld [vmem:[#allocation2 + $0x6a] sm:$0xff] }
  0x68   : > { %8890 = vmatprep.mubr.msk.f32.mxu1 %vm204_vm1, %v9814_v50  ;;  %8986 = vmatpush3.msk.msra.mxu1 %vm478_vm0, %v9968_v63  ;;  %v10135_v50 = vld [vmem:[#allocation2 + $0x7a] sm:$0xff]  ;;  %v10143_v63 = vld [vmem:[#allocation2 + $0x82] sm:$0xff] }
  0x69   : > { %9085 = vmatprep.subr.msk.mxu1 %vm478_vm0, %v10109_v25  ;;  %8847 = vmatmul.mubr.msk.f32.gmra.mxu0 %vm204_vm1, %v10115_v20 }
  0x6a   : > { %8849 = vmatprep.mubr.msk.f32.mxu0 %vm204_vm1, %v10119_v45 }
  0x6b   : > { %8891 = vmatmul.mubr.msk.f32.gmra.mxu1 %vm204_vm1, %v9827_v54  ;;  %v10147_v54 = vld [vmem:[#allocation2 + $0x92] sm:$0xff] }
  0x6c   : > { %8893 = vmatprep.mubr.msk.f32.mxu1 %vm204_vm1, %v9832_v56  ;;  %v10159_v56 = vld [vmem:[#allocation2 + $0xaa] sm:$0xff] }
  0x6d   : > { %8850 = vmatmul.mubr.msk.f32.gmra.mxu0 %vm204_vm1, %v10131_v48 }
  0x6e   : > { %8852 = vmatprep.mubr.msk.f32.mxu0 %vm204_vm1, %v10135_v50 }
  0x6f   : > { %8894 = vmatmul.mubr.msk.f32.gmra.mxu1 %vm204_vm1, %v9844_v61  ;;  %v10155_v61 = vld [vmem:[#allocation2 + $0x9a] sm:$0xff] }
  0x70   : > { %8896 = vmatprep.mubr.msk.f32.mxu1 %vm204_vm1, %v9856_v3  ;;  %v10171_v3 = vld [vmem:[#allocation2 + $0xc2] sm:$0xff] }
  0x71   : > { %8853 = vmatmul.mubr.msk.f32.gmra.mxu0 %vm204_vm1, %v10143_v63 }
  0x72   : > { %8855 = vmatprep.mubr.msk.f32.mxu0 %vm204_vm1, %v10147_v54 }
  0x73   : > { %8897 = vmatmul.mubr.msk.f32.gmra.mxu1 %vm204_vm1, %v9878_v9  ;;  %v10167_v9 = vld [vmem:[#allocation2 + $0xb2] sm:$0xff] }
  0x74   : > { %8899 = vmatprep.mubr.msk.f32.mxu1 %vm204_vm1, %v9883_v12  ;;  %v10183_v12 = vld [vmem:[#allocation2 + $0xda] sm:$0xff] }
  0x75   : > { %8856 = vmatmul.mubr.msk.f32.gmra.mxu0 %vm204_vm1, %v10155_v61 }
  0x76   : > { %8858 = vmatprep.mubr.msk.f32.mxu0 %vm204_vm1, %v10159_v56 }
  0x77   : > { %8900 = vmatmul.mubr.msk.f32.gmra.mxu1 %vm204_vm1, %v9898_v17  ;;  %v10179_v17 = vld [vmem:[#allocation2 + $0xca] sm:$0xff] }
  0x78   : > { %8902 = vmatprep.mubr.msk.f32.mxu1 %vm204_vm1, %v9903_v19  ;;  %v10195_v19 = vld [vmem:[#allocation2 + $0xf2] sm:$0xff] }
  0x79   : > { %8859 = vmatmul.mubr.msk.f32.gmra.mxu0 %vm204_vm1, %v10167_v9 }
  0x7a   : > { %8861 = vmatprep.mubr.msk.f32.mxu0 %vm204_vm1, %v10171_v3 }
  0x7b   : > { %8903 = vmatmul.mubr.msk.f32.gmra.mxu1 %vm204_vm1, %v9917_v23  ;;  %v10191_v23 = vld [vmem:[#allocation2 + $0xe2] sm:$0xff] }
  0x7c   : > { %8905 = vmatprep.mubr.msk.f32.mxu1 %vm204_vm1, %v9921_v26  ;;  %v10207_v26 = vld [vmem:[#allocation2 + $0x10a] sm:$0xff] }
  0x7d   : > { %8862 = vmatmul.mubr.msk.f32.gmra.mxu0 %vm204_vm1, %v10179_v17 }
  0x7e   : > { %8864 = vmatprep.mubr.msk.f32.mxu0 %vm204_vm1, %v10183_v12 }
  0x7f   : > { %8906 = vmatmul.mubr.msk.f32.gmra.mxu1 %vm204_vm1, %v9933_v31  ;;  %v10203_v31 = vld [vmem:[#allocation2 + $0xfa] sm:$0xff] }
  0x80   : > { %8908 = vmatprep.mubr.msk.f32.mxu1 %vm204_vm1, %v9941_v40  ;;  %v10219_v40 = vld [vmem:[#allocation2 + $0x122] sm:$0xff] }
  0x81   : > { %8865 = vmatmul.mubr.msk.f32.gmra.mxu0 %vm204_vm1, %v10191_v23  ;;  %12768 = vst [vmem:[#allocation30_spill] sm:$0xff] %v10219_v40 }
  0x82   : > { %8867 = vmatprep.mubr.msk.f32.mxu0 %vm204_vm1, %v10195_v19 }
  0x83   : > { %8909 = vmatmul.mubr.msk.f32.gmra.mxu1 %vm204_vm1, %v9957_v51  ;;  %v10215_v51 = vld [vmem:[#allocation2 + $0x112] sm:$0xff] }
  0x84   : > { %8911 = vmatprep.mubr.msk.f32.mxu1 %vm204_vm1, %v9962_v59  ;;  %v10231_v59 = vld [vmem:[#allocation2 + $0x13a] sm:$0xff] }
  0x85   : > { %8868 = vmatmul.mubr.msk.f32.gmra.mxu0 %vm204_vm1, %v10203_v31 }
  0x86   : > { %8870 = vmatprep.mubr.msk.f32.mxu0 %vm204_vm1, %v10207_v26 }
  0x87   : > { %8912 = vmatmul.mubr.msk.f32.gmra.mxu1 %vm204_vm1, %v9986_v4  ;;  %v10227_v4 = vld [vmem:[#allocation2 + $0x12a] sm:$0xff] }
  0x88   : > { %8914 = vmatprep.mubr.msk.f32.mxu1 %vm204_vm1, %v9991_v6  ;;  %v10243_v6 = vld [vmem:[#allocation2 + $0x152] sm:$0xff] }
  0x89   : > { %8871 = vmatmul.mubr.msk.f32.gmra.mxu0 %vm204_vm1, %v10215_v51 }
  0x8a   : > { %8873 = vmatprep.mubr.msk.f32.mxu0 %vm204_vm1, %v10219_v40  ;;  %v259_v40 = vld [vmem:[#allocation2 + $0x19a] sm:$0x1] }
  0x8b   : > { %8915 = vmatmul.mubr.msk.f32.gmra.mxu1 %vm204_vm1, %v10003_v11  ;;  %v10239_v11 = vld [vmem:[#allocation2 + $0x142] sm:$0xff]  ;;  %278 = vst.msk [vmem:[#allocation2 + $0x198] sm:$0x1] %vm260_vm2, %v259_v40  ;;  %v10264_v40 = vld [vmem:[#allocation2 + $0x172] sm:$0xff] }
  0x8c   : > { %8917 = vmatprep.mubr.msk.f32.mxu1 %vm204_vm1, %v10007_v14 }
  0x8d   : > { %8874 = vmatmul.mubr.msk.f32.gmra.mxu0 %vm204_vm1, %v10227_v4 }
  0x8e   : > { %8876 = vmatprep.mubr.msk.f32.mxu0 %vm204_vm1, %v10231_v59 }
  0x8f   : > { %8918 = vmatmul.mubr.msk.f32.gmra.mxu1 %vm204_vm1, %v10020_v21  ;;  %v10252_v21 = vld [vmem:[#allocation2 + $0x15a] sm:$0xff] }
  0x90   : > { %8920 = vmatprep.mubr.msk.f32.mxu1 %vm204_vm1, %v10024_v27  ;;  %v10256_v27 = vld [vmem:[#allocation2 + $0x16a] sm:$0xff] }
  0x91   : > { %8877 = vmatmul.mubr.msk.f32.gmra.mxu0 %vm204_vm1, %v10239_v11 }
  0x92   : > { %8879 = vmatprep.mubr.msk.f32.mxu0 %vm204_vm1, %v10243_v6 }
  0x93   : > { %8921 = vmatmul.mubr.msk.f32.gmra.mxu1 %vm204_vm1, %v10036_v34 }
  0x94   : > { %8923 = vmatprep.mubr.msk.f32.mxu1 %vm204_vm1, %v10040_v39 }
  0x95   : > { %8880 = vmatmul.mubr.msk.f32.gmra.mxu0 %vm204_vm1, %v10252_v21 }
  0x96   : > { %8882 = vmatprep.mubr.msk.f32.mxu0 %vm204_vm1, %v10256_v27 }
  0x97   : > { %8924 = vmatmul.mubr.msk.f32.gmra.mxu1 %vm204_vm1, %v10052_v43  ;;  %v10276_v43 = vld [vmem:[#allocation2 + $0x180] sm:$0xff] }
  0x98   : > { %8926 = vmatprep.mubr.msk.f32.mxu1 %vm204_vm1, %v10054_v57  ;;  %v10283_v57 = vld [vmem:[%s12680_s1 + $0x20] sm:$0xf] }
  0x99   : > { %8883 = vmatmul.mubr.msk.f32.gmra.mxu0 %vm204_vm1, %v10264_v40 }
  0x9a   : > { %8937 = vmatprep.mubr.msk.f32.mxu0 %vm204_vm1, %v9758_v30  ;;  %v10293_v30 = vld [vmem:[#allocation2 + $0x188] sm:$0xff] }
  0x9b   : > { %8927 = vmatmul.mubr.msk.f32.gmra.mxu1 %vm204_vm1, %v10064_v2 }
  0x9c   : > { %8929 = vmatprep.mubr.msk.f32.mxu1 %vm204_vm1, %v10066_v16 }
  0x9d   : > { %8938 = vmatmul.mubr.msk.f32.vlgmr.msra.gmra.mxu0 %vm204_vm1, %v9775_v33  ;;  %v12769_v33 = vld [vmem:[#allocation21_spill] sm:$0xff] }
  0x9e   : > { %9036 = vmatpush3.msk.msra.mxu0 %vm478_vm0, %v10074_v42  ;;  %8940 = vmatprep.mubr.msk.f32.mxu0 %vm204_vm1, %v9777_v35  ;;  %v12770_v35 = vld [vmem:[#allocation23_spill] sm:$0xff] }
  0x9f   : > { %8930 = vmatmul.mubr.msk.f32.gmra.mxu1 %vm204_vm1, %v10086_v60  ;;  %9135 = vmatprep.subr.msk.mxu0 %vm478_vm0, %v10283_v57 }
  0xa0   : > { %8932 = vmatprep.mubr.msk.f32.mxu1 %vm204_vm1, %v10276_v43 }
  0xa1   : > { %8941 = vmatmul.mubr.msk.f32.gmra.mxu0 %vm204_vm1, %v9788_v38  ;;  %v12771_v38 = vld [vmem:[#allocation30_spill] sm:$0xff] }
  0xa2   : > { %8943 = vmatprep.mubr.msk.f32.mxu0 %vm204_vm1, %v9790_v41  ;;  %v12772_v41 = vld [vmem:[#allocation25_spill] sm:$0xff] }
  0xa3   : > { %8933 = vmatmul.mubr.msk.f32.gmra.mxu1 %vm204_vm1, %v10293_v30 }
  0xa4   : > { %8987 = vmatprep.mubr.msk.f32.mxu1 %vm204_vm1, %v10068_v37  ;;  %v12785_v37 = vld [vmem:[#allocation13_spill] sm:$0xff] }
  0xa5   : > { %8944 = vmatmul.mubr.msk.f32.gmra.mxu0 %vm204_vm1, %v9802_v46  ;;  %v296_v46 = vld [vmem:[#allocation2 + $0x1a7] sm:$0x1] }
  0xa6   : > { %8946 = vmatprep.mubr.msk.f32.mxu0 %vm204_vm1, %v9809_v49  ;;  %v12773_v49 = vld [vmem:[#allocation26_spill] sm:$0xff]  ;;  %314 = vst.msk [vmem:[#allocation2 + $0x1a9] sm:$0x1] %vm260_vm2, %v296_v46 }
  0xa7   : > { %8988 = vmatmul.mubr.msk.f32.vlgmr.msra.gmra.mxu1 %vm204_vm1, %v10080_v47  ;;  %v2989_v47 = vld [vmem:[#allocation2 + $0x81] sm:$0xff] }
  0xa8   : > { %8990 = vmatprep.mubr.msk.f32.mxu1 %vm204_vm1, %v10088_v0  ;;  %9086 = vmatpush3.msk.msra.mxu1 %vm478_vm0, %v10109_v25 }
  0xa9   : > { %8947 = vmatmul.mubr.msk.f32.gmra.mxu0 %vm204_vm1, %v9823_v52  ;;  %v12774_v52 = vld [vmem:[#allocation27_spill] sm:$0xff] }
  0xaa   : > { %8949 = vmatprep.mubr.msk.f32.mxu0 %vm204_vm1, %v9829_v55  ;;  %v12775_v55 = vld [vmem:[#allocation3_spill] sm:$0xff] }
  0xab   : > { %8991 = vmatmul.mubr.msk.f32.gmra.mxu1 %vm204_vm1, %v10098_v32 }
  0xac   : > { %8993 = vmatprep.mubr.msk.f32.mxu1 %vm204_vm1, %v10102_v28 }
  0xad   : > { %8950 = vmatmul.mubr.msk.f32.gmra.mxu0 %vm204_vm1, %v9836_v58 }
  0xae   : > { %8952 = vmatprep.mubr.msk.f32.mxu0 %vm204_vm1, %v9846_v62 }
  0xaf   : > { %8994 = vmatmul.mubr.msk.f32.gmra.mxu1 %vm204_vm1, %v10115_v20  ;;  %v2988_v20 = vld [vmem:[#allocation2 + $0x79] sm:$0xff] }
  0xb0   : > { %8996 = vmatprep.mubr.msk.f32.mxu1 %vm204_vm1, %v10119_v45 }
  0xb1   : > { %8953 = vmatmul.mubr.msk.f32.gmra.mxu0 %vm204_vm1, %v9871_v7  ;;  %v10436_v7 = vld [vmem:[#allocation2 + $0x18a] sm:$0xff] }
  0xb2   : > { %8955 = vmatprep.mubr.msk.f32.mxu0 %vm204_vm1, %v9880_v10 }
  0xb3   : > { %8997 = vmatmul.mubr.msk.f32.gmra.mxu1 %vm204_vm1, %v10131_v48  ;;  %v2990_v48 = vld [vmem:[#allocation2 + $0x91] sm:$0xff] }
  0xb4   : > { %8999 = vmatprep.mubr.msk.f32.mxu1 %vm204_vm1, %v10135_v50  ;;  %v10404_v50 = vld [vmem:[#allocation2 + $0x181] sm:$0xff] }
  0xb5   : > { %8956 = vmatmul.mubr.msk.f32.gmra.mxu0 %vm204_vm1, %v9893_v15  ;;  %v12779_v15 = vld [vmem:[#allocation7_spill] sm:$0xff] }
  0xb6   : > { %8958 = vmatprep.mubr.msk.f32.mxu0 %vm204_vm1, %v9900_v18  ;;  %v2983_v18 = vld [vmem:[#allocation2 + $0x39] sm:$0xff] }
  0xb7   : > { %9000 = vmatmul.mubr.msk.f32.gmra.mxu1 %vm204_vm1, %v10143_v63 }
  0xb8   : > { %9002 = vmatprep.mubr.msk.f32.mxu1 %vm204_vm1, %v10147_v54  ;;  %v10412_v54 = vld [vmem:[#allocation2 + $0x189] sm:$0xff] }
  0xb9   : > { %8959 = vmatmul.mubr.msk.f32.gmra.mxu0 %vm204_vm1, %v9912_v22 }
  0xba   : > { %8961 = vmatprep.mubr.msk.f32.mxu0 %vm204_vm1, %v9919_v24 }
  0xbb   : > { %9003 = vmatmul.mubr.msk.f32.gmra.mxu1 %vm204_vm1, %v10155_v61  ;;  %v12776_v61 = vld [vmem:[#allocation4_spill] sm:$0xff] }
  0xbc   : > { %9005 = vmatprep.mubr.msk.f32.mxu1 %vm204_vm1, %v10159_v56  ;;  %v10424_v56 = vld [vmem:[#allocation2 + $0x182] sm:$0xff] }
  0xbd   : > { %8962 = vmatmul.mubr.msk.f32.gmra.mxu0 %vm204_vm1, %v9931_v29 }
  0xbe   : > { %8964 = vmatprep.mubr.msk.f32.mxu0 %vm204_vm1, %v9938_v36  ;;  %v2985_v36 = vld [vmem:[#allocation2 + $0x51] sm:$0xff] }
  0xbf   : > { %9006 = vmatmul.mubr.msk.f32.gmra.mxu1 %vm204_vm1, %v10167_v9  ;;  %v2982_v9 = vld [vmem:[#allocation2 + $0x31] sm:$0xff] }
  0xc0   : > { %9008 = vmatprep.mubr.msk.f32.mxu1 %vm204_vm1, %v10171_v3  ;;  %v12777_v3 = vld [vmem:[#allocation5_spill] sm:$0xff] }
  0xc1   : > { %8965 = vmatmul.mubr.msk.f32.gmra.mxu0 %vm204_vm1, %v9952_v44 }
  0xc2   : > { %8967 = vmatprep.mubr.msk.f32.mxu0 %vm204_vm1, %v9959_v53 }
  0xc3   : > { %9009 = vmatmul.mubr.msk.f32.gmra.mxu1 %vm204_vm1, %v10179_v17 }
  0xc4   : > { %9011 = vmatprep.mubr.msk.f32.mxu1 %vm204_vm1, %v10183_v12  ;;  %v12778_v12 = vld [vmem:[#allocation6_spill] sm:$0xff] }
  0xc5   : > { %8968 = vmatmul.mubr.msk.f32.gmra.mxu0 %vm204_vm1, %v9980_v1  ;;  %v12782_v1 = vld [vmem:[#allocation10_spill] sm:$0xff] }
  0xc6   : > { %8970 = vmatprep.mubr.msk.f32.mxu0 %vm204_vm1, %v9988_v5  ;;  %v12783_v5 = vld [vmem:[#allocation11_spill] sm:$0xff] }
  0xc7   : > { %9012 = vmatmul.mubr.msk.f32.gmra.mxu1 %vm204_vm1, %v10191_v23  ;;  %v12780_v23 = vld [vmem:[#allocation8_spill] sm:$0xff] }
  0xc8   : > { %9014 = vmatprep.mubr.msk.f32.mxu1 %vm204_vm1, %v10195_v19  ;;  %v2984_v19 = vld [vmem:[#allocation2 + $0x49] sm:$0xff] }
  0xc9   : > { %8971 = vmatmul.mubr.msk.f32.gmra.mxu0 %vm204_vm1, %v9999_v8 }
  0xca   : > { %8973 = vmatprep.mubr.msk.f32.mxu0 %vm204_vm1, %v10005_v13 }
  0xcb   : > { %9015 = vmatmul.mubr.msk.f32.gmra.mxu1 %vm204_vm1, %v10203_v31 }
  0xcc   : > { %9017 = vmatprep.mubr.msk.f32.mxu1 %vm204_vm1, %v10207_v26  ;;  %v12781_v26 = vld [vmem:[#allocation9_spill] sm:$0xff] }
  0xcd   : > { %8974 = vmatmul.mubr.msk.f32.gmra.mxu0 %vm204_vm1, %v12769_v33  ;;  %v12786_v33 = vld [vmem:[#allocation14_spill] sm:$0xff] }
  0xce   : > { %8976 = vmatprep.mubr.msk.f32.mxu0 %vm204_vm1, %v12770_v35 }
  0xcf   : > { %9018 = vmatmul.mubr.msk.f32.gmra.mxu1 %vm204_vm1, %v10215_v51  ;;  %v2986_v51 = vld [vmem:[#allocation2 + $0x61] sm:$0xff] }
  0xd0   : > { %9020 = vmatprep.mubr.msk.f32.mxu1 %vm204_vm1, %v12771_v38  ;;  %v12787_v38 = vld [vmem:[#allocation15_spill] sm:$0xff] }
  0xd1   : > { %8977 = vmatmul.mubr.msk.f32.gmra.mxu0 %vm204_vm1, %v12772_v41 }
  0xd2   : > { %8979 = vmatprep.mubr.msk.f32.mxu0 %vm204_vm1, %v12773_v49  ;;  %v2991_v49 = vld [vmem:[#allocation2 + $0x99] sm:$0xff] }
  0xd3   : > { %9021 = vmatmul.mubr.msk.f32.gmra.mxu1 %vm204_vm1, %v10227_v4 }
  0xd4   : > { %9023 = vmatprep.mubr.msk.f32.mxu1 %vm204_vm1, %v10231_v59 }
  0xd5   : > { %8980 = vmatmul.mubr.msk.f32.gmra.mxu0 %vm204_vm1, %v12774_v52 }
  0xd6   : > { %8982 = vmatprep.mubr.msk.f32.mxu0 %vm204_vm1, %v10404_v50 }
  0xd7   : > { %9024 = vmatmul.mubr.msk.f32.gmra.mxu1 %vm204_vm1, %v10239_v11  ;;  %v2987_v11 = vld [vmem:[#allocation2 + $0x69] sm:$0xff] }
  0xd8   : > { %9026 = vmatprep.mubr.msk.f32.mxu1 %vm204_vm1, %v10243_v6 }
  0xd9   : > { %8983 = vmatmul.mubr.msk.f32.gmra.mxu0 %vm204_vm1, %v10412_v54 }
  0xda   : > { %9037 = vmatprep.mubr.msk.f32.mxu0 %vm204_vm1, %v12775_v55  ;;  %v2992_v55 = vld [vmem:[#allocation2 + $0xa9] sm:$0xff] }
  0xdb   : > { %9027 = vmatmul.mubr.msk.f32.gmra.mxu1 %vm204_vm1, %v10252_v21 }
  0xdc   : > { %9029 = vmatprep.mubr.msk.f32.mxu1 %vm204_vm1, %v10256_v27  ;;  %v12784_v27 = vld [vmem:[#allocation12_spill] sm:$0xff] }
  0xdd   : > { %v8739_v58 = vpop.f32.mrf.mxu0  ;;  %9038 = vmatmul.mubr.msk.f32.vlgmr.msra.gmra.mxu0 %vm204_vm1, %v12776_v61 }
  0xde   : > { %9136 = vmatpush3.msk.msra.mxu0 %vm478_vm0, %v10283_v57  ;;  %9040 = vmatprep.mubr.msk.f32.mxu0 %vm204_vm1, %v12777_v3 }
  0xdf   : > { %9030 = vmatmul.mubr.msk.f32.gmra.mxu1 %vm204_vm1, %v10264_v40  ;;  %v548_v62 = vpop.f32.mrf.mxu0 }
  0xe0   : > { %9032 = vmatprep.mubr.msk.f32.mxu1 %vm204_vm1, %v10424_v56 }
  0xe1   : > { %v8742_v10 = vpop.f32.mrf.mxu0  ;;  %9041 = vmatmul.mubr.msk.f32.gmra.mxu0 %vm204_vm1, %v12778_v12 }
  0xe2   : > { %9043 = vmatprep.mubr.msk.f32.mxu0 %vm204_vm1, %v12779_v15  ;;  %v2993_v15 = vld [vmem:[#allocation2 + $0xb1] sm:$0xff] }
  0xe3   : > { %9033 = vmatmul.mubr.msk.f32.gmra.mxu1 %vm204_vm1, %v10436_v7  ;;  %v558_v17 = vpop.f32.mrf.mxu0 }
  0xe4   : > { %9087 = vmatprep.mubr.msk.f32.mxu1 %vm204_vm1, %v2982_v9  ;;  %v12789_v9 = vld [vmem:[#allocation17_spill] sm:$0xff] }
  0xe5   : > { %v8745_v22 = vpop.f32.mrf.mxu0  ;;  %9044 = vmatmul.mubr.msk.f32.gmra.mxu0 %vm204_vm1, %v12780_v23  ;;  %v12790_v23 = vld [vmem:[#allocation18_spill] sm:$0xff] }
  0xe6   : > { %9046 = vmatprep.mubr.msk.f32.mxu0 %vm204_vm1, %v12781_v26  ;;  %v12791_v26 = vld [vmem:[#allocation19_spill] sm:$0xff] }
  0xe7   : > { %v8789_v24 = vpop.f32.mrf.mxu1  ;;  %9088 = vmatmul.mubr.msk.f32.vlgmr.msra.gmra.mxu1 %vm204_vm1, %v2983_v18  ;;  %v568_v31 = vpop.f32.mrf.mxu0  ;;  %v2994_v18 = vld [vmem:[#allocation2 + $0xc1] sm:$0xff] }
  0xe8   : > { %v10450_v29 = vadd.f32 %v8789_v24, %v8739_v58  ;;  %9090 = vmatprep.mubr.msk.f32.mxu1 %vm204_vm1, %v2984_v19 }
  0xe9   : > { %v872_v44 = vpop.f32.mrf.mxu1  ;;  %v8748_v59 = vpop.f32.mrf.mxu0  ;;  %9047 = vmatmul.mubr.msk.f32.gmra.mxu0 %vm204_vm1, %v12782_v1 }
  0xea   : > { %v10453_v53 = vadd.f32 %v872_v44, %v548_v62  ;;  %9049 = vmatprep.mubr.msk.f32.mxu0 %vm204_vm1, %v12783_v5  ;;  %v12788_v62 = vld [vmem:[#allocation16_spill] sm:$0xff]  ;;  %v2995_v44 = vld [vmem:[#allocation2 + $0xc9] sm:$0xff] }
  0xeb   : > { %v8792_v4 = vpop.f32.mrf.mxu1  ;;  %9091 = vmatmul.mubr.msk.f32.gmra.mxu1 %vm204_vm1, %v2985_v36  ;;  %v578_v8 = vpop.f32.mrf.mxu0  ;;  %v12792_v5 = vld [vmem:[#allocation20_spill] sm:$0xff] }
  0xec   : > { %v10460_v6 = vadd.f32 %v8792_v4, %v8742_v10  ;;  %9093 = vmatprep.mubr.msk.f32.mxu1 %vm204_vm1, %v2986_v51 }
  0xed   : > { %v882_v13 = vpop.f32.mrf.mxu1  ;;  %v8751_v25 = vpop.f32.mrf.mxu0  ;;  %9050 = vmatmul.mubr.msk.f32.gmra.mxu0 %vm204_vm1, %v12784_v27  ;;  %v2998_v27 = vld [vmem:[#allocation2 + $0xf1] sm:$0xff] }
  0xee   : > { %v10463_v21 = vadd.f32 %v882_v13, %v558_v17  ;;  %9052 = vmatprep.mubr.msk.f32.mxu0 %vm204_vm1, %v12785_v37 }
  0xef   : > { %v8795_v28 = vpop.f32.mrf.mxu1  ;;  %9094 = vmatmul.mubr.msk.f32.gmra.mxu1 %vm204_vm1, %v2987_v11  ;;  %v588_v57 = vpop.f32.mrf.mxu0 }
  0xf0   : > { %v10470_v42 = vadd.f32 %v8795_v28, %v8745_v22  ;;  %9096 = vmatprep.mubr.msk.f32.mxu1 %vm204_vm1, %v2988_v20  ;;  %v2997_v20 = vld [vmem:[#allocation2 + $0xe1] sm:$0xff] }
  0xf1   : > { %v892_v45 = vpop.f32.mrf.mxu1  ;;  %v8754_v40 = vpop.f32.mrf.mxu0  ;;  %9053 = vmatmul.mubr.msk.f32.gmra.mxu0 %vm204_vm1, %v12786_v33 }
  0xf2   : > { %v10473_v63 = vadd.f32 %v892_v45, %v568_v31  ;;  %9055 = vmatprep.mubr.msk.f32.mxu0 %vm204_vm1, %v12787_v38  ;;  %v12795_v45 = vld [vmem:[#allocation24_spill] sm:$0xff] }
  0xf3   : > { %v8798_v35 = vpop.f32.mrf.mxu1  ;;  %9097 = vmatmul.mubr.msk.f32.gmra.mxu1 %vm204_vm1, %v2989_v47  ;;  %v598_v46 = vpop.f32.mrf.mxu0 }
  0xf4   : > { %v10480_v41 = vadd.f32 %v8798_v35, %v8748_v59  ;;  %9099 = vmatprep.mubr.msk.f32.mxu1 %vm204_vm1, %v2990_v48  ;;  %v2996_v59 = vld [vmem:[#allocation2 + $0xd9] sm:$0xff]  ;;  %v3000_v35 = vld [vmem:[#allocation2 + $0x109] sm:$0xff] }
  0xf5   : > { %v902_v52 = vpop.f32.mrf.mxu1  ;;  %v8757_v61 = vpop.f32.mrf.mxu0  ;;  %9056 = vmatmul.mubr.msk.f32.gmra.mxu0 %vm204_vm1, %v12788_v62 }
  0xf6   : > { %v10483_v58 = vadd.f32 %v902_v52, %v578_v8  ;;  %9058 = vmatprep.mubr.msk.f32.mxu0 %vm204_vm1, %v12789_v9 }
  0xf7   : > { %v8801_v3 = vpop.f32.mrf.mxu1  ;;  %9100 = vmatmul.mubr.msk.f32.gmra.mxu1 %vm204_vm1, %v2991_v49  ;;  %v608_v12 = vpop.f32.mrf.mxu0 }
  0xf8   : > { %v10490_v10 = vadd.f32 %v8801_v3, %v8751_v25  ;;  %9102 = vmatprep.mubr.msk.f32.mxu1 %vm204_vm1, %v2992_v55  ;;  %v3002_v3 = vld [vmem:[#allocation2 + $0x121] sm:$0xff] }
  0xf9   : > { %v912_v17 = vpop.f32.mrf.mxu1  ;;  %v8760_v22 = vpop.f32.mrf.mxu0  ;;  %9059 = vmatmul.mubr.msk.f32.gmra.mxu0 %vm204_vm1, %v12790_v23  ;;  %v3004_v23 = vld [vmem:[#allocation2 + $0x139] sm:$0xff] }
  0xfa   : > { %v10493_v19 = vadd.f32 %v912_v17, %v588_v57  ;;  %9061 = vmatprep.mubr.msk.f32.mxu0 %vm204_vm1, %v12791_v26  ;;  %v12794_v57 = vld [vmem:[#allocation22_spill] sm:$0xff] }
  0xfb   : > { %v8804_v24 = vpop.f32.mrf.mxu1  ;;  %9103 = vmatmul.mubr.msk.f32.gmra.mxu1 %vm204_vm1, %v2993_v15  ;;  %v618_v36 = vpop.f32.mrf.mxu0  ;;  %v12800_v15 = vld [vmem:[#allocation29_spill] sm:$0xff] }
  0xfc   : > { %v10500_v31 = vadd.f32 %v8804_v24, %v8754_v40  ;;  %9105 = vmatprep.mubr.msk.f32.mxu1 %vm204_vm1, %v2994_v18  ;;  %v2999_v40 = vld [vmem:[#allocation2 + $0xf9] sm:$0xff]  ;;  %v3003_v18 = vld [vmem:[#allocation2 + $0x129] sm:$0xff] }
  0xfd   : > { %v922_v51 = vpop.f32.mrf.mxu1  ;;  %v8763_v4 = vpop.f32.mrf.mxu0  ;;  %9062 = vmatmul.mubr.msk.f32.gmra.mxu0 %vm204_vm1, %v12792_v5 }
  0xfe   : > { %v10503_v1 = vadd.f32 %v922_v51, %v598_v46  ;;  %9064 = vmatprep.mubr.msk.f32.mxu0 %vm204_vm1, %v10007_v14  ;;  %v3005_v51 = vld [vmem:[#allocation2 + $0x141] sm:$0xff] }
  0xff   : > { %v8807_v8 = vpop.f32.mrf.mxu1  ;;  %9106 = vmatmul.mubr.msk.f32.gmra.mxu1 %vm204_vm1, %v2995_v44  ;;  %v10512_v13 = vpop.f32.mrf.mxu0 }
 0x100   : > { %v10510_v11 = vadd.f32 %v8807_v8, %v8757_v61  ;;  %12793 = vst [vmem:[#allocation21_spill] sm:$0xff] %v10512_v13  ;;  %9108 = vmatprep.mubr.msk.f32.mxu1 %vm204_vm1, %v2996_v59  ;;  %v3001_v61 = vld [vmem:[#allocation2 + $0x111] sm:$0xff] }
 0x101   : > { %v932_v25 = vpop.f32.mrf.mxu1  ;;  %v8766_v37 = vpop.f32.mrf.mxu0  ;;  %9065 = vmatmul.mubr.msk.f32.gmra.mxu0 %vm204_vm1, %v12794_v57 }
 0x102   : > { %v10515_v28 = vadd.f32 %v932_v25, %v608_v12  ;;  %9067 = vmatprep.mubr.msk.f32.mxu0 %vm204_vm1, %v12795_v45  ;;  %v12799_v12 = vld [vmem:[#allocation28_spill] sm:$0xff] }
 0x103   : > { %v8810_v47 = vpop.f32.mrf.mxu1  ;;  %9109 = vmatmul.mubr.msk.f32.gmra.mxu1 %vm204_vm1, %v2997_v20  ;;  %v10524_v48 = vpop.f32.mrf.mxu0  ;;  %v3007_v20 = vld [vmem:[#allocation2 + $0x159] sm:$0xff] }
 0x104   : > { %v10522_v14 = vadd.f32 %v8810_v47, %v8760_v22  ;;  %12796 = vst [vmem:[#allocation23_spill] sm:$0xff] %v10524_v48  ;;  %9111 = vmatprep.mubr.msk.f32.mxu1 %vm204_vm1, %v2998_v27  ;;  %v2622_v25 = vld [vmem:[#allocation2 + $0x198] sm:$0xff] }
 0x105   : > { %v942_v33 = vpop.f32.mrf.mxu1  ;;  %v8769_v46 = vpop.f32.mrf.mxu0  ;;  %9068 = vmatmul.mubr.msk.f32.gmra.mxu0 %vm204_vm1, %v10036_v34 }
 0x106   : > { %v10527_v38 = vadd.f32 %v942_v33, %v618_v36  ;;  %9070 = vmatprep.mubr.msk.f32.mxu0 %vm204_vm1, %v10040_v39 }
 0x107   : > { %v8813_v49 = vpop.f32.mrf.mxu1  ;;  %9112 = vmatmul.mubr.msk.f32.gmra.mxu1 %vm204_vm1, %v2999_v40  ;;  %v10536_v55 = vpop.f32.mrf.mxu0  ;;  %v3009_v40 = vld [vmem:[#allocation2 + $0x171] sm:$0xff] }
 0x108   : > { %v10534_v52 = vadd.f32 %v8813_v49, %v8763_v4  ;;  %12797 = vst [vmem:[#allocation30_spill] sm:$0xff] %v10536_v55  ;;  %9114 = vmatprep.mubr.msk.f32.mxu1 %vm204_vm1, %v3000_v35  ;;  %v3006_v4 = vld [vmem:[#allocation2 + $0x151] sm:$0xff] }
 0x109   : > { %v10539_v62 = vpop.f32.mrf.mxu1  ;;  %v8772_v9 = vpop.f32.mrf.mxu0  ;;  %9071 = vmatmul.mubr.msk.f32.gmra.mxu0 %vm204_vm1, %v12799_v12 }
 0x10a   : > { %12798 = vst [vmem:[#allocation25_spill] sm:$0xff] %v10539_v62  ;;  %9073 = vmatprep.mubr.msk.f32.mxu0 %vm204_vm1, %v12800_v15 }
 0x10b   : > { %v8816_v34 = vpop.f32.mrf.mxu1  ;;  %9115 = vmatmul.mubr.msk.f32.gmra.mxu1 %vm204_vm1, %v3001_v61  ;;  %v10548_v17 = vpop.f32.mrf.mxu0  ;;  %v3374_v61 = vld [vmem:[#allocation2 + $0x4a] sm:$0xff] }
 0x10c   : > { %v10546_v39 = vadd.f32 %v8816_v34, %v8766_v37  ;;  %12801 = vst [vmem:[#allocation26_spill] sm:$0xff] %v10548_v17  ;;  %9117 = vmatprep.mubr.msk.f32.mxu1 %vm204_vm1, %v3002_v3  ;;  %v3008_v37 = vld [vmem:[#allocation2 + $0x169] sm:$0xff] }
 0x10d   : > { %v10551_v22 = vpop.f32.mrf.mxu1  ;;  %v8775_v24 = vpop.f32.mrf.mxu0  ;;  %9074 = vmatmul.mubr.msk.f32.gmra.mxu0 %vm204_vm1, %v10064_v2 }
 0x10e   : > { %12802 = vst [vmem:[#allocation27_spill] sm:$0xff] %v10551_v22  ;;  %9076 = vmatprep.mubr.msk.f32.mxu0 %vm204_vm1, %v10066_v16 }
 0x10f   : > { %v8819_v26 = vpop.f32.mrf.mxu1  ;;  %9118 = vmatmul.mubr.msk.f32.gmra.mxu1 %vm204_vm1, %v3003_v18  ;;  %v10560_v44 = vpop.f32.mrf.mxu0 }
 0x110   : > { %v10558_v36 = vadd.f32 %v8819_v26, %v8769_v46  ;;  %12803 = vst [vmem:[#allocation3_spill] sm:$0xff] %v10560_v44  ;;  %9120 = vmatprep.mubr.msk.f32.mxu1 %vm204_vm1, %v3004_v23  ;;  %v3013_v23 = vld [vmem:[#allocation2 + $0x1a1] sm:$0xff] }
 0x111   : > { %v10563_v59 = vpop.f32.mrf.mxu1  ;;  %v8778_v5 = vpop.f32.mrf.mxu0  ;;  %9077 = vmatmul.mubr.msk.f32.gmra.mxu0 %vm204_vm1, %v10086_v60 }
 0x112   : > { %12804 = vst [vmem:[#allocation4_spill] sm:$0xff] %v10563_v59  ;;  %9079 = vmatprep.mubr.msk.f32.mxu0 %vm204_vm1, %v10276_v43  ;;  %v2623_v43 = vld [vmem:[#allocation2 + $0x1a0] sm:$0xff] }
 0x113   : > { %v8822_v2 = vpop.f32.mrf.mxu1  ;;  %9121 = vmatmul.mubr.msk.f32.gmra.mxu1 %vm204_vm1, %v3005_v51  ;;  %v10572_v8 = vpop.f32.mrf.mxu0 }
 0x114   : > { %v10570_v16 = vadd.f32 %v8822_v2, %v8772_v9  ;;  %12805 = vst [vmem:[#allocation5_spill] sm:$0xff] %v10572_v8  ;;  %9123 = vmatprep.mubr.msk.f32.mxu1 %vm204_vm1, %v3006_v4  ;;  %v3012_v9 = vld [vmem:[#allocation2 + $0x199] sm:$0xff]  ;;  %v3377_v4 = vld [vmem:[#allocation2 + $0x6a] sm:$0xff] }
 0x115   : > { %v10575_v27 = vpop.f32.mrf.mxu1  ;;  %v8781_v57 = vpop.f32.mrf.mxu0  ;;  %9080 = vmatmul.mubr.msk.f32.gmra.mxu0 %vm204_vm1, %v10293_v30 }
 0x116   : > { %12806 = vst [vmem:[#allocation6_spill] sm:$0xff] %v10575_v27  ;;  %9082 = vmatprep.mubr.msk.f32.mxu0 %vm204_vm1, %v2622_v25 }
 0x117   : > { %v8825_v60 = vpop.f32.mrf.mxu1  ;;  %9124 = vmatmul.mubr.msk.f32.gmra.mxu1 %vm204_vm1, %v3007_v20  ;;  %v10583_v45 = vpop.f32.mrf.mxu0  ;;  %v3378_v20 = vld [vmem:[#allocation2 + $0x7a] sm:$0xff] }
 0x118   : > { %v10581_v47 = vadd.f32 %v8825_v60, %v8775_v24  ;;  %12807 = vst [vmem:[#allocation7_spill] sm:$0xff] %v10583_v45  ;;  %9126 = vmatprep.mubr.msk.f32.mxu1 %vm204_vm1, %v3008_v37  ;;  %v3376_v24 = vld [vmem:[#allocation2 + $0x62] sm:$0xff] }
 0x119   : > { %v10586_v33 = vpop.f32.mrf.mxu1  ;;  %v8784_v35 = vpop.f32.mrf.mxu0  ;;  %9083 = vmatmul.mubr.msk.f32.gmra.mxu0 %vm204_vm1, %v2623_v43  ;;  %v3379_v60 = vld [vmem:[#allocation2 + $0x82] sm:$0xff] }
 0x11a   : > { %12808 = vst [vmem:[#allocation8_spill] sm:$0xff] %v10586_v33  ;;  %9137 = vmatprep.mubr.msk.f32.mxu0 %vm204_vm1, %v10088_v0  ;;  %v3375_v0 = vld [vmem:[#allocation2 + $0x52] sm:$0xff] }
 0x11b   : > { %v8828_v46 = vpop.f32.mrf.mxu1  ;;  %9127 = vmatmul.mubr.msk.f32.gmra.mxu1 %vm204_vm1, %v3009_v40  ;;  %v10594_v49 = vpop.f32.mrf.mxu0 }
 0x11c   : > { %v10592_v30 = vadd.f32 %v8828_v46, %v8778_v5  ;;  %12809 = vst [vmem:[#allocation9_spill] sm:$0xff] %v10594_v49  ;;  %9129 = vmatprep.mubr.msk.f32.mxu1 %vm204_vm1, %v10404_v50 }
 0x11d   : > { %v10598_v3 = vpop.f32.mrf.mxu1  ;;  %v8839_v12 = vpop.f32.mrf.mxu0  ;;  %9138 = vmatmul.mubr.msk.f32.vlgmr.msra.gmra.mxu0 %vm204_vm1, %v10098_v32 }
 0x11e   : > { %12810 = vst [vmem:[#allocation10_spill] sm:$0xff] %v10598_v3  ;;  %v1390_v15 = vadd.f32 %v8839_v12, %v10450_v29  ;;  %9140 = vmatprep.mubr.msk.f32.mxu0 %vm204_vm1, %v3374_v61 }
 0x11f   : > { %v8831_v34 = vpop.f32.mrf.mxu1  ;;  %9130 = vmatmul.mubr.msk.f32.gmra.mxu1 %vm204_vm1, %v10412_v54  ;;  %v1230_v50 = vpop.f32.mrf.mxu0 }
 0x120   : > { %v10606_v18 = vadd.f32 %v8831_v34, %v8781_v57  ;;  %9132 = vmatprep.mubr.msk.f32.mxu1 %vm204_vm1, %v3012_v9  ;;  %v10612_v32 = vadd.f32 %v1230_v50, %v10453_v53 }
 0x121   : > { %v10609_v26 = vpop.f32.mrf.mxu1  ;;  %v8842_v51 = vpop.f32.mrf.mxu0  ;;  %9141 = vmatmul.mubr.msk.f32.gmra.mxu0 %vm204_vm1, %v3375_v0  ;;  %v3382_v0 = vld [vmem:[#allocation2 + $0xaa] sm:$0xff] }
 0x122   : > { %12811 = vst [vmem:[#allocation11_spill] sm:$0xff] %v10609_v26  ;;  %v1392_v54 = vadd.f32 %v8842_v51, %v10460_v6  ;;  %9143 = vmatprep.mubr.msk.f32.mxu0 %vm204_vm1, %v3376_v24 }
 0x123   : > { %v8834_v29 = vpop.f32.mrf.mxu1  ;;  %9133 = vmatmul.mubr.msk.f32.gmra.mxu1 %vm204_vm1, %v3013_v23  ;;  %v1240_v2 = vpop.f32.mrf.mxu0 }
 0x124   : > { %v10618_v5 = vadd.f32 %v8834_v29, %v8784_v35  ;;  %v10623_v53 = vadd.f32 %v1240_v2, %v10463_v21  ;;  %v3380_v35 = vld [vmem:[#allocation2 + $0x92] sm:$0xff] }
 0x125   : > { %v10620_v25 = vpop.f32.mrf.mxu1  ;;  %v8845_v37 = vpop.f32.mrf.mxu0  ;;  %9144 = vmatmul.mubr.msk.f32.gmra.mxu0 %vm204_vm1, %v3377_v4  ;;  %v3384_v4 = vld [vmem:[#allocation2 + $0xc2] sm:$0xff] }
 0x126   : > { %12812 = vst [vmem:[#allocation12_spill] sm:$0xff] %v10620_v25  ;;  %v1394_v57 = vadd.f32 %v8845_v37, %v10470_v42  ;;  %9146 = vmatprep.mubr.msk.f32.mxu0 %vm204_vm1, %v3378_v20  ;;  %v3381_v42 = vld [vmem:[#allocation2 + $0x9a] sm:$0xff] }
 0x127   : > { %v8889_v6 = vpop.f32.mrf.mxu1  ;;  %v1250_v40 = vpop.f32.mrf.mxu0 }
 0x128   : > { %v10628_v43 = vadd.f32 %v8889_v6, %v1390_v15  ;;  %v10631_v46 = vadd.f32 %v1250_v40, %v10473_v63  ;;  %v3385_v6 = vld [vmem:[#allocation2 + $0xca] sm:$0xff] }
 0x129   : > { %v10633_v61 = vpop.f32.mrf.mxu1  ;;  %v8848_v21 = vpop.f32.mrf.mxu0  ;;  %9147 = vmatmul.mubr.msk.f32.gmra.mxu0 %vm204_vm1, %v3379_v60 }
 0x12a   : > { %v1396_v9 = vadd.f32 %v8848_v21, %v10480_v41  ;;  %9149 = vmatprep.mubr.msk.f32.mxu0 %vm204_vm1, %v3380_v35  ;;  %v3383_v41 = vld [vmem:[#allocation2 + $0xb2] sm:$0xff] }
 0x12b   : > { %v8892_v12 = vpop.f32.mrf.mxu1  ;;  %v1260_v15 = vpop.f32.mrf.mxu0 }
 0x12c   : > { %v10638_v34 = vadd.f32 %v8892_v12, %v1392_v54  ;;  %v10641_v50 = vadd.f32 %v1260_v15, %v10483_v58  ;;  %v7832_v58 = vld [vmem:[%s12681_s2 + $0x4] sm:$0xf] }
 0x12d   : > { %v10643_v63 = vpop.f32.mrf.mxu1  ;;  %v8851_v23 = vpop.f32.mrf.mxu0  ;;  %9150 = vmatmul.mubr.msk.f32.gmra.mxu0 %vm204_vm1, %v3381_v42  ;;  %9185 = vmatprep.subr.msk.mxu1 %vm478_vm0, %v7832_v58 }
 0x12e   : > { %v1398_v24 = vadd.f32 %v8851_v23, %v10490_v10  ;;  %9152 = vmatprep.mubr.msk.f32.mxu0 %vm204_vm1, %v3382_v0  ;;  %9186 = vmatpush3.msk.msra.mxu1 %vm478_vm0, %v7832_v58  ;;  %v3388_v23 = vld [vmem:[#allocation2 + $0xf2] sm:$0xff] }
 0x12f   : > { %v8895_v51 = vpop.f32.mrf.mxu1  ;;  %v1270_v54 = vpop.f32.mrf.mxu0 }
 0x130   : > { %v10648_v29 = vadd.f32 %v8895_v51, %v1394_v57  ;;  %v10654_v2 = vadd.f32 %v1270_v54, %v10493_v19  ;;  %v3386_v19 = vld [vmem:[#allocation2 + $0xda] sm:$0xff] }
 0x131   : > { %v10656_v20 = vpop.f32.mrf.mxu1  ;;  %v8854_v10 = vpop.f32.mrf.mxu0  ;;  %9153 = vmatmul.mubr.msk.f32.gmra.mxu0 %vm204_vm1, %v3383_v41 }
 0x132   : > { %v1400_v37 = vadd.f32 %v8854_v10, %v10500_v31  ;;  %9155 = vmatprep.mubr.msk.f32.mxu0 %vm204_vm1, %v3384_v4  ;;  %v3387_v31 = vld [vmem:[#allocation2 + $0xe2] sm:$0xff]  ;;  %v3390_v10 = vld [vmem:[#allocation2 + $0x10a] sm:$0xff] }
 0x133   : > { %v8898_v57 = vpop.f32.mrf.mxu1  ;;  %v1280_v40 = vpop.f32.mrf.mxu0 }
 0x134   : > { %v10663_v60 = vadd.f32 %v8898_v57, %v1396_v9  ;;  %v10666_v35 = vadd.f32 %v1280_v40, %v10503_v1 }
 0x135   : > { %v10668_v21 = vpop.f32.mrf.mxu1  ;;  %v8857_v12 = vpop.f32.mrf.mxu0  ;;  %9156 = vmatmul.mubr.msk.f32.gmra.mxu0 %vm204_vm1, %v3385_v6 }
 0x136   : > { %v1402_v42 = vadd.f32 %v8857_v12, %v10510_v11  ;;  %9158 = vmatprep.mubr.msk.f32.mxu0 %vm204_vm1, %v3386_v19  ;;  %v3389_v11 = vld [vmem:[#allocation2 + $0xfa] sm:$0xff] }
 0x137   : > { %v8901_v15 = vpop.f32.mrf.mxu1  ;;  %v1290_v9 = vpop.f32.mrf.mxu0 }
 0x138   : > { %v10673_v0 = vadd.f32 %v8901_v15, %v1398_v24  ;;  %v10676_v51 = vadd.f32 %v1290_v9, %v10515_v28  ;;  %v3392_v15 = vld [vmem:[#allocation2 + $0x122] sm:$0xff] }
 0x139   : > { %v10678_v1 = vpop.f32.mrf.mxu1  ;;  %v8860_v41 = vpop.f32.mrf.mxu0  ;;  %9159 = vmatmul.mubr.msk.f32.gmra.mxu0 %vm204_vm1, %v3387_v31 }
 0x13a   : > { %12813 = vst [vmem:[#allocation13_spill] sm:$0xff] %v10676_v51  ;;  %v1404_v54 = vadd.f32 %v8860_v41, %v10522_v14  ;;  %9161 = vmatprep.mubr.msk.f32.mxu0 %vm204_vm1, %v3388_v23  ;;  %v3391_v14 = vld [vmem:[#allocation2 + $0x112] sm:$0xff] }
 0x13b   : > { %v8904_v4 = vpop.f32.mrf.mxu1  ;;  %v1300_v24 = vpop.f32.mrf.mxu0 }
 0x13c   : > { %v10683_v58 = vadd.f32 %v8904_v4, %v1400_v37  ;;  %v10686_v57 = vadd.f32 %v1300_v24, %v10527_v38 }
 0x13d   : > { %v10688_v28 = vpop.f32.mrf.mxu1  ;;  %v8863_v6 = vpop.f32.mrf.mxu0  ;;  %9162 = vmatmul.mubr.msk.f32.gmra.mxu0 %vm204_vm1, %v3389_v11 }
 0x13e   : > { %12814 = vst [vmem:[#allocation14_spill] sm:$0xff] %v10686_v57  ;;  %v1406_v40 = vadd.f32 %v8863_v6, %v10534_v52  ;;  %9164 = vmatprep.mubr.msk.f32.mxu0 %vm204_vm1, %v3390_v10  ;;  %v3393_v52 = vld [vmem:[#allocation2 + $0x12a] sm:$0xff] }
 0x13f   : > { %v8907_v19 = vpop.f32.mrf.mxu1  ;;  %v10695_v37 = vpop.f32.mrf.mxu0 }
 0x140   : > { %v10693_v12 = vadd.f32 %v8907_v19, %v1402_v42  ;;  %12815 = vst [vmem:[#allocation15_spill] sm:$0xff] %v10695_v37  ;;  %v3394_v42 = vld [vmem:[#allocation2 + $0x13a] sm:$0xff] }
 0x141   : > { %v10697_v31 = vpop.f32.mrf.mxu1  ;;  %v8866_v38 = vpop.f32.mrf.mxu0  ;;  %9165 = vmatmul.mubr.msk.f32.gmra.mxu0 %vm204_vm1, %v3391_v14 }
 0x142   : > { %12816 = vst [vmem:[#allocation16_spill] sm:$0xff] %v10697_v31  ;;  %v1408_v9 = vadd.f32 %v8866_v38, %v10546_v39  ;;  %9167 = vmatprep.mubr.msk.f32.mxu0 %vm204_vm1, %v3392_v15  ;;  %v3395_v39 = vld [vmem:[#allocation2 + $0x142] sm:$0xff] }
 0x143   : > { %v8910_v23 = vpop.f32.mrf.mxu1  ;;  %v10704_v4 = vpop.f32.mrf.mxu0 }
 0x144   : > { %v10702_v41 = vadd.f32 %v8910_v23, %v1404_v54  ;;  %12817 = vst [vmem:[#allocation17_spill] sm:$0xff] %v10704_v4  ;;  %v3396_v54 = vld [vmem:[#allocation2 + $0x152] sm:$0xff] }
 0x145   : > { %v10706_v11 = vpop.f32.mrf.mxu1  ;;  %v8869_v24 = vpop.f32.mrf.mxu0  ;;  %9168 = vmatmul.mubr.msk.f32.gmra.mxu0 %vm204_vm1, %v3393_v52 }
 0x146   : > { %12818 = vst [vmem:[#allocation18_spill] sm:$0xff] %v10706_v11  ;;  %v1410_v10 = vadd.f32 %v8869_v24, %v10558_v36  ;;  %9170 = vmatprep.mubr.msk.f32.mxu0 %vm204_vm1, %v3394_v42  ;;  %v3397_v36 = vld [vmem:[#allocation2 + $0x15a] sm:$0xff] }
 0x147   : > { %v8913_v6 = vpop.f32.mrf.mxu1  ;;  %v10713_v14 = vpop.f32.mrf.mxu0 }
 0x148   : > { %v10711_v19 = vadd.f32 %v8913_v6, %v1406_v40  ;;  %12819 = vst [vmem:[#allocation19_spill] sm:$0xff] %v10713_v14  ;;  %v3398_v40 = vld [vmem:[#allocation2 + $0x16a] sm:$0xff] }
 0x149   : > { %v10715_v15 = vpop.f32.mrf.mxu1  ;;  %v8872_v38 = vpop.f32.mrf.mxu0  ;;  %9171 = vmatmul.mubr.msk.f32.gmra.mxu0 %vm204_vm1, %v3395_v39 }
 0x14a   : > { %12820 = vst [vmem:[#allocation20_spill] sm:$0xff] %v10715_v15  ;;  %v1412_v23 = vadd.f32 %v8872_v38, %v10570_v16  ;;  %9173 = vmatprep.mubr.msk.f32.mxu0 %vm204_vm1, %v3396_v54  ;;  %v3399_v16 = vld [vmem:[#allocation2 + $0x172] sm:$0xff] }
 0x14b   : > { %v8916_v25 = vpop.f32.mrf.mxu1  ;;  %v10722_v42 = vpop.f32.mrf.mxu0 }
 0x14c   : > { %v10720_v52 = vadd.f32 %v8916_v25, %v1408_v9  ;;  %12821 = vst [vmem:[#allocation22_spill] sm:$0xff] %v10722_v42 }
 0x14d   : > { %v10724_v24 = vpop.f32.mrf.mxu1  ;;  %v8875_v6 = vpop.f32.mrf.mxu0  ;;  %9174 = vmatmul.mubr.msk.f32.gmra.mxu0 %vm204_vm1, %v3397_v36 }
 0x14e   : > { %12822 = vst [vmem:[#allocation24_spill] sm:$0xff] %v10724_v24  ;;  %v1414_v49 = vadd.f32 %v8875_v6, %v10581_v47  ;;  %9176 = vmatprep.mubr.msk.f32.mxu0 %vm204_vm1, %v3398_v40  ;;  %v3402_v40 = vld [vmem:[#allocation2 + $0x19a] sm:$0xff] }
 0x14f   : > { %v8919_v26 = vpop.f32.mrf.mxu1  ;;  %v10731_v54 = vpop.f32.mrf.mxu0 }
 0x150   : > { %v10729_v39 = vadd.f32 %v8919_v26, %v1410_v10  ;;  %12823 = vst [vmem:[#allocation28_spill] sm:$0xff] %v10731_v54  ;;  %v3902_v54 = vld [vmem:[%s12681_s2] sm:$0xf] }
 0x151   : > { %v10733_v25 = vpop.f32.mrf.mxu1  ;;  %v8878_v9 = vpop.f32.mrf.mxu0  ;;  %9177 = vmatmul.mubr.msk.f32.gmra.mxu0 %vm204_vm1, %v3399_v16  ;;  %9235 = vmatprep.subr.msk.mxu0 %vm478_vm0, %v3902_v54 }
 0x152   : > { %12824 = vst [vmem:[#allocation29_spill] sm:$0xff] %v10733_v25  ;;  %v1416_v38 = vadd.f32 %v8878_v9, %v10592_v30  ;;  %9179 = vmatprep.mubr.msk.f32.mxu0 %vm204_vm1, %v10424_v56  ;;  %v3403_v30 = vld [vmem:[#allocation2 + $0x1a2] sm:$0xff]  ;;  %9236 = vmatpush3.msk.msra.mxu0 %vm478_vm0, %v3902_v54 }
 0x153   : > { %v8922_v45 = vpop.f32.mrf.mxu1  ;;  %v10741_v36 = vpop.f32.mrf.mxu0 }
 0x154   : > { %v10739_v47 = vadd.f32 %v8922_v45, %v1412_v23  ;;  %12825 = vst [vmem:[#allocation31_spill] sm:$0xff] %v10741_v36 }
 0x155   : > { %v10743_v26 = vpop.f32.mrf.mxu1  ;;  %v8881_v10 = vpop.f32.mrf.mxu0  ;;  %9180 = vmatmul.mubr.msk.f32.gmra.mxu0 %vm204_vm1, %v10436_v7 }
 0x156   : > { %12826 = vst [vmem:[#allocation32_spill] sm:$0xff] %v10743_v26  ;;  %v1418_v6 = vadd.f32 %v8881_v10, %v10606_v18  ;;  %9182 = vmatprep.mubr.msk.f32.mxu0 %vm204_vm1, %v3402_v40 }
 0x157   : > { %v8925_v16 = vpop.f32.mrf.mxu1  ;;  %v10751_v56 = vpop.f32.mrf.mxu0 }
 0x158   : > { %v10749_v9 = vadd.f32 %v8925_v16, %v1414_v49  ;;  %12827 = vst [vmem:[#allocation33_spill] sm:$0xff] %v10751_v56 }
 0x159   : > { %v10753_v45 = vpop.f32.mrf.mxu1  ;;  %v8884_v23 = vpop.f32.mrf.mxu0  ;;  %9183 = vmatmul.mubr.msk.f32.gmra.mxu0 %vm204_vm1, %v3403_v30 }
 0x15a   : > { %12828 = vst [vmem:[#allocation34_spill] sm:$0xff] %v10753_v45  ;;  %v1420_v36 = vadd.f32 %v8884_v23, %v10618_v5 }
 0x15b   : > { %v8928_v3 = vpop.f32.mrf.mxu1  ;;  %v10759_v7 = vpop.f32.mrf.mxu0 }
 0x15c   : > { %v10757_v8 = vadd.f32 %v8928_v3, %v1416_v38  ;;  %12829 = vst [vmem:[#allocation35_spill] sm:$0xff] %v10759_v7 }
 0x15d   : > { %v10761_v18 = vpop.f32.mrf.mxu1  ;;  %v8939_v40 = vpop.f32.mrf.mxu0 }
 0x15e   : > { %12830 = vst [vmem:[#allocation36_spill] sm:$0xff] %v10761_v18  ;;  %v10764_v49 = vadd.f32 %v8939_v40, %v10628_v43 }
 0x15f   : > { %v8931_v10 = vpop.f32.mrf.mxu1  ;;  %v10768_v56 = vpop.f32.mrf.mxu0 }
 0x160   : > { %v10766_v16 = vadd.f32 %v8931_v10, %v1418_v6 }
 0x161   : > { %v10770_v45 = vpop.f32.mrf.mxu1  ;;  %v8942_v30 = vpop.f32.mrf.mxu0 }
 0x162   : > { %12831 = vst [vmem:[#allocation37_spill] sm:$0xff] %v10770_v45  ;;  %v10773_v3 = vadd.f32 %v8942_v30, %v10638_v34 }
 0x163   : > { %v8934_v5 = vpop.f32.mrf.mxu1  ;;  %v10777_v23 = vpop.f32.mrf.mxu0 }
 0x164   : > { %v10775_v38 = vadd.f32 %v8934_v5, %v1420_v36 }
 0x165   : > { %v10779_v7 = vpop.f32.mrf.mxu1  ;;  %v8945_v18 = vpop.f32.mrf.mxu0 }
 0x166   : > { %12832 = vst [vmem:[#allocation38_spill] sm:$0xff] %v10779_v7  ;;  %v10782_v43 = vadd.f32 %v8945_v18, %v10648_v29 }
 0x167   : > { %v10784_v6 = vpop.f32.mrf.mxu1  ;;  %v10786_v40 = vpop.f32.mrf.mxu0 }
 0x169   : > { %v10788_v10 = vpop.f32.mrf.mxu1  ;;  %v8948_v45 = vpop.f32.mrf.mxu0 }
 0x16a   : > { %v10791_v34 = vadd.f32 %v8948_v45, %v10663_v60  ;;  %v10816_v45 = vld [vmem:[%s12681_s2 + $0x8] sm:$0xf] }
 0x16b   : > { %v10793_v36 = vpop.f32.mrf.mxu1  ;;  %v10795_v30 = vpop.f32.mrf.mxu0  ;;  %12833 = vst [vmem:[#allocation39_spill] sm:$0xff] %v10816_v45  ;;  %9285 = vmatprep.subr.msk.mxu1 %vm478_vm0, %v10816_v45 }
 0x16d   : > { %v10797_v5 = vpop.f32.mrf.mxu1  ;;  %v8951_v7 = vpop.f32.mrf.mxu0 }
 0x16e   : > { %v10800_v29 = vadd.f32 %v8951_v7, %v10673_v0 }
 0x16f   : > { %v10802_v18 = vpop.f32.mrf.mxu1  ;;  %v10807_v26 = vpop.f32.mrf.mxu0 }
 0x171   : > { %v10810_v60 = vpop.f32.mrf.mxu1  ;;  %v8954_v0 = vpop.f32.mrf.mxu0 }
 0x172   : > { %v10821_v7 = vadd.f32 %v8954_v0, %v10683_v58 }
 0x173   : > { %v10823_v33 = vpop.f32.mrf.mxu1  ;;  %v10825_v44 = vpop.f32.mrf.mxu0 }
 0x175   : > { %v10827_v42 = vpop.f32.mrf.mxu1  ;;  %v8957_v25 = vpop.f32.mrf.mxu0 }
 0x176   : > { %v10830_v54 = vadd.f32 %v8957_v25, %v10693_v12 }
 0x177   : > { %v10832_v27 = vpop.f32.mrf.mxu1  ;;  %v10834_v17 = vpop.f32.mrf.mxu0 }
 0x178   : > { %12834 = vst [vmem:[#allocation40_spill] sm:$0xff] %v10830_v54  ;;  %12835 = vst [vmem:[#allocation41_spill] sm:$0xff] %v10834_v17 }
 0x179   : > { %v10836_v14 = vpop.f32.mrf.mxu1  ;;  %v8960_v24 = vpop.f32.mrf.mxu0 }
 0x17a   : > { %v10839_v58 = vadd.f32 %v8960_v24, %v10702_v41 }
 0x17b   : > { %v10841_v0 = vpop.f32.mrf.mxu1  ;;  %v10843_v59 = vpop.f32.mrf.mxu0 }
 0x17c   : > { %12836 = vst [vmem:[#allocation42_spill] sm:$0xff] %v10839_v58  ;;  %12837 = vst [vmem:[#allocation43_spill] sm:$0xff] %v10843_v59 }
 0x17d   : > { %v10845_v55 = vpop.f32.mrf.mxu1  ;;  %v8963_v4 = vpop.f32.mrf.mxu0 }
 0x17e   : > { %12838 = vst [vmem:[#allocation44_spill] sm:$0xff] %v10845_v55  ;;  %v10848_v12 = vadd.f32 %v8963_v4, %v10711_v19 }
 0x17f   : > { %v10850_v25 = vpop.f32.mrf.mxu1  ;;  %v10852_v15 = vpop.f32.mrf.mxu0 }
 0x180   : > { %12839 = vst [vmem:[#allocation45_spill] sm:$0xff] %v10848_v12  ;;  %12840 = vst [vmem:[#allocation46_spill] sm:$0xff] %v10850_v25 }
 0x181   : > { %12841 = vst [vmem:[#allocation47_spill] sm:$0xff] %v10852_v15  ;;  %v10854_v22 = vpop.f32.mrf.mxu1  ;;  %v8966_v48 = vpop.f32.mrf.mxu0 }
 0x182   : > { %12842 = vst [vmem:[#allocation48_spill] sm:$0xff] %v10854_v22  ;;  %v10857_v41 = vadd.f32 %v8966_v48, %v10720_v52 }
 0x183   : > { %v10859_v24 = vpop.f32.mrf.mxu1  ;;  %v10861_v58 = vpop.f32.mrf.mxu0 }
 0x184   : > { %12843 = vst [vmem:[#allocation49_spill] sm:$0xff] %v10857_v41  ;;  %12844 = vst [vmem:[#allocation50_spill] sm:$0xff] %v10859_v24 }
 0x185   : > { %12845 = vst [vmem:[#allocation51_spill] sm:$0xff] %v10861_v58  ;;  %v10863_v59 = vpop.f32.mrf.mxu1  ;;  %v8969_v37 = vpop.f32.mrf.mxu0 }
 0x186   : > { %12846 = vst [vmem:[#allocation52_spill] sm:$0xff] %v10863_v59  ;;  %v10866_v4 = vadd.f32 %v8969_v37, %v10729_v39 }
 0x187   : > { %v10868_v19 = vpop.f32.mrf.mxu1  ;;  %v10870_v12 = vpop.f32.mrf.mxu0 }
 0x188   : > { %12847 = vst [vmem:[#allocation53_spill] sm:$0xff] %v10866_v4  ;;  %12848 = vst [vmem:[#allocation54_spill] sm:$0xff] %v10868_v19 }
 0x189   : > { %12849 = vst [vmem:[#allocation55_spill] sm:$0xff] %v10870_v12  ;;  %v10872_v15 = vpop.f32.mrf.mxu1  ;;  %v8972_v22 = vpop.f32.mrf.mxu0 }
 0x18a   : > { %12850 = vst [vmem:[#allocation56_spill] sm:$0xff] %v10872_v15  ;;  %v10875_v48 = vadd.f32 %v8972_v22, %v10739_v47 }
 0x18b   : > { %v10877_v52 = vpop.f32.mrf.mxu1  ;;  %v10879_v41 = vpop.f32.mrf.mxu0 }
 0x18c   : > { %12851 = vst [vmem:[#allocation57_spill] sm:$0xff] %v10875_v48  ;;  %12852 = vst [vmem:[#allocation58_spill] sm:$0xff] %v10877_v52 }
 0x18d   : > { %12853 = vst [vmem:[#allocation59_spill] sm:$0xff] %v10879_v41  ;;  %v10881_v58 = vpop.f32.mrf.mxu1  ;;  %v8975_v59 = vpop.f32.mrf.mxu0 }
 0x18e   : > { %12854 = vst [vmem:[#allocation60_spill] sm:$0xff] %v10881_v58  ;;  %v10884_v37 = vadd.f32 %v8975_v59, %v10749_v9 }
 0x18f   : > { %v10886_v39 = vpop.f32.mrf.mxu1  ;;  %v10888_v4 = vpop.f32.mrf.mxu0 }
 0x190   : > { %12855 = vst [vmem:[#allocation61_spill] sm:$0xff] %v10884_v37  ;;  %12856 = vst [vmem:[#allocation62_spill] sm:$0xff] %v10886_v39 }
 0x191   : > { %12857 = vst [vmem:[#allocation63_spill] sm:$0xff] %v10888_v4  ;;  %v10890_v12 = vpop.f32.mrf.mxu1  ;;  %v8978_v15 = vpop.f32.mrf.mxu0 }
 0x192   : > { %12858 = vst [vmem:[#allocation64_spill] sm:$0xff] %v10890_v12  ;;  %v10893_v22 = vadd.f32 %v8978_v15, %v10757_v8 }
 0x193   : > { %v10895_v47 = vpop.f32.mrf.mxu1  ;;  %v10897_v48 = vpop.f32.mrf.mxu0 }
 0x194   : > { %12859 = vst [vmem:[#allocation65_spill] sm:$0xff] %v10893_v22  ;;  %12860 = vst [vmem:[#allocation66_spill] sm:$0xff] %v10895_v47 }
 0x195   : > { %12861 = vst [vmem:[#allocation67_spill] sm:$0xff] %v10897_v48  ;;  %v10899_v41 = vpop.f32.mrf.mxu1  ;;  %v8981_v58 = vpop.f32.mrf.mxu0 }
 0x196   : > { %12862 = vst [vmem:[#allocation68_spill] sm:$0xff] %v10899_v41  ;;  %v10902_v59 = vadd.f32 %v8981_v58, %v10766_v16 }
 0x197   : > { %v10904_v9 = vpop.f32.mrf.mxu1  ;;  %v10906_v37 = vpop.f32.mrf.mxu0 }
 0x198   : > { %12863 = vst [vmem:[#allocation69_spill] sm:$0xff] %v10902_v59  ;;  %12864 = vst [vmem:[#allocation70_spill] sm:$0xff] %v10904_v9 }
 0x199   : > { %12865 = vst [vmem:[#allocation71_spill] sm:$0xff] %v10906_v37  ;;  %v10908_v4 = vpop.f32.mrf.mxu1  ;;  %v8984_v12 = vpop.f32.mrf.mxu0 }
 0x19a   : > { %12866 = vst [vmem:[#allocation72_spill] sm:$0xff] %v10908_v4  ;;  %v10911_v8 = vadd.f32 %v8984_v12, %v10775_v38 }
 0x19b   : > { %v10913_v15 = vpop.f32.mrf.mxu1  ;;  %v10915_v22 = vpop.f32.mrf.mxu0 }
 0x19c   : > { %12867 = vst [vmem:[#allocation73_spill] sm:$0xff] %v10911_v8  ;;  %12868 = vst [vmem:[#allocation74_spill] sm:$0xff] %v10913_v15 }
 0x19d   : > { %12869 = vst [vmem:[#allocation75_spill] sm:$0xff] %v10915_v22  ;;  %v10917_v48 = vpop.f32.mrf.mxu1  ;;  %v9039_v41 = vpop.f32.mrf.mxu0 }
 0x19e   : > { %12870 = vst [vmem:[#allocation76_spill] sm:$0xff] %v10917_v48 }
 0x19f   : > { %v10919_v47 = vpop.f32.mrf.mxu1  ;;  %v2791_v16 = vpop.f32.mrf.mxu0 }
 0x1a0   : > { %12871 = vst [vmem:[#allocation77_spill] sm:$0xff] %v10919_v47 }
 0x1a1   : > { %v10921_v58 = vpop.f32.mrf.mxu1  ;;  %v10923_v59 = vpop.f32.mrf.mxu0 }
 0x1a2   : > { %12872 = vst [vmem:[#allocation78_spill] sm:$0xff] %v10921_v58 }
 0x1a3   : > { %v10925_v37 = vpop.f32.mrf.mxu1  ;;  %v10927_v4 = vpop.f32.mrf.mxu0 }
 0x1a4   : > { %12873 = vst [vmem:[#allocation79_spill] sm:$0xff] %v10925_v37  ;;  %v10946_v37 = vld [vmem:[%s12681_s2 + $0xc] sm:$0xf] }
 0x1a5   : > { %v10929_v38 = vpop.f32.mrf.mxu1  ;;  %v10931_v12 = vpop.f32.mrf.mxu0  ;;  %12875 = vst [vmem:[#allocation81_spill] sm:$0xff] %v10946_v37  ;;  %9335 = vmatprep.subr.msk.mxu0 %vm478_vm0, %v10946_v37 }
 0x1a6   : > { %12874 = vst [vmem:[#allocation80_spill] sm:$0xff] %v10929_v38 }
 0x1a7   : > { %v9089_v8 = vpop.f32.mrf.mxu1  ;;  %v10933_v22 = vpop.f32.mrf.mxu0 }
 0x1a9   : > { %v3181_v48 = vpop.f32.mrf.mxu1  ;;  %v10935_v15 = vpop.f32.mrf.mxu0 }
 0x1ab   : > { %v10937_v47 = vpop.f32.mrf.mxu1  ;;  %v10939_v9 = vpop.f32.mrf.mxu0 }
 0x1ad   : > { %v10941_v58 = vpop.f32.mrf.mxu1  ;;  %v10948_v38 = vpop.f32.mrf.mxu0 }
 0x1af   : > { %v10952_v39 = vpop.f32.mrf.mxu1  ;;  %v10954_v52 = vpop.f32.mrf.mxu0 }
 0x1b1   : > { %v10956_v19 = vpop.f32.mrf.mxu1  ;;  %v10958_v24 = vpop.f32.mrf.mxu0 }
 0x1b2   : > { %12876 = vst [vmem:[#allocation82_spill] sm:$0xff] %v10958_v24 }
 0x1b3   : > { %v10960_v11 = vpop.f32.mrf.mxu1  ;;  %v10962_v57 = vpop.f32.mrf.mxu0 }
 0x1b4   : > { %12877 = vst [vmem:[#allocation83_spill] sm:$0xff] %v10962_v57 }
 0x1b5   : > { %v10964_v62 = vpop.f32.mrf.mxu0  ;;  %v10966_v13 = vpop.f32.mrf.mxu1 }
 0x1b6   : > { %12878 = vst [vmem:[#allocation84_spill] sm:$0xff] %v10964_v62 }
 0x1b7   : > { %v10968_v45 = vpop.f32.mrf.mxu0  ;;  %v10972_v37 = vpop.f32.mrf.mxu1 }
 0x1b8   : > { %12879 = vst [vmem:[#allocation85_spill] sm:$0xff] %v10968_v45  ;;  %12881 = vst [vmem:[#allocation87_spill] sm:$0xff] %v10972_v37 }
 0x1b9   : > { %v10970_v25 = vpop.f32.mrf.mxu0  ;;  %v10978_v55 = vpop.f32.mrf.mxu1 }
 0x1ba   : > { %12880 = vst [vmem:[#allocation86_spill] sm:$0xff] %v10970_v25  ;;  %12884 = vst [vmem:[#allocation90_spill] sm:$0xff] %v10978_v55 }
 0x1bb   : > { %v10974_v54 = vpop.f32.mrf.mxu0  ;;  %v10984_v57 = vpop.f32.mrf.mxu1 }
 0x1bc   : > { %12882 = vst [vmem:[#allocation88_spill] sm:$0xff] %v10974_v54  ;;  %12887 = vst [vmem:[#allocation93_spill] sm:$0xff] %v10984_v57 }
 0x1bd   : > { %v10976_v17 = vpop.f32.mrf.mxu0  ;;  %v10990_v45 = vpop.f32.mrf.mxu1 }
 0x1be   : > { %12883 = vst [vmem:[#allocation89_spill] sm:$0xff] %v10976_v17  ;;  %12890 = vst [vmem:[#allocation96_spill] sm:$0xff] %v10990_v45 }
 0x1bf   : > { %v10980_v24 = vpop.f32.mrf.mxu0  ;;  %v10996_v54 = vpop.f32.mrf.mxu1 }
 0x1c0   : > { %12885 = vst [vmem:[#allocation91_spill] sm:$0xff] %v10980_v24 }
 0x1c1   : > { %v10982_v31 = vpop.f32.mrf.mxu0  ;;  %v11002_v24 = vpop.f32.mrf.mxu1 }
 0x1c2   : > { %12886 = vst [vmem:[#allocation92_spill] sm:$0xff] %v10982_v31  ;;  %12895 = vst [vmem:[#allocation101_spill] sm:$0xff] %v11002_v24 }
 0x1c3   : > { %v10986_v62 = vpop.f32.mrf.mxu0 }
 0x1c4   : > { %12888 = vst [vmem:[#allocation94_spill] sm:$0xff] %v10986_v62  ;;  %v11008_v62 = vpop.f32.mrf.mxu1 }
 0x1c5   : > { %v10988_v51 = vpop.f32.mrf.mxu0  ;;  %12898 = vst [vmem:[#allocation104_spill] sm:$0xff] %v11008_v62 }
 0x1c6   : > { %12889 = vst [vmem:[#allocation95_spill] sm:$0xff] %v10988_v51 }
 0x1c7   : > { %v10992_v25 = vpop.f32.mrf.mxu0 }
 0x1c8   : > { %12891 = vst [vmem:[#allocation97_spill] sm:$0xff] %v10992_v25  ;;  %v11016_v25 = vpop.f32.mrf.mxu1 }
 0x1c9   : > { %v10994_v37 = vpop.f32.mrf.mxu0 }
 0x1ca   : > { %12892 = vst [vmem:[#allocation98_spill] sm:$0xff] %v10994_v37  ;;  %v1779_v37 = vadd.f32 %v10633_v61, %v10612_v32  ;;  %v11028_v62 = vpop.f32.mrf.mxu1 }
 0x1cb   : > { %v10998_v17 = vpop.f32.mrf.mxu0 }
 0x1cc   : > { %12893 = vst [vmem:[#allocation99_spill] sm:$0xff] %v10998_v17 }
 0x1cd   : > { %v11000_v55 = vpop.f32.mrf.mxu0 }
 0x1ce   : > { %12894 = vst [vmem:[#allocation100_spill] sm:$0xff] %v11000_v55  ;;  %v2169_v55 = vadd.f32 %v10768_v56, %v1779_v37  ;;  %v2562_v56 = vadd.f32 %v10793_v36, %v10773_v3  ;;  %v2564_v3 = vadd.f32 %v10802_v18, %v10782_v43 }
 0x1cf   : > { %v11004_v31 = vpop.f32.mrf.mxu0 }
 0x1d0   : > { %12896 = vst [vmem:[#allocation102_spill] sm:$0xff] %v11004_v31  ;;  %v2560_v31 = vadd.f32 %v10784_v6, %v10764_v49  ;;  %v1783_v49 = vadd.f32 %v10656_v20, %v10631_v46  ;;  %v1785_v20 = vadd.f32 %v10668_v21, %v10641_v50 }
 0x1d1   : > { %v11006_v57 = vpop.f32.mrf.mxu0 }
 0x1d2   : > { %12897 = vst [vmem:[#allocation103_spill] sm:$0xff] %v11006_v57  ;;  %v1781_v57 = vadd.f32 %v10643_v63, %v10623_v53  ;;  %v2175_v18 = vadd.f32 %v10795_v30, %v1785_v20 }
 0x1d3   : > { %v11010_v51 = vpop.f32.mrf.mxu0 }
 0x1d4   : > { %12899 = vst [vmem:[#allocation105_spill] sm:$0xff] %v11010_v51  ;;  %v2559_v51 = vadd.f32 %v10788_v10, %v2169_v55  ;;  %v2171_v61 = vadd.f32 %v10777_v23, %v1781_v57  ;;  %v2953_v55 = vadd.f32 %v10923_v59, %v2562_v56  ;;  %v2173_v10 = vadd.f32 %v10786_v40, %v1783_v49 }
 0x1d5   : > { %v11012_v45 = vpop.f32.mrf.mxu0  ;;  %v2955_v40 = vadd.f32 %v10931_v12, %v2564_v3  ;;  %v2565_v30 = vadd.f32 %v10827_v42, %v2175_v18  ;;  %v12907_v3 = vld [vmem:[#allocation90_spill] sm:$0xff] }
 0x1d6   : > { %12900 = vst [vmem:[#allocation106_spill] sm:$0xff] %v11012_v45  ;;  %v2951_v45 = vadd.f32 %v9039_v41, %v2560_v31  ;;  %v2950_v37 = vadd.f32 %v2791_v16, %v2559_v51  ;;  %v2561_v53 = vadd.f32 %v10797_v5, %v2171_v61  ;;  %v11040_v41 = vpop.f32.mrf.mxu1  ;;  %v3343_v23 = vadd.f32 %v10937_v47, %v2953_v55  ;;  %v12904_v55 = vld [vmem:[#allocation16_spill] sm:$0xff] }
 0x1d7   : > { %v11018_v17 = vpop.f32.mrf.mxu0  ;;  %v3345_v21 = vadd.f32 %v10952_v39, %v2955_v40  ;;  %v1787_v47 = vadd.f32 %v10678_v1, %v10654_v2  ;;  %v2568_v2 = vadd.f32 %v10832_v27, %v10800_v29  ;;  %v2956_v1 = vadd.f32 %v10939_v9, %v2565_v30 }
 0x1d8   : > { %12901 = vst [vmem:[#allocation107_spill] sm:$0xff] %v11018_v17  ;;  %v3341_v17 = vadd.f32 %v9089_v8, %v2951_v45  ;;  %v3340_v63 = vadd.f32 %v3181_v48, %v2950_v37  ;;  %v2952_v51 = vadd.f32 %v10927_v4, %v2561_v53  ;;  %v11054_v45 = vpop.f32.mrf.mxu1  ;;  %v2566_v48 = vadd.f32 %v10823_v33, %v10791_v34  ;;  %v12903_v53 = vld [vmem:[#allocation13_spill] sm:$0xff] }
 0x1d9   : > { %v11023_v24 = vpop.f32.mrf.mxu0  ;;  %v2177_v34 = vadd.f32 %v10807_v26, %v1787_v47  ;;  %v2959_v56 = vadd.f32 %v10948_v38, %v2568_v2  ;;  %v3346_v27 = vadd.f32 %v10966_v13, %v2956_v1  ;;  %v12912_v47 = vld [vmem:[#allocation93_spill] sm:$0xff]  ;;  %v12917_v2 = vld [vmem:[#allocation18_spill] sm:$0xff] }
 0x1da   : > { %v3342_v5 = vadd.f32 %v10941_v58, %v2952_v51  ;;  %v2957_v8 = vadd.f32 %v10935_v15, %v2566_v48  ;;  %v11070_v39 = vpop.f32.mrf.mxu1  ;;  %v1789_v15 = vadd.f32 %v10688_v28, %v10666_v35  ;;  %v2570_v35 = vadd.f32 %v10841_v0, %v10821_v7  ;;  %v12906_v0 = vld [vmem:[#allocation82_spill] sm:$0xff] }
 0x1db   : > { %v11030_v32 = vpop.f32.mrf.mxu0  ;;  %v2567_v61 = vadd.f32 %v10836_v14, %v2177_v34  ;;  %v12902_v14 = vld [vmem:[#allocation87_spill] sm:$0xff]  ;;  %v12915_v34 = vld [vmem:[#allocation25_spill] sm:$0xff] }
 0x1dc   : > { %v3347_v42 = vadd.f32 %v10960_v11, %v2957_v8  ;;  %v2179_v11 = vadd.f32 %v10825_v44, %v1789_v15  ;;  %v11086_v9 = vpop.f32.mrf.mxu1  ;;  %v3349_v38 = vadd.f32 %v12902_v14, %v2959_v56  ;;  %v1791_v44 = vadd.f32 %v12904_v55, %v12903_v53  ;;  %v12913_v8 = vld [vmem:[#allocation39_spill] sm:$0xff]  ;;  %v12918_v15 = vld [vmem:[#allocation48_spill] sm:$0xff]  ;;  %v12923_v53 = vld [vmem:[#allocation42_spill] sm:$0xff] }
 0x1dd   : > { %v9139_v6 = vpop.f32.mrf.mxu0  ;;  %v2958_v28 = vadd.f32 %v10954_v52, %v2567_v61  ;;  %v2961_v52 = vadd.f32 %v12906_v0, %v2570_v35  ;;  %v12920_v56 = vld [vmem:[#allocation96_spill] sm:$0xff]  ;;  %v12922_v35 = vld [vmem:[#allocation43_spill] sm:$0xff]  ;;  %v12924_v55 = vld [vmem:[#allocation50_spill] sm:$0xff] }
 0x1de   : > { %v3731_v31 = vadd.f32 %v9139_v6, %v3341_v17  ;;  %v2563_v17 = vadd.f32 %v10810_v60, %v2173_v10  ;;  %v12927_v0 = vld [vmem:[#allocation27_spill] sm:$0xff] }
 0x1df   : > { %v3571_v57 = vpop.f32.mrf.mxu0  ;;  %v3348_v51 = vadd.f32 %v12907_v3, %v2958_v28  ;;  %v12928_v3 = vld [vmem:[#allocation20_spill] sm:$0xff] }
 0x1e0   : > { %3763 = vst.msk [vmem:[#allocation2 + $0x21] sm:$0xff] %vm204_vm1, %v3731_v31  ;;  %v3730_v46 = vadd.f32 %v3571_v57, %v3340_v63  ;;  %v2954_v50 = vadd.f32 %v10933_v22, %v2563_v17  ;;  %v12905_v57 = vld [vmem:[#allocation44_spill] sm:$0xff]  ;;  %v12908_v17 = vld [vmem:[#allocation41_spill] sm:$0xff] }
 0x1e1   : > { %v9142_v36 = vpop.f32.mrf.mxu0  ;;  %v2569_v7 = vadd.f32 %v12905_v57, %v2179_v11  ;;  %v2181_v40 = vadd.f32 %v12908_v17, %v1791_v44  ;;  %v2574_v44 = vadd.f32 %v12924_v55, %v12923_v53  ;;  %v12929_v17 = vld [vmem:[#allocation52_spill] sm:$0xff] }
 0x1e2   : > { %3762 = vst.msk [vmem:[#allocation2 + $0x19] sm:$0xff] %vm204_vm1, %v3730_v46  ;;  %v3733_v43 = vadd.f32 %v9142_v36, %v3343_v23  ;;  %v3344_v16 = vadd.f32 %v10956_v19, %v2954_v50  ;;  %v11106_v36 = vld [vmem:[%s12681_s2 + $0x10] sm:$0xf]  ;;  %v12942_v53 = vld [vmem:[#allocation56_spill] sm:$0xff] }
 0x1e3   : > { %v3581_v4 = vpop.f32.mrf.mxu0 }
 0x1e4   : > { %3795 = vst.msk [vmem:[#allocation2 + $0x9] sm:$0xff] %vm204_vm1, %v3733_v43  ;;  %3765 = vst.msk [vmem:[#allocation2 + $0x39] sm:$0xff] %vm204_vm1, %v3733_v43  ;;  %v3732_v60 = vadd.f32 %v3581_v4, %v3342_v5  ;;  %v12909_v5 = vld [vmem:[#allocation40_spill] sm:$0xff]  ;;  %v12910_v43 = vld [vmem:[#allocation46_spill] sm:$0xff]  ;;  %v11111_v4 = vpop.f32.mrf.mxu1 }
 0x1e5   : > { %v9145_v59 = vpop.f32.mrf.mxu0  ;;  %v2572_v18 = vadd.f32 %v12910_v43, %v12909_v5  ;;  %v12930_v5 = vld [vmem:[#allocation86_spill] sm:$0xff]  ;;  %v12931_v43 = vld [vmem:[#allocation101_spill] sm:$0xff] }
 0x1e6   : > { %3794 = vst.msk [vmem:[#allocation2 + $0x1] sm:$0xff] %vm204_vm1, %v3732_v60  ;;  %3764 = vst.msk [vmem:[#allocation2 + $0x31] sm:$0xff] %vm204_vm1, %v3732_v60  ;;  %v3735_v33 = vadd.f32 %v9145_v59, %v3345_v21  ;;  %v12911_v21 = vld [vmem:[#allocation83_spill] sm:$0xff]  ;;  %v3351_v59 = vadd.f32 %v12912_v47, %v2961_v52  ;;  %v11140_v14 = vpop.f32.mrf.mxu1 }
 0x1e7   : > { %v3591_v22 = vpop.f32.mrf.mxu0  ;;  %v3835_v58 = vld [vmem:[#allocation2 + $0x27] sm:$0x1]  ;;  %v2960_v60 = vadd.f32 %v12911_v21, %v2569_v7  ;;  %v12926_v7 = vld [vmem:[#allocation23_spill] sm:$0xff] }
 0x1e8   : > { %3767 = vst.msk [vmem:[#allocation2 + $0x51] sm:$0xff] %vm204_vm1, %v3735_v33  ;;  %v3734_v19 = vadd.f32 %v3591_v22, %v3344_v16  ;;  %v12914_v33 = vld [vmem:[#allocation21_spill] sm:$0xff]  ;;  %v963_v52 = vadd.f32 %v12927_v0, %v12926_v7  ;;  %v11168_v47 = vld [vmem:[%s12681_s2 + $0x14] sm:$0xf] }
 0x1e9   : > { %3853 = vst.msk [vmem:[#allocation2 + $0x29] sm:$0x1] %vm260_vm2, %v3835_v58  ;;  %v9148_v26 = vpop.f32.mrf.mxu0  ;;  %v3799_v12 = vld [vmem:[#allocation2 + $0x1a] sm:$0x1]  ;;  %v953_v22 = vadd.f32 %v12915_v34, %v12914_v33  ;;  %v12916_v58 = vld [vmem:[#allocation14_spill] sm:$0xff]  ;;  %v12934_v33 = vld [vmem:[#allocation45_spill] sm:$0xff] }
 0x1ea   : > { %3766 = vst.msk [vmem:[#allocation2 + $0x49] sm:$0xff] %vm204_vm1, %v3734_v19  ;;  %v3737_v29 = vadd.f32 %v9148_v26, %v3347_v42  ;;  %v11114_v50 = vld [vmem:[#allocation2 + $0x19] sm:$0xff]  ;;  %v1793_v1 = vadd.f32 %v12917_v2, %v12916_v58  ;;  %v2571_v26 = vadd.f32 %v12918_v15, %v2181_v40  ;;  %v11135_v11 = vld [vmem:[#allocation2 + $0x21] sm:$0xff]  ;;  %v11174_v58 = vpop.f32.mrf.mxu1  ;;  %v12944_v0 = vld [vmem:[#allocation19_spill] sm:$0xff] }
 0x1eb   : > { %3817 = vst.msk [vmem:[#allocation2 + $0x18] sm:$0x1] %vm260_vm2, %v3799_v12  ;;  %v3601_v37 = vpop.f32.mrf.mxu0  ;;  %v3834_v49 = vld [vmem:[#allocation2 + $0xf] sm:$0x1]  ;;  %v3836_v6 = vld [vmem:[#allocation2 + $0x3f] sm:$0x1] }
 0x1ec   : > { %3769 = vst.msk [vmem:[#allocation2 + $0x69] sm:$0xff] %vm204_vm1, %v3737_v29  ;;  %v3736_v13 = vadd.f32 %v3601_v37, %v3346_v27  ;;  %v3904_v46 = vld [vmem:[#allocation2 + $0x9] sm:$0xff]  ;;  %v12919_v12 = vld [vmem:[#allocation84_spill] sm:$0xff]  ;;  %v3350_v27 = vadd.f32 %v12920_v56, %v2960_v60  ;;  %v2183_v28 = vadd.f32 %v12922_v35, %v1793_v1  ;;  %v11202_v7 = vld [vmem:[#allocation2 + $0x20] sm:$0xff] }
 0x1ed   : > { %3852 = vst.msk [vmem:[#allocation2 + $0x11] sm:$0x1] %vm260_vm2, %v3834_v49  ;;  %v9151_v63 = vpop.f32.mrf.mxu0  ;;  %v3903_v31 = vld [vmem:[#allocation2 + $0x1] sm:$0xff]  ;;  %3854 = vst.msk [vmem:[#allocation2 + $0x41] sm:$0x1] %vm260_vm2, %v3836_v6  ;;  %v2963_v61 = vadd.f32 %v12919_v12, %v2572_v18  ;;  %v12921_v37 = vld [vmem:[#allocation15_spill] sm:$0xff] }
 0x1ee   : > { %v3798_v10 = vld [vmem:[#allocation2 + $0x2] sm:$0x1]  ;;  %3768 = vst.msk [vmem:[#allocation2 + $0x61] sm:$0xff] %vm204_vm1, %v3736_v13  ;;  %v3739_v23 = vadd.f32 %v9151_v63, %v3349_v38  ;;  %9187 = vmatprep.mubr.msk.f32.mxu1 %vm204_vm1, %v3903_v31  ;;  %v3800_v20 = vld [vmem:[#allocation2 + $0x32] sm:$0x1]  ;;  %v1405_v49 = vadd.f32 %v12921_v37, %v953_v22  ;;  %v2573_v40 = vadd.f32 %v12929_v17, %v2183_v28  ;;  %v11162_v21 = vld [vmem:[#allocation2 + $0x39] sm:$0xff] }
 0x1ef   : > { %3816 = vst.msk [vmem:[#allocation2] sm:$0x1] %vm260_vm2, %v3798_v10  ;;  %v3611_v48 = vpop.f32.mrf.mxu0  ;;  %9188 = vmatmul.mubr.msk.f32.vlgmr.msra.gmra.mxu1 %vm204_vm1, %v3904_v46  ;;  %3818 = vst.msk [vmem:[#allocation2 + $0x30] sm:$0x1] %vm260_vm2, %v3800_v20  ;;  %v3837_v16 = vld [vmem:[#allocation2 + $0x57] sm:$0x1]  ;;  %v3353_v10 = vadd.f32 %v10996_v54, %v2963_v61  ;;  %v2965_v54 = vadd.f32 %v12930_v5, %v2574_v44 }
 0x1f0   : > { %3771 = vst.msk [vmem:[#allocation2 + $0x81] sm:$0xff] %vm204_vm1, %v3739_v23  ;;  %v3738_v30 = vadd.f32 %v3611_v48, %v3348_v51  ;;  %9286 = vmatpush3.msk.msra.mxu1 %vm478_vm0, %v12913_v8  ;;  %9190 = vmatprep.mubr.msk.f32.mxu1 %vm204_vm1, %v11114_v50  ;;  %v11144_v13 = vld [vmem:[#allocation2 + $0x31] sm:$0xff]  ;;  %v12925_v63 = vld [vmem:[#allocation85_spill] sm:$0xff]  ;;  %v1795_v51 = vadd.f32 %v12928_v3, %v1405_v49  ;;  %v3871_v60 = vld [vmem:[#allocation2 + $0x8] sm:$0xff] }
 0x1f1   : > { %v9154_v42 = vpop.f32.mrf.mxu0  ;;  %v3801_v19 = vld [vmem:[#allocation2 + $0x4a] sm:$0x1]  ;;  %9385 = vmatprep.subr.msk.mxu1 %vm478_vm0, %v11106_v36  ;;  %3855 = vst.msk [vmem:[#allocation2 + $0x59] sm:$0x1] %vm260_vm2, %v3837_v16  ;;  %v2962_v31 = vadd.f32 %v12925_v63, %v2571_v26  ;;  %v12933_v8 = vld [vmem:[#allocation47_spill] sm:$0xff]  ;;  %v12936_v15 = vld [vmem:[#allocation88_spill] sm:$0xff] }
 0x1f2   : > { %3770 = vst.msk [vmem:[#allocation2 + $0x79] sm:$0xff] %vm204_vm1, %v3738_v30  ;;  %v3741_v29 = vadd.f32 %v9154_v42, %v3351_v59  ;;  %v12932_v59 = vld [vmem:[#allocation17_spill] sm:$0xff]  ;;  %v2185_v16 = vadd.f32 %v12933_v8, %v1795_v51  ;;  %v12935_v34 = vld [vmem:[#allocation54_spill] sm:$0xff]  ;;  %v11181_v42 = vld [vmem:[#allocation2 + $0x18] sm:$0xff]  ;;  %v2964_v26 = vadd.f32 %v12936_v15, %v2573_v40 }
 0x1f3   : > { %3819 = vst.msk [vmem:[#allocation2 + $0x48] sm:$0x1] %vm260_vm2, %v3801_v19  ;;  %v3621_v38 = vpop.f32.mrf.mxu0  ;;  %9191 = vmatmul.mubr.msk.f32.gmra.mxu1 %vm204_vm1, %v11135_v11  ;;  %v3838_v6 = vld [vmem:[#allocation2 + $0x6f] sm:$0x1]  ;;  %v3352_v18 = vadd.f32 %v12931_v43, %v2962_v31  ;;  %v1407_v30 = vadd.f32 %v12932_v59, %v963_v52  ;;  %v2576_v22 = vadd.f32 %v12935_v34, %v12934_v33  ;;  %v12937_v12 = vld [vmem:[#allocation104_spill] sm:$0xff]  ;;  %v12943_v44 = vld [vmem:[#allocation89_spill] sm:$0xff] }
 0x1f4   : > { %3773 = vst.msk [vmem:[#allocation2 + $0x99] sm:$0xff] %vm204_vm1, %v3741_v29  ;;  %v3740_v57 = vadd.f32 %v3621_v38, %v3350_v27  ;;  %9193 = vmatprep.mubr.msk.f32.mxu1 %vm204_vm1, %v11144_v13  ;;  %v11179_v1 = vld [vmem:[#allocation2 + $0x49] sm:$0xff]  ;;  %v3355_v61 = vadd.f32 %v12937_v12, %v2965_v54  ;;  %v12939_v29 = vld [vmem:[#allocation4_spill] sm:$0xff]  ;;  %v2575_v55 = vadd.f32 %v12942_v53, %v2185_v16  ;;  %v12952_v16 = vld [vmem:[#allocation29_spill] sm:$0xff] }
 0x1f5   : > { %3856 = vst.msk [vmem:[#allocation2 + $0x71] sm:$0x1] %vm260_vm2, %v3838_v6  ;;  %v9157_v23 = vpop.f32.mrf.mxu0  ;;  %v3802_v20 = vld [vmem:[#allocation2 + $0x62] sm:$0x1]  ;;  %v12938_v27 = vld [vmem:[#allocation30_spill] sm:$0xff]  ;;  %v12940_v49 = vld [vmem:[#allocation24_spill] sm:$0xff]  ;;  %v2967_v63 = vadd.f32 %v12943_v44, %v2576_v22  ;;  %v3354_v31 = vadd.f32 %v11016_v25, %v2964_v26  ;;  %v11211_v25 = vpop.f32.mrf.mxu1 }
 0x1f6   : > { %v3870_v46 = vld [vmem:[#allocation2] sm:$0xff]  ;;  %3772 = vst.msk [vmem:[#allocation2 + $0x91] sm:$0xff] %vm204_vm1, %v3740_v57  ;;  %v3743_v48 = vadd.f32 %v9157_v23, %v3353_v10  ;;  %v973_v37 = vadd.f32 %v12939_v29, %v12938_v27  ;;  %v1797_v35 = vadd.f32 %v12940_v49, %v1407_v30  ;;  %v11200_v57 = vld [vmem:[#allocation2 + $0x51] sm:$0xff]  ;;  %v12950_v59 = vld [vmem:[#allocation26_spill] sm:$0xff] }
 0x1f7   : > { %9237 = vmatprep.mubr.msk.f32.mxu0 %vm204_vm1, %v3870_v46  ;;  %3820 = vst.msk [vmem:[#allocation2 + $0x60] sm:$0x1] %vm260_vm2, %v3802_v20  ;;  %v3631_v2 = vpop.f32.mrf.mxu0  ;;  %9194 = vmatmul.mubr.msk.f32.gmra.mxu1 %vm204_vm1, %v11162_v21  ;;  %v3839_v19 = vld [vmem:[#allocation2 + $0x87] sm:$0x1]  ;;  %v12945_v3 = vld [vmem:[#allocation51_spill] sm:$0xff]  ;;  %v12947_v46 = vld [vmem:[#allocation58_spill] sm:$0xff] }
 0x1f8   : > { %9238 = vmatmul.mubr.msk.f32.vlgmr.msra.gmra.mxu0 %vm204_vm1, %v3871_v60  ;;  %3775 = vst.msk [vmem:[#allocation2 + $0xb1] sm:$0xff] %vm204_vm1, %v3743_v48  ;;  %v3742_v56 = vadd.f32 %v3631_v2, %v3352_v18  ;;  %9196 = vmatprep.mubr.msk.f32.mxu1 %vm204_vm1, %v11179_v1  ;;  %v12941_v6 = vld [vmem:[#allocation81_spill] sm:$0xff]  ;;  %v1409_v52 = vadd.f32 %v12944_v0, %v973_v37  ;;  %v11219_v5 = vld [vmem:[#allocation2 + $0x30] sm:$0xff]  ;;  %v12951_v30 = vld [vmem:[#allocation6_spill] sm:$0xff] }
 0x1f9   : > { %9240 = vmatprep.mubr.msk.f32.mxu0 %vm204_vm1, %v11181_v42  ;;  %3857 = vst.msk [vmem:[#allocation2 + $0x89] sm:$0x1] %vm260_vm2, %v3839_v19  ;;  %v9160_v28 = vpop.f32.mrf.mxu0  ;;  %v3803_v38 = vld [vmem:[#allocation2 + $0x7a] sm:$0x1]  ;;  %9336 = vmatpush3.msk.msra.mxu0 %vm478_vm0, %v12941_v6  ;;  %v2187_v51 = vadd.f32 %v12945_v3, %v1797_v35  ;;  %v12946_v23 = vld [vmem:[#allocation49_spill] sm:$0xff]  ;;  %12948 = vst [vmem:[#allocation87_spill] sm:$0xff] %v11219_v5  ;;  %v3357_v48 = vadd.f32 %v11028_v62, %v2967_v63  ;;  %v11245_v6 = vpop.f32.mrf.mxu1 }
 0x1fa   : > { %3774 = vst.msk [vmem:[#allocation2 + $0xa9] sm:$0xff] %vm204_vm1, %v3742_v56  ;;  %v3745_v10 = vadd.f32 %v9160_v28, %v3355_v61  ;;  %9435 = vmatprep.subr.msk.mxu0 %vm478_vm0, %v11168_v47  ;;  %v2578_v20 = vadd.f32 %v12947_v46, %v12946_v23  ;;  %v11217_v40 = vld [vmem:[#allocation2 + $0x61] sm:$0xff]  ;;  %v12949_v43 = vld [vmem:[#allocation91_spill] sm:$0xff]  ;;  %v983_v8 = vadd.f32 %v12951_v30, %v12950_v59  ;;  %v12953_v2 = vld [vmem:[#allocation60_spill] sm:$0xff] }
 0x1fb   : > { %3821 = vst.msk [vmem:[#allocation2 + $0x78] sm:$0x1] %vm260_vm2, %v3803_v38  ;;  %v3641_v17 = vpop.f32.mrf.mxu0  ;;  %9197 = vmatmul.mubr.msk.f32.gmra.mxu1 %vm204_vm1, %v11200_v57  ;;  %v3840_v54 = vld [vmem:[#allocation2 + $0x9f] sm:$0x1]  ;;  %v2966_v18 = vadd.f32 %v12949_v43, %v2575_v55  ;;  %v1799_v33 = vadd.f32 %v12952_v16, %v1409_v52  ;;  %v2577_v62 = vadd.f32 %v12953_v2, %v2187_v51  ;;  %v11236_v61 = vld [vmem:[#allocation2 + $0x69] sm:$0xff]  ;;  %v12958_v35 = vld [vmem:[#allocation53_spill] sm:$0xff] }
 0x1fc   : > { %9241 = vmatmul.mubr.msk.f32.gmra.mxu0 %vm204_vm1, %v11202_v7  ;;  %3777 = vst.msk [vmem:[#allocation2 + $0xc9] sm:$0xff] %vm204_vm1, %v3745_v10  ;;  %v3744_v60 = vadd.f32 %v3641_v17, %v3354_v31  ;;  %9199 = vmatprep.mubr.msk.f32.mxu1 %vm204_vm1, %v11217_v40  ;;  %v12954_v19 = vld [vmem:[#allocation92_spill] sm:$0xff]  ;;  %v12956_v27 = vld [vmem:[#allocation22_spill] sm:$0xff]  ;;  %v12957_v37 = vld [vmem:[#allocation55_spill] sm:$0xff] }
 0x1fd   : > { %9243 = vmatprep.mubr.msk.f32.mxu0 %vm204_vm1, %v11219_v5  ;;  %3858 = vst.msk [vmem:[#allocation2 + $0xa1] sm:$0x1] %vm260_vm2, %v3840_v54  ;;  %v9163_v34 = vpop.f32.mrf.mxu0  ;;  %v3804_v22 = vld [vmem:[#allocation2 + $0x92] sm:$0x1]  ;;  %v2969_v15 = vadd.f32 %v12954_v19, %v2578_v20  ;;  %v3356_v26 = vadd.f32 %v11040_v41, %v2966_v18  ;;  %v11238_v56 = vld [vmem:[#allocation2 + $0x38] sm:$0xff]  ;;  %v1411_v29 = vadd.f32 %v12956_v27, %v983_v8  ;;  %v12959_v28 = vld [vmem:[#allocation62_spill] sm:$0xff]  ;;  %v11279_v19 = vpop.f32.mrf.mxu1 }
 0x1fe   : > { %3776 = vst.msk [vmem:[#allocation2 + $0xc1] sm:$0xff] %vm204_vm1, %v3744_v60  ;;  %v3747_v12 = vadd.f32 %v9163_v34, %v3357_v48  ;;  %12955 = vst [vmem:[#allocation13_spill] sm:$0xff] %v11238_v56  ;;  %v2189_v49 = vadd.f32 %v12957_v37, %v1799_v33  ;;  %v2580_v38 = vadd.f32 %v12959_v28, %v12958_v35  ;;  %v11251_v41 = vld [vmem:[#allocation2 + $0x79] sm:$0xff]  ;;  %v11253_v55 = vld [vmem:[#allocation2 + $0x48] sm:$0xff] }
 0x1ff   : > { %3822 = vst.msk [vmem:[#allocation2 + $0x90] sm:$0x1] %vm260_vm2, %v3804_v22  ;;  %v3651_v53 = vpop.f32.mrf.mxu0  ;;  %9200 = vmatmul.mubr.msk.f32.gmra.mxu1 %vm204_vm1, %v11236_v61  ;;  %12960 = vst [vmem:[#allocation16_spill] sm:$0xff] %v11253_v55  ;;  %v3841_v44 = vld [vmem:[#allocation2 + $0xb7] sm:$0x1]  ;;  %v12961_v63 = vld [vmem:[#allocation94_spill] sm:$0xff]  ;;  %v3359_v10 = vadd.f32 %v11054_v45, %v2969_v15 }
 0x200   : > { %9244 = vmatmul.mubr.msk.f32.gmra.mxu0 %vm204_vm1, %v11238_v56  ;;  %v2968_v31 = vadd.f32 %v12961_v63, %v2577_v62  ;;  %3779 = vst.msk [vmem:[#allocation2 + $0xe1] sm:$0xff] %vm204_vm1, %v3747_v12  ;;  %v3746_v0 = vadd.f32 %v3651_v53, %v3356_v26  ;;  %9202 = vmatprep.mubr.msk.f32.mxu1 %vm204_vm1, %v11251_v41  ;;  %v12962_v52 = vld [vmem:[#allocation3_spill] sm:$0xff]  ;;  %v12963_v3 = vld [vmem:[#allocation8_spill] sm:$0xff]  ;;  %v11270_v59 = vld [vmem:[#allocation2 + $0x81] sm:$0xff] }
 0x201   : > { %9246 = vmatprep.mubr.msk.f32.mxu0 %vm204_vm1, %v11253_v55  ;;  %3859 = vst.msk [vmem:[#allocation2 + $0xb9] sm:$0x1] %vm260_vm2, %v3841_v44  ;;  %v993_v51 = vadd.f32 %v12963_v3, %v12962_v52  ;;  %v12964_v23 = vld [vmem:[#allocation32_spill] sm:$0xff]  ;;  %v9166_v20 = vpop.f32.mrf.mxu0  ;;  %v3805_v17 = vld [vmem:[#allocation2 + $0xaa] sm:$0x1]  ;;  %v12966_v43 = vld [vmem:[#allocation95_spill] sm:$0xff] }
 0x202   : > { %v1801_v46 = vadd.f32 %v12964_v23, %v1411_v29  ;;  %v12965_v54 = vld [vmem:[#allocation64_spill] sm:$0xff]  ;;  %v2971_v18 = vadd.f32 %v12966_v43, %v2580_v38  ;;  %v3358_v48 = vadd.f32 %v11070_v39, %v2968_v31  ;;  %3778 = vst.msk [vmem:[#allocation2 + $0xd9] sm:$0xff] %vm204_vm1, %v3746_v0  ;;  %v3749_v60 = vadd.f32 %v9166_v20, %v3359_v10  ;;  %v11272_v30 = vld [vmem:[#allocation2 + $0x50] sm:$0xff]  ;;  %v12970_v22 = vld [vmem:[#allocation57_spill] sm:$0xff] }
 0x203   : > { %v2579_v45 = vadd.f32 %v12965_v54, %v2189_v49  ;;  %12967 = vst [vmem:[#allocation44_spill] sm:$0xff] %v11272_v30  ;;  %3823 = vst.msk [vmem:[#allocation2 + $0xa8] sm:$0x1] %vm260_vm2, %v3805_v17  ;;  %v12968_v8 = vld [vmem:[#allocation28_spill] sm:$0xff]  ;;  %v12969_v33 = vld [vmem:[#allocation59_spill] sm:$0xff]  ;;  %v3661_v15 = vpop.f32.mrf.mxu0  ;;  %9203 = vmatmul.mubr.msk.f32.gmra.mxu1 %vm204_vm1, %v11270_v59 }
 0x204   : > { %v1413_v16 = vadd.f32 %v12968_v8, %v993_v51  ;;  %v2191_v34 = vadd.f32 %v12969_v33, %v1801_v46  ;;  %v12971_v2 = vld [vmem:[#allocation66_spill] sm:$0xff]  ;;  %9247 = vmatmul.mubr.msk.f32.gmra.mxu0 %vm204_vm1, %v11272_v30  ;;  %v11285_v39 = vld [vmem:[#allocation2 + $0x91] sm:$0xff]  ;;  %v11287_v26 = vld [vmem:[#allocation2 + $0x60] sm:$0xff]  ;;  %v3361_v37 = vadd.f32 %v11086_v9, %v2971_v18  ;;  %3781 = vst.msk [vmem:[#allocation2 + $0xf9] sm:$0xff] %vm204_vm1, %v3749_v60  ;;  %v11313_v60 = vpop.f32.mrf.mxu1 }
 0x205   : > { %v2582_v62 = vadd.f32 %v12971_v2, %v12970_v22  ;;  %12972 = vst [vmem:[#allocation82_spill] sm:$0xff] %v11287_v26  ;;  %v3842_v12 = vld [vmem:[#allocation2 + $0xcf] sm:$0x1]  ;;  %v12973_v27 = vld [vmem:[#allocation97_spill] sm:$0xff]  ;;  %v3748_v49 = vadd.f32 %v3661_v15, %v3358_v48  ;;  %9205 = vmatprep.mubr.msk.f32.mxu1 %vm204_vm1, %v11285_v39  ;;  %9249 = vmatprep.mubr.msk.f32.mxu0 %vm204_vm1, %v11287_v26  ;;  %v9169_v63 = vpop.f32.mrf.mxu0  ;;  %v12977_v10 = vld [vmem:[#allocation68_spill] sm:$0xff] }
 0x206   : > { %v2970_v29 = vadd.f32 %v12973_v27, %v2579_v45  ;;  %3860 = vst.msk [vmem:[#allocation2 + $0xd1] sm:$0x1] %vm260_vm2, %v3842_v12  ;;  %v12974_v35 = vld [vmem:[#allocation5_spill] sm:$0xff]  ;;  %v12975_v28 = vld [vmem:[#allocation10_spill] sm:$0xff]  ;;  %v2581_v9 = vadd.f32 %v12977_v10, %v2191_v34  ;;  %v3751_v51 = vadd.f32 %v9169_v63, %v3361_v37  ;;  %v12980_v20 = vld [vmem:[#allocation31_spill] sm:$0xff] }
 0x207   : > { %v1003_v38 = vadd.f32 %v12975_v28, %v12974_v35  ;;  %v12976_v53 = vld [vmem:[#allocation34_spill] sm:$0xff]  ;;  %v3806_v31 = vld [vmem:[#allocation2 + $0xc2] sm:$0x1]  ;;  %3780 = vst.msk [vmem:[#allocation2 + $0xf1] sm:$0xff] %vm204_vm1, %v3748_v49  ;;  %v11304_v23 = vld [vmem:[#allocation2 + $0x99] sm:$0xff]  ;;  %v3671_v8 = vpop.f32.mrf.mxu0 }
 0x208   : > { %v1803_v44 = vadd.f32 %v12976_v53, %v1413_v16  ;;  %v12978_v0 = vld [vmem:[#allocation98_spill] sm:$0xff]  ;;  %v3360_v3 = vadd.f32 %v11111_v4, %v2970_v29  ;;  %3824 = vst.msk [vmem:[#allocation2 + $0xc0] sm:$0x1] %vm260_vm2, %v3806_v31  ;;  %v12981_v54 = vld [vmem:[#allocation63_spill] sm:$0xff]  ;;  %v12982_v43 = vld [vmem:[#allocation61_spill] sm:$0xff]  ;;  %9206 = vmatmul.mubr.msk.f32.gmra.mxu1 %vm204_vm1, %v11304_v23 }
 0x209   : > { %v2973_v52 = vadd.f32 %v12978_v0, %v2582_v62  ;;  %v11306_v46 = vld [vmem:[#allocation2 + $0x68] sm:$0xff]  ;;  %v1415_v17 = vadd.f32 %v12980_v20, %v1003_v38  ;;  %v11321_v16 = vld [vmem:[#allocation2 + $0x78] sm:$0xff]  ;;  %v3843_v33 = vld [vmem:[#allocation2 + $0xe7] sm:$0x1]  ;;  %3783 = vst.msk [vmem:[#allocation2 + $0x111] sm:$0xff] %vm204_vm1, %v3751_v51  ;;  %v9172_v49 = vpop.f32.mrf.mxu0 }
 0x20a   : > { %12979 = vst [vmem:[#allocation90_spill] sm:$0xff] %v11306_v46  ;;  %v2193_v45 = vadd.f32 %v12981_v54, %v1803_v44  ;;  %v12983_v18 = vld [vmem:[#allocation70_spill] sm:$0xff]  ;;  %9250 = vmatmul.mubr.msk.f32.gmra.mxu0 %vm204_vm1, %v11306_v46  ;;  %12984 = vst [vmem:[#allocation41_spill] sm:$0xff] %v11321_v16  ;;  %v12985_v34 = vld [vmem:[#allocation99_spill] sm:$0xff]  ;;  %v3750_v62 = vadd.f32 %v3671_v8, %v3360_v3  ;;  %v11347_v54 = vpop.f32.mrf.mxu1 }
 0x20b   : > { %v2584_v48 = vadd.f32 %v12983_v18, %v12982_v43  ;;  %v11319_v4 = vld [vmem:[#allocation2 + $0xa9] sm:$0xff]  ;;  %v2972_v22 = vadd.f32 %v12985_v34, %v2581_v9  ;;  %v3363_v2 = vadd.f32 %v11140_v14, %v2973_v52  ;;  %9252 = vmatprep.mubr.msk.f32.mxu0 %vm204_vm1, %v11321_v16  ;;  %3861 = vst.msk [vmem:[#allocation2 + $0xe9] sm:$0x1] %vm260_vm2, %v3843_v33  ;;  %v12988_v29 = vld [vmem:[#allocation36_spill] sm:$0xff]  ;;  %v11340_v10 = vld [vmem:[#allocation2 + $0x80] sm:$0xff] }
 0x20c   : > { %9208 = vmatprep.mubr.msk.f32.mxu1 %vm204_vm1, %v11319_v4  ;;  %v12986_v15 = vld [vmem:[#allocation7_spill] sm:$0xff]  ;;  %v1805_v37 = vadd.f32 %v12988_v29, %v1415_v17  ;;  %v3807_v35 = vld [vmem:[#allocation2 + $0xda] sm:$0x1]  ;;  %3782 = vst.msk [vmem:[#allocation2 + $0x109] sm:$0xff] %vm204_vm1, %v3750_v62  ;;  %12991 = vst [vmem:[#allocation40_spill] sm:$0xff] %v11340_v10 }
 0x20d   : > { %v12987_v12 = vld [vmem:[#allocation11_spill] sm:$0xff]  ;;  %v12989_v28 = vld [vmem:[#allocation72_spill] sm:$0xff]  ;;  %v3362_v44 = vadd.f32 %v11174_v58, %v2972_v22  ;;  %v3753_v63 = vadd.f32 %v9172_v49, %v3363_v2  ;;  %3825 = vst.msk [vmem:[#allocation2 + $0xd8] sm:$0x1] %vm260_vm2, %v3807_v35  ;;  %v12992_v9 = vld [vmem:[#allocation33_spill] sm:$0xff] }
 0x20e   : > { %v1013_v27 = vadd.f32 %v12987_v12, %v12986_v15  ;;  %v2583_v14 = vadd.f32 %v12989_v28, %v2193_v45  ;;  %v12990_v38 = vld [vmem:[#allocation100_spill] sm:$0xff]  ;;  %v12993_v52 = vld [vmem:[#allocation67_spill] sm:$0xff]  ;;  %v12994_v51 = vld [vmem:[#allocation65_spill] sm:$0xff]  ;;  %v3681_v45 = vpop.f32.mrf.mxu0  ;;  %9253 = vmatmul.mubr.msk.f32.gmra.mxu0 %vm204_vm1, %v11340_v10 }
 0x20f   : > { %v2975_v53 = vadd.f32 %v12990_v38, %v2584_v48  ;;  %v11338_v31 = vld [vmem:[#allocation2 + $0xb1] sm:$0xff]  ;;  %v2195_v3 = vadd.f32 %v12993_v52, %v1805_v37  ;;  %v12995_v20 = vld [vmem:[#allocation74_spill] sm:$0xff]  ;;  %v3844_v18 = vld [vmem:[#allocation2 + $0xff] sm:$0x1]  ;;  %3785 = vst.msk [vmem:[#allocation2 + $0x129] sm:$0xff] %vm204_vm1, %v3753_v63  ;;  %v3752_v34 = vadd.f32 %v3681_v45, %v3362_v44 }
 0x210   : > { %v1417_v0 = vadd.f32 %v12992_v9, %v1013_v27  ;;  %v2586_v17 = vadd.f32 %v12995_v20, %v12994_v51  ;;  %9209 = vmatmul.mubr.msk.f32.gmra.mxu1 %vm204_vm1, %v11338_v31  ;;  %v11353_v58 = vld [vmem:[#allocation2 + $0xc1] sm:$0xff]  ;;  %v11355_v43 = vld [vmem:[#allocation2 + $0x90] sm:$0xff]  ;;  %3862 = vst.msk [vmem:[#allocation2 + $0x101] sm:$0x1] %vm260_vm2, %v3844_v18  ;;  %v12999_v2 = vld [vmem:[#allocation12_spill] sm:$0xff]  ;;  %v9175_v27 = vpop.f32.mrf.mxu0  ;;  %v3321_v20 = vpop.f32.mrf.mxu1 }
 0x211   : > { %12996 = vst [vmem:[#allocation46_spill] sm:$0xff] %v11355_v43  ;;  %v12997_v48 = vld [vmem:[#allocation102_spill] sm:$0xff]  ;;  %v3365_v33 = vadd.f32 %v11211_v25, %v2975_v53  ;;  %9211 = vmatprep.mubr.msk.f32.mxu1 %vm204_vm1, %v11353_v58  ;;  %9255 = vmatprep.mubr.msk.f32.mxu0 %vm204_vm1, %v11355_v43  ;;  %v12998_v22 = vld [vmem:[#allocation9_spill] sm:$0xff]  ;;  %v3808_v29 = vld [vmem:[#allocation2 + $0xf2] sm:$0x1] }
 0x212   : > { %v2974_v8 = vadd.f32 %v12997_v48, %v2583_v14  ;;  %v1023_v62 = vadd.f32 %v12999_v2, %v12998_v22  ;;  %v13000_v15 = vld [vmem:[#allocation37_spill] sm:$0xff]  ;;  %v13001_v37 = vld [vmem:[#allocation76_spill] sm:$0xff]  ;;  %v13002_v49 = vld [vmem:[#allocation103_spill] sm:$0xff]  ;;  %3784 = vst.msk [vmem:[#allocation2 + $0x121] sm:$0xff] %vm204_vm1, %v3752_v34 }
 0x213   : > { %v1807_v12 = vadd.f32 %v13000_v15, %v1417_v0  ;;  %v2585_v25 = vadd.f32 %v13001_v37, %v2195_v3  ;;  %v2977_v35 = vadd.f32 %v13002_v49, %v2586_v17  ;;  %v3755_v14 = vadd.f32 %v9175_v27, %v3365_v33  ;;  %v11372_v38 = vld [vmem:[#allocation2 + $0xc9] sm:$0xff]  ;;  %v11374_v53 = vld [vmem:[#allocation2 + $0x98] sm:$0xff]  ;;  %3826 = vst.msk [vmem:[#allocation2 + $0xf0] sm:$0x1] %vm260_vm2, %v3808_v29  ;;  %v13006_v52 = vld [vmem:[#allocation69_spill] sm:$0xff]  ;;  %v3691_v17 = vpop.f32.mrf.mxu0 }
 0x214   : > { %v3364_v28 = vadd.f32 %v11245_v6, %v2974_v8  ;;  %13003 = vst [vmem:[#allocation83_spill] sm:$0xff] %v11374_v53  ;;  %v13004_v44 = vld [vmem:[#allocation35_spill] sm:$0xff]  ;;  %v13007_v51 = vld [vmem:[#allocation77_spill] sm:$0xff]  ;;  %9212 = vmatmul.mubr.msk.f32.gmra.mxu1 %vm204_vm1, %v11372_v38  ;;  %9256 = vmatmul.mubr.msk.f32.gmra.mxu0 %vm204_vm1, %v11374_v53  ;;  %v11387_v45 = vld [vmem:[#allocation2 + $0xa8] sm:$0xff] }
 0x215   : > { %v1419_v63 = vadd.f32 %v13004_v44, %v1023_v62  ;;  %v13005_v9 = vld [vmem:[#allocation71_spill] sm:$0xff]  ;;  %v2588_v3 = vadd.f32 %v13007_v51, %v13006_v52  ;;  %v11385_v6 = vld [vmem:[#allocation2 + $0xd9] sm:$0xff]  ;;  %13008 = vst [vmem:[#allocation93_spill] sm:$0xff] %v11387_v45  ;;  %v3367_v33 = vadd.f32 %v11279_v19, %v2977_v35  ;;  %3787 = vst.msk [vmem:[#allocation2 + $0x141] sm:$0xff] %vm204_vm1, %v3755_v14  ;;  %9258 = vmatprep.mubr.msk.f32.mxu0 %vm204_vm1, %v11387_v45  ;;  %v9178_v62 = vpop.f32.mrf.mxu0  ;;  %v9134_v52 = vpop.f32.mrf.mxu1 }
 0x216   : > { %v2197_v0 = vadd.f32 %v13005_v9, %v1807_v12  ;;  %v3845_v18 = vld [vmem:[#allocation2 + $0x117] sm:$0x1]  ;;  %v13009_v48 = vld [vmem:[#allocation105_spill] sm:$0xff]  ;;  %v3754_v34 = vadd.f32 %v3691_v17, %v3364_v28  ;;  %9214 = vmatprep.mubr.msk.f32.mxu1 %vm204_vm1, %v11385_v6  ;;  %v13010_v22 = vld [vmem:[#allocation38_spill] sm:$0xff] }
 0x217   : > { %v2976_v8 = vadd.f32 %v13009_v48, %v2585_v25  ;;  %3863 = vst.msk [vmem:[#allocation2 + $0x119] sm:$0x1] %vm260_vm2, %v3845_v18  ;;  %v1809_v2 = vadd.f32 %v13010_v22, %v1419_v63  ;;  %v3809_v15 = vld [vmem:[#allocation2 + $0x10a] sm:$0x1]  ;;  %v3757_v25 = vadd.f32 %v9178_v62, %v3367_v33  ;;  %v11402_v49 = vld [vmem:[#allocation2 + $0xe1] sm:$0xff]  ;;  %v11404_v35 = vld [vmem:[#allocation2 + $0xb0] sm:$0xff] }
 0x218   : > { %v13011_v12 = vld [vmem:[#allocation78_spill] sm:$0xff]  ;;  %3786 = vst.msk [vmem:[#allocation2 + $0x139] sm:$0xff] %vm204_vm1, %v3754_v34  ;;  %13013 = vst [vmem:[#allocation39_spill] sm:$0xff] %v11404_v35  ;;  %v13014_v28 = vld [vmem:[#allocation75_spill] sm:$0xff]  ;;  %9215 = vmatmul.mubr.msk.f32.gmra.mxu1 %vm204_vm1, %v11402_v49  ;;  %9259 = vmatmul.mubr.msk.f32.gmra.mxu0 %vm204_vm1, %v11404_v35 }
 0x219   : > { %v2587_v27 = vadd.f32 %v13011_v12, %v2197_v0  ;;  %v13012_v29 = vld [vmem:[#allocation106_spill] sm:$0xff]  ;;  %v3366_v19 = vadd.f32 %v11313_v60, %v2976_v8  ;;  %3827 = vst.msk [vmem:[#allocation2 + $0x108] sm:$0x1] %vm260_vm2, %v3809_v15  ;;  %v2199_v14 = vadd.f32 %v13014_v28, %v1809_v2  ;;  %v13015_v44 = vld [vmem:[#allocation73_spill] sm:$0xff]  ;;  %v13016_v63 = vld [vmem:[#allocation79_spill] sm:$0xff]  ;;  %v3701_v0 = vpop.f32.mrf.mxu0 }
 0x21a   : > { %v2979_v37 = vadd.f32 %v13012_v29, %v2588_v3  ;;  %v2590_v9 = vadd.f32 %v13016_v63, %v13015_v44  ;;  %v11414_v60 = vld [vmem:[#allocation2 + $0xf1] sm:$0xff]  ;;  %v11416_v51 = vld [vmem:[#allocation2 + $0xc0] sm:$0xff]  ;;  %v3846_v3 = vld [vmem:[#allocation2 + $0x12f] sm:$0x1]  ;;  %3789 = vst.msk [vmem:[#allocation2 + $0x159] sm:$0xff] %vm204_vm1, %v3757_v25  ;;  %v3331_v29 = vpop.f32.mrf.mxu1 }
 0x21b   : > { %13017 = vst [vmem:[#allocation21_spill] sm:$0xff] %v11416_v51  ;;  %v13018_v17 = vld [vmem:[#allocation107_spill] sm:$0xff]  ;;  %v3756_v8 = vadd.f32 %v3701_v0, %v3366_v19  ;;  %9217 = vmatprep.mubr.msk.f32.mxu1 %vm204_vm1, %v11414_v60  ;;  %9261 = vmatprep.mubr.msk.f32.mxu0 %vm204_vm1, %v11416_v51  ;;  %3864 = vst.msk [vmem:[#allocation2 + $0x131] sm:$0x1] %vm260_vm2, %v3846_v3  ;;  %v9181_v33 = vpop.f32.mrf.mxu0  ;;  %v3810_v34 = vld [vmem:[#allocation2 + $0x122] sm:$0x1] }
 0x21c   : > { %v2978_v18 = vadd.f32 %v13018_v17, %v2587_v27  ;;  %v3369_v48 = vadd.f32 %v11347_v54, %v2979_v37  ;;  %v13019_v22 = vld [vmem:[#allocation80_spill] sm:$0xff]  ;;  %v2981_v62 = vadd.f32 %v11023_v24, %v2590_v9  ;;  %v11431_v27 = vld [vmem:[#allocation2 + $0xc8] sm:$0xff]  ;;  %3828 = vst.msk [vmem:[#allocation2 + $0x120] sm:$0x1] %vm260_vm2, %v3810_v34  ;;  %v11454_v0 = vld [vmem:[#allocation2 + $0xe0] sm:$0xff] }
 0x21d   : > { %v2589_v2 = vadd.f32 %v13019_v22, %v2199_v14  ;;  %3788 = vst.msk [vmem:[#allocation2 + $0x151] sm:$0xff] %vm204_vm1, %v3756_v8  ;;  %v11429_v12 = vld [vmem:[#allocation2 + $0xf9] sm:$0xff]  ;;  %13020 = vst [vmem:[#allocation25_spill] sm:$0xff] %v11431_v27  ;;  %v3711_v37 = vpop.f32.mrf.mxu0  ;;  %9262 = vmatmul.mubr.msk.f32.gmra.mxu0 %vm204_vm1, %v11431_v27  ;;  %v11438_v19 = vld [vmem:[#allocation2 + $0x109] sm:$0xff] }
 0x21e   : > { %v3368_v15 = vadd.f32 %v3321_v20, %v2978_v18  ;;  %v3759_v54 = vadd.f32 %v9181_v33, %v3369_v48  ;;  %9218 = vmatmul.mubr.msk.f32.gmra.mxu1 %vm204_vm1, %v11429_v12  ;;  %v11440_v24 = vld [vmem:[#allocation2 + $0xd8] sm:$0xff]  ;;  %v3847_v20 = vld [vmem:[#allocation2 + $0x147] sm:$0x1]  ;;  %v3371_v28 = vadd.f32 %v9134_v52, %v2981_v62  ;;  %13022 = vst [vmem:[#allocation18_spill] sm:$0xff] %v11454_v0  ;;  %v11463_v18 = vld [vmem:[#allocation2 + $0xf0] sm:$0xff] }
 0x21f   : > { %13021 = vst [vmem:[#allocation14_spill] sm:$0xff] %v11440_v24  ;;  %v2980_v25 = vadd.f32 %v11030_v32, %v2589_v2  ;;  %9220 = vmatprep.mubr.msk.f32.mxu1 %vm204_vm1, %v11438_v19  ;;  %9264 = vmatprep.mubr.msk.f32.mxu0 %vm204_vm1, %v11440_v24  ;;  %3865 = vst.msk [vmem:[#allocation2 + $0x149] sm:$0x1] %vm260_vm2, %v3847_v20  ;;  %v9184_v44 = vpop.f32.mrf.mxu0  ;;  %v3811_v63 = vld [vmem:[#allocation2 + $0x13a] sm:$0x1]  ;;  %v11452_v52 = vld [vmem:[#allocation2 + $0x111] sm:$0xff] }
 0x220   : > { %3797 = vst.msk [vmem:[#allocation2 + $0x1a1] sm:$0xff] %vm204_vm1, %v3759_v54  ;;  %3791 = vst.msk [vmem:[#allocation2 + $0x171] sm:$0xff] %vm204_vm1, %v3759_v54  ;;  %v3758_v14 = vadd.f32 %v3711_v37, %v3368_v15  ;;  %v3761_v32 = vadd.f32 %v9184_v44, %v3371_v28  ;;  %v11461_v17 = vld [vmem:[#allocation2 + $0x121] sm:$0xff]  ;;  %v11472_v34 = vld [vmem:[#allocation2 + $0x129] sm:$0xff] }
 0x221   : > { %v3370_v9 = vadd.f32 %v3331_v29, %v2980_v25  ;;  %3829 = vst.msk [vmem:[#allocation2 + $0x138] sm:$0x1] %vm260_vm2, %v3811_v63  ;;  %v3721_v3 = vpop.f32.mrf.mxu0  ;;  %9265 = vmatmul.mubr.msk.f32.gmra.mxu0 %vm204_vm1, %v11454_v0  ;;  %13023 = vst [vmem:[#allocation48_spill] sm:$0xff] %v11463_v18  ;;  %v3848_v48 = vld [vmem:[#allocation2 + $0x15f] sm:$0x1]  ;;  %v11483_v62 = vld [vmem:[#allocation2 + $0x108] sm:$0xff] }
 0x222   : > { %3796 = vst.msk [vmem:[#allocation2 + $0x199] sm:$0xff] %vm204_vm1, %v3758_v14  ;;  %3790 = vst.msk [vmem:[#allocation2 + $0x169] sm:$0xff] %vm204_vm1, %v3758_v14  ;;  %9221 = vmatmul.mubr.msk.f32.gmra.mxu1 %vm204_vm1, %v11452_v52  ;;  %9267 = vmatprep.mubr.msk.f32.mxu0 %vm204_vm1, %v11463_v18  ;;  %v11474_v22 = vld [vmem:[#allocation2 + $0xf8] sm:$0xff]  ;;  %v11490_v29 = vld [vmem:[#allocation2 + $0x141] sm:$0xff] }
 0x223   : > { %3793 = vst.msk [vmem:[#allocation2 + $0x189] sm:$0xff] %vm204_vm1, %v3761_v32  ;;  %v3760_v8 = vadd.f32 %v3721_v3, %v3370_v9  ;;  %9223 = vmatprep.mubr.msk.f32.mxu1 %vm204_vm1, %v11461_v17  ;;  %13024 = vst [vmem:[#allocation84_spill] sm:$0xff] %v11474_v22  ;;  %v11481_v2 = vld [vmem:[#allocation2 + $0x139] sm:$0xff]  ;;  %v11492_v37 = vld [vmem:[#allocation2 + $0x110] sm:$0xff] }
 0x224   : > { %3866 = vst.msk [vmem:[#allocation2 + $0x161] sm:$0x1] %vm260_vm2, %v3848_v48  ;;  %v3812_v33 = vld [vmem:[#allocation2 + $0x152] sm:$0x1]  ;;  %13025 = vst [vmem:[#allocation96_spill] sm:$0xff] %v11483_v62  ;;  %v11501_v28 = vld [vmem:[#allocation2 + $0x120] sm:$0xff] }
 0x225   : > { %3792 = vst.msk [vmem:[#allocation2 + $0x181] sm:$0xff] %vm204_vm1, %v3760_v8  ;;  %9268 = vmatmul.mubr.msk.f32.gmra.mxu0 %vm204_vm1, %v11474_v22  ;;  %13026 = vst [vmem:[#allocation15_spill] sm:$0xff] %v11492_v37  ;;  %v11499_v25 = vld [vmem:[#allocation2 + $0x151] sm:$0xff]  ;;  %v11509_v63 = vld [vmem:[#allocation2 + $0x159] sm:$0xff] }
 0x226   : > { %3830 = vst.msk [vmem:[#allocation2 + $0x150] sm:$0x1] %vm260_vm2, %v3812_v33  ;;  %9224 = vmatmul.mubr.msk.f32.gmra.mxu1 %vm204_vm1, %v11472_v34  ;;  %9270 = vmatprep.mubr.msk.f32.mxu0 %vm204_vm1, %v11483_v62  ;;  %13027 = vst [vmem:[#allocation43_spill] sm:$0xff] %v11499_v25  ;;  %v11511_v9 = vld [vmem:[#allocation2 + $0x128] sm:$0xff]  ;;  %v11529_v33 = vld [vmem:[#allocation2 + $0x140] sm:$0xff] }
 0x227   : > { %v3849_v15 = vld [vmem:[#allocation2 + $0x177] sm:$0x1]  ;;  %9226 = vmatprep.mubr.msk.f32.mxu1 %vm204_vm1, %v11481_v2  ;;  %13028 = vst [vmem:[#allocation42_spill] sm:$0xff] %v11501_v28  ;;  %13029 = vst [vmem:[#allocation50_spill] sm:$0xff] %v11509_v63  ;;  %v3851_v48 = vld [vmem:[#allocation2 + $0x1a7] sm:$0x1] }
 0x228   : > { %3867 = vst.msk [vmem:[#allocation2 + $0x179] sm:$0x1] %vm260_vm2, %v3849_v15  ;;  %13030 = vst [vmem:[#allocation85_spill] sm:$0xff] %v11511_v9  ;;  %v11520_v3 = vld [vmem:[#allocation2 + $0x138] sm:$0xff] }
 0x229   : > { %v3813_v54 = vld [vmem:[#allocation2 + $0x16a] sm:$0x1]  ;;  %v3815_v20 = vld [vmem:[#allocation2 + $0x19a] sm:$0x1]  ;;  %9271 = vmatmul.mubr.msk.f32.gmra.mxu0 %vm204_vm1, %v11492_v37  ;;  %3869 = vst.msk [vmem:[#allocation2 + $0x1a9] sm:$0x1] %vm260_vm2, %v3851_v48 }
 0x22a   : > { %3831 = vst.msk [vmem:[#allocation2 + $0x168] sm:$0x1] %vm260_vm2, %v3813_v54  ;;  %9227 = vmatmul.mubr.msk.f32.gmra.mxu1 %vm204_vm1, %v11490_v29  ;;  %v3850_v14 = vld [vmem:[#allocation2 + $0x18f] sm:$0x1]  ;;  %3833 = vst.msk [vmem:[#allocation2 + $0x198] sm:$0x1] %vm260_vm2, %v3815_v20  ;;  %9273 = vmatprep.mubr.msk.f32.mxu0 %vm204_vm1, %v11501_v28 }
 0x22b   : > { %9229 = vmatprep.mubr.msk.f32.mxu1 %vm204_vm1, %v11499_v25  ;;  %3868 = vst.msk [vmem:[#allocation2 + $0x191] sm:$0x1] %vm260_vm2, %v3850_v14  ;;  %v11518_v32 = vld [vmem:[#allocation2 + $0x169] sm:$0xff]  ;;  %v11527_v8 = vld [vmem:[#allocation2 + $0x171] sm:$0xff]  ;;  %13033 = vst [vmem:[#allocation20_spill] sm:$0xff] %v11529_v33 }
 0x22c   : > { %v3814_v44 = vld [vmem:[#allocation2 + $0x182] sm:$0x1]  ;;  %13031 = vst [vmem:[#allocation23_spill] sm:$0xff] %v11518_v32  ;;  %13032 = vst [vmem:[#allocation27_spill] sm:$0xff] %v11527_v8  ;;  %v11540_v20 = vld [vmem:[#allocation2 + $0x158] sm:$0xff] }
 0x22d   : > { %3832 = vst.msk [vmem:[#allocation2 + $0x180] sm:$0x1] %vm260_vm2, %v3814_v44  ;;  %9274 = vmatmul.mubr.msk.f32.gmra.mxu0 %vm204_vm1, %v11511_v9  ;;  %v11535_v15 = vld [vmem:[#allocation2 + $0x150] sm:$0xff]  ;;  %v4585_v54 = vld [vmem:[#allocation2 + $0x2] sm:$0xff]  ;;  %v11545_v44 = vld [vmem:[%s12681_s2 + $0x18] sm:$0xf] }
 0x22e   : > { %9230 = vmatmul.mubr.msk.f32.gmra.mxu1 %vm204_vm1, %v11509_v63  ;;  %9276 = vmatprep.mubr.msk.f32.mxu0 %vm204_vm1, %v11520_v3  ;;  %13034 = vst [vmem:[#allocation52_spill] sm:$0xff] %v11535_v15  ;;  %v4586_v14 = vld [vmem:[#allocation2 + $0xa] sm:$0xff]  ;;  %v11587_v25 = vld [vmem:[%s12681_s2 + $0x1c] sm:$0xf] }
 0x22f   : > { %9232 = vmatprep.mubr.msk.f32.mxu1 %vm204_vm1, %v11518_v32  ;;  %v11564_v32 = vld [vmem:[#allocation2 + $0x22] sm:$0xff]  ;;  %v11582_v63 = vld [vmem:[#allocation2 + $0x4a] sm:$0xff] }
 0x231   : > { %9277 = vmatmul.mubr.msk.f32.gmra.mxu0 %vm204_vm1, %v11529_v33  ;;  %v11550_v48 = vld [vmem:[#allocation2 + $0x168] sm:$0xff] }
 0x232   : > { %9233 = vmatmul.mubr.msk.f32.gmra.mxu1 %vm204_vm1, %v11527_v8  ;;  %9279 = vmatprep.mubr.msk.f32.mxu0 %vm204_vm1, %v11535_v15  ;;  %v11562_v8 = vld [vmem:[#allocation2 + $0x170] sm:$0xff] }
 0x233   : > { %9287 = vmatprep.mubr.msk.f32.mxu1 %vm204_vm1, %v4585_v54  ;;  %v11556_v54 = vld [vmem:[#allocation2 + $0x1a] sm:$0xff] }
 0x235   : > { %9280 = vmatmul.mubr.msk.f32.gmra.mxu0 %vm204_vm1, %v11540_v20 }
 0x236   : > { %9288 = vmatmul.mubr.msk.f32.vlgmr.msra.gmra.mxu1 %vm204_vm1, %v4586_v14  ;;  %9282 = vmatprep.mubr.msk.f32.mxu0 %vm204_vm1, %v11550_v48  ;;  %v11576_v14 = vld [vmem:[#allocation2 + $0x3a] sm:$0xff] }
 0x237   : > { %9386 = vmatpush3.msk.msra.mxu1 %vm478_vm0, %v11106_v36  ;;  %9290 = vmatprep.mubr.msk.f32.mxu1 %vm204_vm1, %v11556_v54  ;;  %v11570_v36 = vld [vmem:[#allocation2 + $0x32] sm:$0xff] }
 0x238   : > { %9485 = vmatprep.subr.msk.mxu1 %vm478_vm0, %v11545_v44 }
 0x239   : > { %9283 = vmatmul.mubr.msk.f32.gmra.mxu0 %vm204_vm1, %v11562_v8 }
 0x23a   : > { %9291 = vmatmul.mubr.msk.f32.gmra.mxu1 %vm204_vm1, %v11564_v32  ;;  %9337 = vmatprep.mubr.msk.f32.mxu0 %vm204_vm1, %v11181_v42  ;;  %v11595_v42 = vld [vmem:[#allocation2 + $0x52] sm:$0xff] }
 0x23b   : > { %9293 = vmatprep.mubr.msk.f32.mxu1 %vm204_vm1, %v11570_v36 }
 0x23d   : > { %9338 = vmatmul.mubr.msk.f32.vlgmr.msra.gmra.mxu0 %vm204_vm1, %v11202_v7  ;;  %v11603_v7 = vld [vmem:[#allocation2 + $0x62] sm:$0xff] }
 0x23e   : > { %9294 = vmatmul.mubr.msk.f32.gmra.mxu1 %vm204_vm1, %v11576_v14  ;;  %9340 = vmatprep.mubr.msk.f32.mxu0 %vm204_vm1, %v11219_v5  ;;  %v11615_v5 = vld [vmem:[#allocation2 + $0x7a] sm:$0xff] }
 0x23f   : > { %9296 = vmatprep.mubr.msk.f32.mxu1 %vm204_vm1, %v11582_v63  ;;  %9436 = vmatpush3.msk.msra.mxu0 %vm478_vm0, %v11168_v47  ;;  %v11609_v47 = vld [vmem:[#allocation2 + $0x6a] sm:$0xff] }
 0x240   : > { %9535 = vmatprep.subr.msk.mxu0 %vm478_vm0, %v11587_v25 }
 0x241   : > { %9341 = vmatmul.mubr.msk.f32.gmra.mxu0 %vm204_vm1, %v11238_v56  ;;  %v11621_v56 = vld [vmem:[#allocation2 + $0x82] sm:$0xff] }
 0x242   : > { %9297 = vmatmul.mubr.msk.f32.gmra.mxu1 %vm204_vm1, %v11595_v42  ;;  %9343 = vmatprep.mubr.msk.f32.mxu0 %vm204_vm1, %v11253_v55  ;;  %v11627_v55 = vld [vmem:[#allocation2 + $0x92] sm:$0xff] }
 0x243   : > { %9299 = vmatprep.mubr.msk.f32.mxu1 %vm204_vm1, %v11603_v7 }
 0x245   : > { %9344 = vmatmul.mubr.msk.f32.gmra.mxu0 %vm204_vm1, %v11272_v30  ;;  %v11633_v30 = vld [vmem:[#allocation2 + $0x9a] sm:$0xff] }
 0x246   : > { %9300 = vmatmul.mubr.msk.f32.gmra.mxu1 %vm204_vm1, %v11609_v47  ;;  %9346 = vmatprep.mubr.msk.f32.mxu0 %vm204_vm1, %v11287_v26  ;;  %v11639_v26 = vld [vmem:[#allocation2 + $0xaa] sm:$0xff] }
 0x247   : > { %9302 = vmatprep.mubr.msk.f32.mxu1 %vm204_vm1, %v11615_v5 }
 0x249   : > { %9347 = vmatmul.mubr.msk.f32.gmra.mxu0 %vm204_vm1, %v11306_v46  ;;  %v11645_v46 = vld [vmem:[#allocation2 + $0xb2] sm:$0xff] }
 0x24a   : > { %9303 = vmatmul.mubr.msk.f32.gmra.mxu1 %vm204_vm1, %v11621_v56  ;;  %9349 = vmatprep.mubr.msk.f32.mxu0 %vm204_vm1, %v11321_v16  ;;  %v11651_v16 = vld [vmem:[#allocation2 + $0xc2] sm:$0xff] }
 0x24b   : > { %9305 = vmatprep.mubr.msk.f32.mxu1 %vm204_vm1, %v11627_v55 }
 0x24d   : > { %9350 = vmatmul.mubr.msk.f32.gmra.mxu0 %vm204_vm1, %v11340_v10  ;;  %v11657_v10 = vld [vmem:[#allocation2 + $0xca] sm:$0xff] }
 0x24e   : > { %9306 = vmatmul.mubr.msk.f32.gmra.mxu1 %vm204_vm1, %v11633_v30  ;;  %9352 = vmatprep.mubr.msk.f32.mxu0 %vm204_vm1, %v11355_v43  ;;  %v11663_v43 = vld [vmem:[#allocation2 + $0xda] sm:$0xff] }
 0x24f   : > { %9308 = vmatprep.mubr.msk.f32.mxu1 %vm204_vm1, %v11639_v26 }
 0x251   : > { %9353 = vmatmul.mubr.msk.f32.gmra.mxu0 %vm204_vm1, %v11374_v53  ;;  %v11669_v53 = vld [vmem:[#allocation2 + $0xe2] sm:$0xff] }
 0x252   : > { %9309 = vmatmul.mubr.msk.f32.gmra.mxu1 %vm204_vm1, %v11645_v46  ;;  %9355 = vmatprep.mubr.msk.f32.mxu0 %vm204_vm1, %v11387_v45  ;;  %v11675_v45 = vld [vmem:[#allocation2 + $0xf2] sm:$0xff] }
 0x253   : > { %9311 = vmatprep.mubr.msk.f32.mxu1 %vm204_vm1, %v11651_v16 }
 0x255   : > { %9356 = vmatmul.mubr.msk.f32.gmra.mxu0 %vm204_vm1, %v11404_v35  ;;  %v11681_v35 = vld [vmem:[#allocation2 + $0xfa] sm:$0xff] }
 0x256   : > { %9312 = vmatmul.mubr.msk.f32.gmra.mxu1 %vm204_vm1, %v11657_v10  ;;  %9358 = vmatprep.mubr.msk.f32.mxu0 %vm204_vm1, %v11416_v51  ;;  %v11687_v51 = vld [vmem:[#allocation2 + $0x10a] sm:$0xff] }
 0x257   : > { %9314 = vmatprep.mubr.msk.f32.mxu1 %vm204_vm1, %v11663_v43 }
 0x259   : > { %9359 = vmatmul.mubr.msk.f32.gmra.mxu0 %vm204_vm1, %v11431_v27  ;;  %v11693_v27 = vld [vmem:[#allocation2 + $0x112] sm:$0xff] }
 0x25a   : > { %9315 = vmatmul.mubr.msk.f32.gmra.mxu1 %vm204_vm1, %v11669_v53  ;;  %9361 = vmatprep.mubr.msk.f32.mxu0 %vm204_vm1, %v11440_v24  ;;  %v11699_v24 = vld [vmem:[#allocation2 + $0x122] sm:$0xff] }
 0x25b   : > { %9317 = vmatprep.mubr.msk.f32.mxu1 %vm204_vm1, %v11675_v45 }
 0x25d   : > { %9362 = vmatmul.mubr.msk.f32.gmra.mxu0 %vm204_vm1, %v11454_v0  ;;  %v11705_v0 = vld [vmem:[#allocation2 + $0x12a] sm:$0xff] }
 0x25e   : > { %9318 = vmatmul.mubr.msk.f32.gmra.mxu1 %vm204_vm1, %v11681_v35  ;;  %9364 = vmatprep.mubr.msk.f32.mxu0 %vm204_vm1, %v11463_v18  ;;  %v11711_v18 = vld [vmem:[#allocation2 + $0x13a] sm:$0xff] }
 0x25f   : > { %9320 = vmatprep.mubr.msk.f32.mxu1 %vm204_vm1, %v11687_v51 }
 0x261   : > { %9365 = vmatmul.mubr.msk.f32.gmra.mxu0 %vm204_vm1, %v11474_v22  ;;  %v11717_v22 = vld [vmem:[#allocation2 + $0x142] sm:$0xff] }
 0x262   : > { %9321 = vmatmul.mubr.msk.f32.gmra.mxu1 %vm204_vm1, %v11693_v27  ;;  %9367 = vmatprep.mubr.msk.f32.mxu0 %vm204_vm1, %v11483_v62  ;;  %v11723_v62 = vld [vmem:[#allocation2 + $0x152] sm:$0xff] }
 0x263   : > { %9323 = vmatprep.mubr.msk.f32.mxu1 %vm204_vm1, %v11699_v24 }
 0x265   : > { %9368 = vmatmul.mubr.msk.f32.gmra.mxu0 %vm204_vm1, %v11492_v37  ;;  %v11729_v37 = vld [vmem:[#allocation2 + $0x15a] sm:$0xff] }
 0x266   : > { %9324 = vmatmul.mubr.msk.f32.gmra.mxu1 %vm204_vm1, %v11705_v0  ;;  %9370 = vmatprep.mubr.msk.f32.mxu0 %vm204_vm1, %v11501_v28  ;;  %v11735_v28 = vld [vmem:[#allocation2 + $0x16a] sm:$0xff] }
 0x267   : > { %9326 = vmatprep.mubr.msk.f32.mxu1 %vm204_vm1, %v11711_v18 }
 0x269   : > { %9371 = vmatmul.mubr.msk.f32.gmra.mxu0 %vm204_vm1, %v11511_v9  ;;  %v11741_v9 = vld [vmem:[#allocation2 + $0x172] sm:$0xff] }
 0x26a   : > { %9327 = vmatmul.mubr.msk.f32.gmra.mxu1 %vm204_vm1, %v11717_v22  ;;  %9373 = vmatprep.mubr.msk.f32.mxu0 %vm204_vm1, %v11520_v3 }
 0x26b   : > { %9329 = vmatprep.mubr.msk.f32.mxu1 %vm204_vm1, %v11723_v62 }
 0x26d   : > { %9374 = vmatmul.mubr.msk.f32.gmra.mxu0 %vm204_vm1, %v11529_v33  ;;  %v11754_v33 = vld [vmem:[%s12681_s2 + $0x20] sm:$0xf] }
 0x26e   : > { %9330 = vmatmul.mubr.msk.f32.gmra.mxu1 %vm204_vm1, %v11729_v37  ;;  %9376 = vmatprep.mubr.msk.f32.mxu0 %vm204_vm1, %v11535_v15  ;;  %v11760_v15 = vld [vmem:[#allocation2 + $0x180] sm:$0xff] }
 0x26f   : > { %9332 = vmatprep.mubr.msk.f32.mxu1 %vm204_vm1, %v11735_v28 }
 0x271   : > { %9377 = vmatmul.mubr.msk.f32.gmra.mxu0 %vm204_vm1, %v11540_v20 }
 0x272   : > { %9333 = vmatmul.mubr.msk.f32.gmra.mxu1 %vm204_vm1, %v11741_v9  ;;  %9379 = vmatprep.mubr.msk.f32.mxu0 %vm204_vm1, %v11550_v48 }
 0x273   : > { %9387 = vmatprep.mubr.msk.f32.mxu1 %vm204_vm1, %v11114_v50  ;;  %v11770_v50 = vld [vmem:[#allocation2 + $0x188] sm:$0xff] }
 0x275   : > { %9380 = vmatmul.mubr.msk.f32.gmra.mxu0 %vm204_vm1, %v11562_v8 }
 0x276   : > { %9388 = vmatmul.mubr.msk.f32.vlgmr.msra.gmra.mxu1 %vm204_vm1, %v11135_v11  ;;  %9382 = vmatprep.mubr.msk.f32.mxu0 %vm204_vm1, %v11760_v15  ;;  %v13035_v11 = vld [vmem:[#allocation43_spill] sm:$0xff] }
 0x277   : > { %9486 = vmatpush3.msk.msra.mxu1 %vm478_vm0, %v11545_v44  ;;  %9390 = vmatprep.mubr.msk.f32.mxu1 %vm204_vm1, %v11144_v13  ;;  %v13036_v13 = vld [vmem:[#allocation50_spill] sm:$0xff] }
 0x278   : > { %9585 = vmatprep.subr.msk.mxu1 %vm478_vm0, %v11754_v33 }
 0x279   : > { %9383 = vmatmul.mubr.msk.f32.gmra.mxu0 %vm204_vm1, %v11770_v50 }
 0x27a   : > { %9391 = vmatmul.mubr.msk.f32.gmra.mxu1 %vm204_vm1, %v11162_v21  ;;  %9437 = vmatprep.mubr.msk.f32.mxu0 %vm204_vm1, %v11556_v54  ;;  %v13037_v21 = vld [vmem:[#allocation23_spill] sm:$0xff] }
 0x27b   : > { %9393 = vmatprep.mubr.msk.f32.mxu1 %vm204_vm1, %v11179_v1  ;;  %v13038_v1 = vld [vmem:[#allocation27_spill] sm:$0xff] }
 0x27d   : > { %9438 = vmatmul.mubr.msk.f32.vlgmr.msra.gmra.mxu0 %vm204_vm1, %v11564_v32 }
 0x27e   : > { %9394 = vmatmul.mubr.msk.f32.gmra.mxu1 %vm204_vm1, %v11200_v57  ;;  %9440 = vmatprep.mubr.msk.f32.mxu0 %vm204_vm1, %v11570_v36  ;;  %v11882_v57 = vld [vmem:[#allocation2 + $0x181] sm:$0xff] }
 0x27f   : > { %9396 = vmatprep.mubr.msk.f32.mxu1 %vm204_vm1, %v11217_v40  ;;  %9536 = vmatpush3.msk.msra.mxu0 %vm478_vm0, %v11587_v25  ;;  %v11888_v40 = vld [vmem:[#allocation2 + $0x189] sm:$0xff]  ;;  %v13049_v25 = vld [vmem:[#allocation93_spill] sm:$0xff] }
 0x281   : > { %9441 = vmatmul.mubr.msk.f32.gmra.mxu0 %vm204_vm1, %v11576_v14 }
 0x282   : > { %9397 = vmatmul.mubr.msk.f32.gmra.mxu1 %vm204_vm1, %v11236_v61  ;;  %9443 = vmatprep.mubr.msk.f32.mxu0 %vm204_vm1, %v11582_v63  ;;  %v13039_v61 = vld [vmem:[#allocation87_spill] sm:$0xff] }
 0x283   : > { %9399 = vmatprep.mubr.msk.f32.mxu1 %vm204_vm1, %v11251_v41  ;;  %v13040_v41 = vld [vmem:[#allocation13_spill] sm:$0xff] }
 0x285   : > { %9444 = vmatmul.mubr.msk.f32.gmra.mxu0 %vm204_vm1, %v11595_v42 }
 0x286   : > { %9400 = vmatmul.mubr.msk.f32.gmra.mxu1 %vm204_vm1, %v11270_v59  ;;  %9446 = vmatprep.mubr.msk.f32.mxu0 %vm204_vm1, %v11603_v7  ;;  %v13041_v59 = vld [vmem:[#allocation16_spill] sm:$0xff] }
 0x287   : > { %9402 = vmatprep.mubr.msk.f32.mxu1 %vm204_vm1, %v11285_v39  ;;  %v11910_v39 = vld [vmem:[#allocation2 + $0x18a] sm:$0xff] }
 0x289   : > { %9447 = vmatmul.mubr.msk.f32.gmra.mxu0 %vm204_vm1, %v11609_v47  ;;  %v13050_v47 = vld [vmem:[#allocation39_spill] sm:$0xff] }
 0x28a   : > { %9403 = vmatmul.mubr.msk.f32.gmra.mxu1 %vm204_vm1, %v11304_v23  ;;  %9449 = vmatprep.mubr.msk.f32.mxu0 %vm204_vm1, %v11615_v5  ;;  %v13042_v23 = vld [vmem:[#allocation44_spill] sm:$0xff] }
 0x28b   : > { %9405 = vmatprep.mubr.msk.f32.mxu1 %vm204_vm1, %v11319_v4  ;;  %v13043_v4 = vld [vmem:[#allocation82_spill] sm:$0xff] }
 0x28d   : > { %9450 = vmatmul.mubr.msk.f32.gmra.mxu0 %vm204_vm1, %v11621_v56 }
 0x28e   : > { %9406 = vmatmul.mubr.msk.f32.gmra.mxu1 %vm204_vm1, %v11338_v31  ;;  %9452 = vmatprep.mubr.msk.f32.mxu0 %vm204_vm1, %v11627_v55  ;;  %v11902_v55 = vld [vmem:[#allocation2 + $0x182] sm:$0xff]  ;;  %v6536_v31 = vld [vmem:[#allocation2 + $0x39] sm:$0xff] }
 0x28f   : > { %9408 = vmatprep.mubr.msk.f32.mxu1 %vm204_vm1, %v11353_v58 }
 0x291   : > { %9453 = vmatmul.mubr.msk.f32.gmra.mxu0 %vm204_vm1, %v11633_v30 }
 0x292   : > { %9409 = vmatmul.mubr.msk.f32.gmra.mxu1 %vm204_vm1, %v11372_v38  ;;  %9455 = vmatprep.mubr.msk.f32.mxu0 %vm204_vm1, %v11639_v26  ;;  %v6537_v38 = vld [vmem:[#allocation2 + $0x49] sm:$0xff] }
 0x293   : > { %9411 = vmatprep.mubr.msk.f32.mxu1 %vm204_vm1, %v11385_v6  ;;  %v13045_v6 = vld [vmem:[#allocation41_spill] sm:$0xff] }
 0x295   : > { %9456 = vmatmul.mubr.msk.f32.gmra.mxu0 %vm204_vm1, %v11645_v46  ;;  %v6535_v46 = vld [vmem:[#allocation2 + $0x31] sm:$0xff] }
 0x296   : > { %9412 = vmatmul.mubr.msk.f32.gmra.mxu1 %vm204_vm1, %v11402_v49  ;;  %9458 = vmatprep.mubr.msk.f32.mxu0 %vm204_vm1, %v11651_v16 }
 0x297   : > { %9414 = vmatprep.mubr.msk.f32.mxu1 %vm204_vm1, %v11414_v60  ;;  %v6538_v60 = vld [vmem:[#allocation2 + $0x51] sm:$0xff] }
 0x299   : > { %9459 = vmatmul.mubr.msk.f32.gmra.mxu0 %vm204_vm1, %v11657_v10 }
 0x29a   : > { %9415 = vmatmul.mubr.msk.f32.gmra.mxu1 %vm204_vm1, %v11429_v12  ;;  %9461 = vmatprep.mubr.msk.f32.mxu0 %vm204_vm1, %v11663_v43  ;;  %v13044_v43 = vld [vmem:[#allocation90_spill] sm:$0xff] }
 0x29b   : > { %9417 = vmatprep.mubr.msk.f32.mxu1 %vm204_vm1, %v11438_v19  ;;  %v6539_v19 = vld [vmem:[#allocation2 + $0x61] sm:$0xff] }
 0x29d   : > { %9462 = vmatmul.mubr.msk.f32.gmra.mxu0 %vm204_vm1, %v11669_v53 }
 0x29e   : > { %9418 = vmatmul.mubr.msk.f32.gmra.mxu1 %vm204_vm1, %v11452_v52  ;;  %9464 = vmatprep.mubr.msk.f32.mxu0 %vm204_vm1, %v11675_v45  ;;  %v13047_v52 = vld [vmem:[#allocation46_spill] sm:$0xff] }
 0x29f   : > { %9420 = vmatprep.mubr.msk.f32.mxu1 %vm204_vm1, %v11461_v17 }
 0x2a1   : > { %9465 = vmatmul.mubr.msk.f32.gmra.mxu0 %vm204_vm1, %v11681_v35 }
 0x2a2   : > { %9421 = vmatmul.mubr.msk.f32.gmra.mxu1 %vm204_vm1, %v11472_v34  ;;  %9467 = vmatprep.mubr.msk.f32.mxu0 %vm204_vm1, %v11687_v51  ;;  %v6540_v34 = vld [vmem:[#allocation2 + $0x69] sm:$0xff] }
 0x2a3   : > { %9423 = vmatprep.mubr.msk.f32.mxu1 %vm204_vm1, %v11481_v2 }
 0x2a5   : > { %9468 = vmatmul.mubr.msk.f32.gmra.mxu0 %vm204_vm1, %v11693_v27  ;;  %v13046_v27 = vld [vmem:[#allocation40_spill] sm:$0xff] }
 0x2a6   : > { %9424 = vmatmul.mubr.msk.f32.gmra.mxu1 %vm204_vm1, %v11490_v29  ;;  %9470 = vmatprep.mubr.msk.f32.mxu0 %vm204_vm1, %v11699_v24  ;;  %v6541_v29 = vld [vmem:[#allocation2 + $0x79] sm:$0xff] }
 0x2a7   : > { %9426 = vmatprep.mubr.msk.f32.mxu1 %vm204_vm1, %v13035_v11  ;;  %v6543_v11 = vld [vmem:[#allocation2 + $0x91] sm:$0xff] }
 0x2a9   : > { %9471 = vmatmul.mubr.msk.f32.gmra.mxu0 %vm204_vm1, %v11705_v0 }
 0x2aa   : > { %9427 = vmatmul.mubr.msk.f32.gmra.mxu1 %vm204_vm1, %v13036_v13  ;;  %9473 = vmatprep.mubr.msk.f32.mxu0 %vm204_vm1, %v11711_v18 }
 0x2ab   : > { %9429 = vmatprep.mubr.msk.f32.mxu1 %vm204_vm1, %v13037_v21  ;;  %v13051_v21 = vld [vmem:[#allocation21_spill] sm:$0xff] }
 0x2ad   : > { %9474 = vmatmul.mubr.msk.f32.gmra.mxu0 %vm204_vm1, %v11717_v22 }
 0x2ae   : > { %9430 = vmatmul.mubr.msk.f32.gmra.mxu1 %vm204_vm1, %v13038_v1  ;;  %9476 = vmatprep.mubr.msk.f32.mxu0 %vm204_vm1, %v11723_v62  ;;  %v13048_v62 = vld [vmem:[#allocation83_spill] sm:$0xff] }
 0x2af   : > { %9432 = vmatprep.mubr.msk.f32.mxu1 %vm204_vm1, %v11882_v57  ;;  %v9189_v56 = vpop.f32.mrf.mxu1 }
 0x2b1   : > { %9477 = vmatmul.mubr.msk.f32.gmra.mxu0 %vm204_vm1, %v11729_v37  ;;  %v4102_v30 = vpop.f32.mrf.mxu1 }
 0x2b2   : > { %9433 = vmatmul.mubr.msk.f32.gmra.mxu1 %vm204_vm1, %v11888_v40  ;;  %9479 = vmatprep.mubr.msk.f32.mxu0 %vm204_vm1, %v11735_v28 }
 0x2b3   : > { %9487 = vmatprep.mubr.msk.f32.mxu1 %vm204_vm1, %v13039_v61  ;;  %v9192_v26 = vpop.f32.mrf.mxu1 }
 0x2b5   : > { %9480 = vmatmul.mubr.msk.f32.gmra.mxu0 %vm204_vm1, %v11741_v9  ;;  %v4112_v16 = vpop.f32.mrf.mxu1 }
 0x2b6   : > { %9488 = vmatmul.mubr.msk.f32.vlgmr.msra.gmra.mxu1 %vm204_vm1, %v13040_v41  ;;  %9482 = vmatprep.mubr.msk.f32.mxu0 %vm204_vm1, %v11902_v55  ;;  %v6544_v41 = vld [vmem:[#allocation2 + $0x99] sm:$0xff] }
 0x2b7   : > { %9586 = vmatpush3.msk.msra.mxu1 %vm478_vm0, %v11754_v33  ;;  %9490 = vmatprep.mubr.msk.f32.mxu1 %vm204_vm1, %v13041_v59  ;;  %v9195_v10 = vpop.f32.mrf.mxu1  ;;  %v6542_v33 = vld [vmem:[#allocation2 + $0x81] sm:$0xff] }
 0x2b8   : > { %v9239_v58 = vpop.f32.mrf.mxu0 }
 0x2b9   : > { %9483 = vmatmul.mubr.msk.f32.gmra.mxu0 %vm204_vm1, %v11910_v39  ;;  %v11922_v53 = vadd.f32 %v9239_v58, %v9189_v56  ;;  %v4122_v45 = vpop.f32.mrf.mxu1  ;;  %v6546_v58 = vld [vmem:[#allocation2 + $0xb1] sm:$0xff] }
 0x2ba   : > { %9491 = vmatmul.mubr.msk.f32.gmra.mxu1 %vm204_vm1, %v13042_v23  ;;  %9537 = vmatprep.mubr.msk.f32.mxu0 %vm204_vm1, %v6535_v46  ;;  %v4426_v49 = vpop.f32.mrf.mxu0  ;;  %v6545_v23 = vld [vmem:[#allocation2 + $0xa9] sm:$0xff] }
 0x2bb   : > { %9493 = vmatprep.mubr.msk.f32.mxu1 %vm204_vm1, %v13043_v4  ;;  %v11927_v35 = vadd.f32 %v4426_v49, %v4102_v30  ;;  %v9198_v51 = vpop.f32.mrf.mxu1  ;;  %v13053_v4 = vld [vmem:[#allocation14_spill] sm:$0xff] }
 0x2bc   : > { %v9242_v12 = vpop.f32.mrf.mxu0 }
 0x2bd   : > { %9538 = vmatmul.mubr.msk.f32.vlgmr.msra.gmra.mxu0 %vm204_vm1, %v6536_v31  ;;  %v11932_v24 = vadd.f32 %v9242_v12, %v9192_v26  ;;  %v4132_v0 = vpop.f32.mrf.mxu1  ;;  %v13052_v26 = vld [vmem:[#allocation25_spill] sm:$0xff] }
 0x2be   : > { %9494 = vmatmul.mubr.msk.f32.gmra.mxu1 %vm204_vm1, %v13044_v43  ;;  %9540 = vmatprep.mubr.msk.f32.mxu0 %vm204_vm1, %v6537_v38  ;;  %v4436_v17 = vpop.f32.mrf.mxu0 }
 0x2bf   : > { %9496 = vmatprep.mubr.msk.f32.mxu1 %vm204_vm1, %v13045_v6  ;;  %v11937_v18 = vadd.f32 %v4436_v17, %v4112_v16  ;;  %v9201_v22 = vpop.f32.mrf.mxu1  ;;  %v13054_v6 = vld [vmem:[#allocation18_spill] sm:$0xff]  ;;  %v13056_v17 = vld [vmem:[#allocation84_spill] sm:$0xff] }
 0x2c0   : > { %v9245_v2 = vpop.f32.mrf.mxu0 }
 0x2c1   : > { %9541 = vmatmul.mubr.msk.f32.gmra.mxu0 %vm204_vm1, %v6538_v60  ;;  %v11942_v37 = vadd.f32 %v9245_v2, %v9195_v10  ;;  %v4142_v28 = vpop.f32.mrf.mxu1  ;;  %v13055_v60 = vld [vmem:[#allocation48_spill] sm:$0xff] }
 0x2c2   : > { %9497 = vmatmul.mubr.msk.f32.gmra.mxu1 %vm204_vm1, %v13046_v27  ;;  %9543 = vmatprep.mubr.msk.f32.mxu0 %vm204_vm1, %v6539_v19  ;;  %v4446_v9 = vpop.f32.mrf.mxu0  ;;  %v6548_v19 = vld [vmem:[#allocation2 + $0xc9] sm:$0xff]  ;;  %v13057_v2 = vld [vmem:[#allocation96_spill] sm:$0xff] }
 0x2c3   : > { %9499 = vmatprep.mubr.msk.f32.mxu1 %vm204_vm1, %v13047_v52  ;;  %v11947_v32 = vadd.f32 %v4446_v9, %v4122_v45  ;;  %v9204_v44 = vpop.f32.mrf.mxu1  ;;  %v6547_v45 = vld [vmem:[#allocation2 + $0xc1] sm:$0xff] }
 0x2c4   : > { %v9248_v54 = vpop.f32.mrf.mxu0 }
 0x2c5   : > { %9544 = vmatmul.mubr.msk.f32.gmra.mxu0 %vm204_vm1, %v6540_v34  ;;  %v11952_v13 = vadd.f32 %v9248_v54, %v9198_v51  ;;  %v4152_v1 = vpop.f32.mrf.mxu1  ;;  %v6549_v34 = vld [vmem:[#allocation2 + $0xd9] sm:$0xff]  ;;  %v6551_v54 = vld [vmem:[#allocation2 + $0xf1] sm:$0xff] }
 0x2c6   : > { %9500 = vmatmul.mubr.msk.f32.gmra.mxu1 %vm204_vm1, %v13048_v62  ;;  %9546 = vmatprep.mubr.msk.f32.mxu0 %vm204_vm1, %v6541_v29  ;;  %v4456_v61 = vpop.f32.mrf.mxu0 }
 0x2c7   : > { %9502 = vmatprep.mubr.msk.f32.mxu1 %vm204_vm1, %v13049_v25  ;;  %v11957_v56 = vadd.f32 %v4456_v61, %v4132_v0 }
 0x2c8   : > { %v9207_v59 = vpop.f32.mrf.mxu1 }
 0x2c9   : > { %9547 = vmatmul.mubr.msk.f32.gmra.mxu0 %vm204_vm1, %v6542_v33 }
 0x2ca   : > { %9503 = vmatmul.mubr.msk.f32.gmra.mxu1 %vm204_vm1, %v13050_v47  ;;  %9549 = vmatprep.mubr.msk.f32.mxu0 %vm204_vm1, %v6543_v11  ;;  %v9251_v30 = vpop.f32.mrf.mxu0  ;;  %v4162_v16 = vpop.f32.mrf.mxu1  ;;  %v13059_v11 = vld [vmem:[#allocation42_spill] sm:$0xff] }
 0x2cb   : > { %9505 = vmatprep.mubr.msk.f32.mxu1 %vm204_vm1, %v13051_v21  ;;  %v11962_v46 = vadd.f32 %v9251_v30, %v9201_v22 }
 0x2cc   : > { %v4466_v31 = vpop.f32.mrf.mxu0 }
 0x2cd   : > { %9550 = vmatmul.mubr.msk.f32.gmra.mxu0 %vm204_vm1, %v6544_v41  ;;  %v11967_v10 = vadd.f32 %v4466_v31, %v4142_v28  ;;  %v6550_v28 = vld [vmem:[#allocation2 + $0xe1] sm:$0xff]  ;;  %v6552_v41 = vld [vmem:[#allocation2 + $0xf9] sm:$0xff] }
 0x2ce   : > { %9506 = vmatmul.mubr.msk.f32.gmra.mxu1 %vm204_vm1, %v13052_v26  ;;  %9552 = vmatprep.mubr.msk.f32.mxu0 %vm204_vm1, %v6545_v23  ;;  %v9254_v38 = vpop.f32.mrf.mxu0  ;;  %v13060_v26 = vld [vmem:[#allocation85_spill] sm:$0xff]  ;;  %v6553_v23 = vld [vmem:[#allocation2 + $0x109] sm:$0xff] }
 0x2cf   : > { %9508 = vmatprep.mubr.msk.f32.mxu1 %vm204_vm1, %v13053_v4  ;;  %v11972_v49 = vadd.f32 %v9254_v38, %v9204_v44  ;;  %v13058_v44 = vld [vmem:[#allocation15_spill] sm:$0xff] }
 0x2d0   : > { %v9210_v43 = vpop.f32.mrf.mxu1  ;;  %v4476_v12 = vpop.f32.mrf.mxu0 }
 0x2d1   : > { %9553 = vmatmul.mubr.msk.f32.gmra.mxu0 %vm204_vm1, %v6546_v58  ;;  %v11977_v27 = vadd.f32 %v4476_v12, %v4152_v1  ;;  %v13062_v12 = vld [vmem:[#allocation52_spill] sm:$0xff] }
 0x2d2   : > { %9509 = vmatmul.mubr.msk.f32.gmra.mxu1 %vm204_vm1, %v13054_v6  ;;  %9555 = vmatprep.mubr.msk.f32.mxu0 %vm204_vm1, %v6547_v45  ;;  %v4172_v51 = vpop.f32.mrf.mxu1  ;;  %v13061_v45 = vld [vmem:[#allocation20_spill] sm:$0xff] }
 0x2d3   : > { %9511 = vmatprep.mubr.msk.f32.mxu1 %vm204_vm1, %v13055_v60  ;;  %v6555_v60 = vld [vmem:[#allocation2 + $0x121] sm:$0xff] }
 0x2d4   : > { %v9213_v52 = vpop.f32.mrf.mxu1  ;;  %v9257_v0 = vpop.f32.mrf.mxu0 }
 0x2d5   : > { %9556 = vmatmul.mubr.msk.f32.gmra.mxu0 %vm204_vm1, %v6548_v19  ;;  %v11982_v22 = vadd.f32 %v9257_v0, %v9207_v59  ;;  %v6556_v0 = vld [vmem:[#allocation2 + $0x129] sm:$0xff] }
 0x2d6   : > { %9512 = vmatmul.mubr.msk.f32.gmra.mxu1 %vm204_vm1, %v13056_v17  ;;  %9558 = vmatprep.mubr.msk.f32.mxu0 %vm204_vm1, %v6549_v34  ;;  %v4182_v62 = vpop.f32.mrf.mxu1  ;;  %v4486_v29 = vpop.f32.mrf.mxu0 }
 0x2d7   : > { %9514 = vmatprep.mubr.msk.f32.mxu1 %vm204_vm1, %v13057_v2  ;;  %v11987_v25 = vadd.f32 %v4486_v29, %v4162_v16  ;;  %v6557_v2 = vld [vmem:[#allocation2 + $0x139] sm:$0xff] }
 0x2d8   : > { %v9216_v9 = vpop.f32.mrf.mxu1  ;;  %v9260_v33 = vpop.f32.mrf.mxu0 }
 0x2d9   : > { %9559 = vmatmul.mubr.msk.f32.gmra.mxu0 %vm204_vm1, %v6550_v28  ;;  %v11992_v47 = vadd.f32 %v9260_v33, %v9210_v43  ;;  %v6554_v43 = vld [vmem:[#allocation2 + $0x111] sm:$0xff]  ;;  %v6558_v33 = vld [vmem:[#allocation2 + $0x141] sm:$0xff] }
 0x2da   : > { %9515 = vmatmul.mubr.msk.f32.gmra.mxu1 %vm204_vm1, %v13058_v44  ;;  %9561 = vmatprep.mubr.msk.f32.mxu0 %vm204_vm1, %v6551_v54  ;;  %v4192_v21 = vpop.f32.mrf.mxu1  ;;  %v4496_v1 = vpop.f32.mrf.mxu0 }
 0x2db   : > { %9517 = vmatprep.mubr.msk.f32.mxu1 %vm204_vm1, %v13059_v11  ;;  %v11997_v61 = vadd.f32 %v4496_v1, %v4172_v51 }
 0x2dd   : > { %v9263_v30 = vpop.f32.mrf.mxu0  ;;  %9562 = vmatmul.mubr.msk.f32.gmra.mxu0 %vm204_vm1, %v6552_v41  ;;  %v6560_v41 = vld [vmem:[#allocation2 + $0x159] sm:$0xff] }
 0x2de   : > { %v9219_v59 = vpop.f32.mrf.mxu1  ;;  %9518 = vmatmul.mubr.msk.f32.gmra.mxu1 %vm204_vm1, %v13060_v26  ;;  %v12002_v4 = vadd.f32 %v9263_v30, %v9213_v52  ;;  %9564 = vmatprep.mubr.msk.f32.mxu0 %vm204_vm1, %v6553_v23  ;;  %v6561_v26 = vld [vmem:[#allocation2 + $0x169] sm:$0xff] }
 0x2df   : > { %9520 = vmatprep.mubr.msk.f32.mxu1 %vm204_vm1, %v11520_v3  ;;  %v4506_v31 = vpop.f32.mrf.mxu0 }
 0x2e0   : > { %v4202_v16 = vpop.f32.mrf.mxu1  ;;  %v12007_v58 = vadd.f32 %v4506_v31, %v4182_v62 }
 0x2e1   : > { %v9266_v6 = vpop.f32.mrf.mxu0  ;;  %9565 = vmatmul.mubr.msk.f32.gmra.mxu0 %vm204_vm1, %v6554_v43  ;;  %v6176_v43 = vld [vmem:[#allocation2 + $0x1a0] sm:$0xff] }
 0x2e2   : > { %v9222_v38 = vpop.f32.mrf.mxu1  ;;  %9521 = vmatmul.mubr.msk.f32.gmra.mxu1 %vm204_vm1, %v13061_v45  ;;  %v12012_v51 = vadd.f32 %v9266_v6, %v9216_v9  ;;  %9567 = vmatprep.mubr.msk.f32.mxu0 %vm204_vm1, %v6555_v60 }
 0x2e3   : > { %9523 = vmatprep.mubr.msk.f32.mxu1 %vm204_vm1, %v13062_v12  ;;  %v4516_v19 = vpop.f32.mrf.mxu0 }
 0x2e4   : > { %v4212_v3 = vpop.f32.mrf.mxu1  ;;  %v12017_v52 = vadd.f32 %v4516_v19, %v4192_v21 }
 0x2e5   : > { %v9269_v34 = vpop.f32.mrf.mxu0  ;;  %9568 = vmatmul.mubr.msk.f32.gmra.mxu0 %vm204_vm1, %v6556_v0 }
 0x2e6   : > { %v9225_v17 = vpop.f32.mrf.mxu1  ;;  %9524 = vmatmul.mubr.msk.f32.gmra.mxu1 %vm204_vm1, %v11540_v20  ;;  %v12022_v62 = vadd.f32 %v9269_v34, %v9219_v59  ;;  %9570 = vmatprep.mubr.msk.f32.mxu0 %vm204_vm1, %v6557_v2  ;;  %v6559_v20 = vld [vmem:[#allocation2 + $0x151] sm:$0xff] }
 0x2e7   : > { %9526 = vmatprep.mubr.msk.f32.mxu1 %vm204_vm1, %v11550_v48  ;;  %v4526_v28 = vpop.f32.mrf.mxu0 }
 0x2e8   : > { %v4222_v29 = vpop.f32.mrf.mxu1  ;;  %v12027_v9 = vadd.f32 %v4526_v28, %v4202_v16 }
 0x2e9   : > { %v9272_v54 = vpop.f32.mrf.mxu0  ;;  %9571 = vmatmul.mubr.msk.f32.gmra.mxu0 %vm204_vm1, %v6558_v33 }
 0x2ea   : > { %v9228_v44 = vpop.f32.mrf.mxu1  ;;  %9527 = vmatmul.mubr.msk.f32.gmra.mxu1 %vm204_vm1, %v11562_v8  ;;  %v12032_v11 = vadd.f32 %v9272_v54, %v9222_v38  ;;  %9573 = vmatprep.mubr.msk.f32.mxu0 %vm204_vm1, %v6559_v20  ;;  %v6175_v8 = vld [vmem:[#allocation2 + $0x198] sm:$0xff] }
 0x2eb   : > { %9529 = vmatprep.mubr.msk.f32.mxu1 %vm204_vm1, %v11760_v15  ;;  %v4536_v21 = vpop.f32.mrf.mxu0  ;;  %v6562_v38 = vld [vmem:[#allocation2 + $0x171] sm:$0xff] }
 0x2ec   : > { %v4232_v48 = vpop.f32.mrf.mxu1  ;;  %v12037_v1 = vadd.f32 %v4536_v21, %v4212_v3 }
 0x2ed   : > { %v9275_v30 = vpop.f32.mrf.mxu0  ;;  %9574 = vmatmul.mubr.msk.f32.gmra.mxu0 %vm204_vm1, %v6560_v41 }
 0x2ee   : > { %v9231_v59 = vpop.f32.mrf.mxu1  ;;  %9530 = vmatmul.mubr.msk.f32.gmra.mxu1 %vm204_vm1, %v11770_v50  ;;  %v12042_v23 = vadd.f32 %v9275_v30, %v9225_v17  ;;  %9576 = vmatprep.mubr.msk.f32.mxu0 %vm204_vm1, %v6561_v26  ;;  %v6565_v17 = vld [vmem:[#allocation2 + $0x199] sm:$0xff]  ;;  %v6932_v26 = vld [vmem:[#allocation2 + $0x82] sm:$0xff] }
 0x2ef   : > { %9532 = vmatprep.mubr.msk.f32.mxu1 %vm204_vm1, %v6175_v8  ;;  %v4546_v16 = vpop.f32.mrf.mxu0 }
 0x2f0   : > { %v4242_v15 = vpop.f32.mrf.mxu1  ;;  %v12046_v31 = vadd.f32 %v4546_v16, %v4222_v29  ;;  %v6933_v16 = vld [vmem:[#allocation2 + $0x92] sm:$0xff] }
 0x2f1   : > { %v9278_v45 = vpop.f32.mrf.mxu0  ;;  %9577 = vmatmul.mubr.msk.f32.gmra.mxu0 %vm204_vm1, %v6562_v38 }
 0x2f2   : > { %v9234_v6 = vpop.f32.mrf.mxu1  ;;  %9533 = vmatmul.mubr.msk.f32.gmra.mxu1 %vm204_vm1, %v6176_v43  ;;  %v12050_v50 = vadd.f32 %v9278_v45, %v9228_v44  ;;  %9579 = vmatprep.mubr.msk.f32.mxu0 %vm204_vm1, %v11882_v57 }
 0x2f3   : > { %9587 = vmatprep.mubr.msk.f32.mxu1 %vm204_vm1, %v11570_v36  ;;  %v4556_v12 = vpop.f32.mrf.mxu0 }
 0x2f4   : > { %v4252_v60 = vpop.f32.mrf.mxu1  ;;  %v12056_v3 = vadd.f32 %v4556_v12, %v4232_v48  ;;  %v6930_v48 = vld [vmem:[#allocation2 + $0x6a] sm:$0xff] }
 0x2f5   : > { %v9281_v19 = vpop.f32.mrf.mxu0  ;;  %9580 = vmatmul.mubr.msk.f32.gmra.mxu0 %vm204_vm1, %v11888_v40  ;;  %v6566_v40 = vld [vmem:[#allocation2 + $0x1a1] sm:$0xff] }
 0x2f6   : > { %v9289_v0 = vpop.f32.mrf.mxu1  ;;  %9588 = vmatmul.mubr.msk.f32.vlgmr.msra.gmra.mxu1 %vm204_vm1, %v11576_v14  ;;  %v12062_v34 = vadd.f32 %v9281_v19, %v9231_v59  ;;  %9582 = vmatprep.mubr.msk.f32.mxu0 %vm204_vm1, %v6565_v17  ;;  %v6935_v19 = vld [vmem:[#allocation2 + $0xaa] sm:$0xff] }
 0x2f7   : > { %v4944_v57 = vadd.f32 %v9289_v0, %v11922_v53  ;;  %9590 = vmatprep.mubr.msk.f32.mxu1 %vm204_vm1, %v11582_v63  ;;  %v4566_v36 = vpop.f32.mrf.mxu0 }
 0x2f8   : > { %v4784_v2 = vpop.f32.mrf.mxu1  ;;  %v12068_v29 = vadd.f32 %v4566_v36, %v4242_v15 }
 0x2f9   : > { %v4943_v28 = vadd.f32 %v4784_v2, %v11927_v35  ;;  %v9284_v33 = vpop.f32.mrf.mxu0  ;;  %9583 = vmatmul.mubr.msk.f32.gmra.mxu0 %vm204_vm1, %v6566_v40 }
 0x2fa   : > { %v9292_v44 = vpop.f32.mrf.mxu1  ;;  %9591 = vmatmul.mubr.msk.f32.gmra.mxu1 %vm204_vm1, %v11595_v42  ;;  %v12074_v14 = vadd.f32 %v9284_v33, %v9234_v6  ;;  %v6937_v33 = vld [vmem:[#allocation2 + $0xc2] sm:$0xff] }
 0x2fb   : > { %v4946_v53 = vadd.f32 %v9292_v44, %v11932_v24  ;;  %9593 = vmatprep.mubr.msk.f32.mxu1 %vm204_vm1, %v11603_v7  ;;  %v4576_v63 = vpop.f32.mrf.mxu0 }
 0x2fc   : > { %v4794_v54 = vpop.f32.mrf.mxu1  ;;  %v12079_v20 = vadd.f32 %v4576_v63, %v4252_v60 }
 0x2fd   : > { %v4945_v35 = vadd.f32 %v4794_v54, %v11937_v18  ;;  %v9339_v41 = vpop.f32.mrf.mxu0 }
 0x2fe   : > { %v9295_v21 = vpop.f32.mrf.mxu1  ;;  %9594 = vmatmul.mubr.msk.f32.gmra.mxu1 %vm204_vm1, %v6930_v48  ;;  %v12084_v59 = vadd.f32 %v9339_v41, %v4944_v57  ;;  %v6939_v41 = vld [vmem:[#allocation2 + $0xda] sm:$0xff] }
 0x2ff   : > { %v4948_v42 = vadd.f32 %v9295_v21, %v11942_v37  ;;  %9596 = vmatprep.mubr.msk.f32.mxu1 %vm204_vm1, %v11615_v5  ;;  %v5174_v7 = vpop.f32.mrf.mxu0 }
 0x300   : > { %v4804_v24 = vpop.f32.mrf.mxu1  ;;  %v12089_v8 = vadd.f32 %v5174_v7, %v4943_v28 }
 0x301   : > { %v4947_v30 = vadd.f32 %v4804_v24, %v11947_v32  ;;  %v9342_v15 = vpop.f32.mrf.mxu0  ;;  %v6934_v32 = vld [vmem:[#allocation2 + $0x9a] sm:$0xff] }
 0x302   : > { %v9298_v18 = vpop.f32.mrf.mxu1  ;;  %9597 = vmatmul.mubr.msk.f32.gmra.mxu1 %vm204_vm1, %v6932_v26  ;;  %v12093_v37 = vadd.f32 %v9342_v15, %v4946_v53 }
 0x303   : > { %v4950_v43 = vadd.f32 %v9298_v18, %v11952_v13  ;;  %9599 = vmatprep.mubr.msk.f32.mxu1 %vm204_vm1, %v6933_v16  ;;  %v5184_v5 = vpop.f32.mrf.mxu0  ;;  %v6941_v16 = vld [vmem:[#allocation2 + $0xf2] sm:$0xff] }
 0x304   : > { %v4814_v38 = vpop.f32.mrf.mxu1  ;;  %v12097_v45 = vadd.f32 %v5184_v5, %v4945_v35 }
 0x305   : > { %v4949_v6 = vadd.f32 %v4814_v38, %v11957_v56  ;;  %v9345_v12 = vpop.f32.mrf.mxu0  ;;  %v6936_v56 = vld [vmem:[#allocation2 + $0xb2] sm:$0xff] }
 0x306   : > { %v9301_v60 = vpop.f32.mrf.mxu1  ;;  %9600 = vmatmul.mubr.msk.f32.gmra.mxu1 %vm204_vm1, %v6934_v32  ;;  %v12101_v17 = vadd.f32 %v9345_v12, %v4948_v42 }
 0x307   : > { %v4952_v0 = vadd.f32 %v9301_v60, %v11962_v46  ;;  %9602 = vmatprep.mubr.msk.f32.mxu1 %vm204_vm1, %v6935_v19  ;;  %v5194_v57 = vpop.f32.mrf.mxu0  ;;  %v6943_v19 = vld [vmem:[#allocation2 + $0x10a] sm:$0xff] }
 0x308   : > { %v4824_v13 = vpop.f32.mrf.mxu1  ;;  %v12105_v2 = vadd.f32 %v5194_v57, %v4947_v30 }
 0x309   : > { %v4951_v36 = vadd.f32 %v4824_v13, %v11967_v10  ;;  %v9348_v40 = vpop.f32.mrf.mxu0  ;;  %v6938_v10 = vld [vmem:[#allocation2 + $0xca] sm:$0xff] }
 0x30a   : > { %v9304_v28 = vpop.f32.mrf.mxu1  ;;  %9603 = vmatmul.mubr.msk.f32.gmra.mxu1 %vm204_vm1, %v6936_v56  ;;  %v12109_v53 = vadd.f32 %v9348_v40, %v4950_v43 }
 0x30b   : > { %v4954_v44 = vadd.f32 %v9304_v28, %v11972_v49  ;;  %9605 = vmatprep.mubr.msk.f32.mxu1 %vm204_vm1, %v6937_v33  ;;  %v5204_v63 = vpop.f32.mrf.mxu0  ;;  %v6945_v33 = vld [vmem:[#allocation2 + $0x122] sm:$0xff] }
 0x30c   : > { %v4834_v46 = vpop.f32.mrf.mxu1  ;;  %v12113_v35 = vadd.f32 %v5204_v63, %v4949_v6 }
 0x30d   : > { %v4953_v54 = vadd.f32 %v4834_v46, %v11977_v27  ;;  %v9351_v21 = vpop.f32.mrf.mxu0  ;;  %v6940_v27 = vld [vmem:[#allocation2 + $0xe2] sm:$0xff] }
 0x30e   : > { %v9307_v48 = vpop.f32.mrf.mxu1  ;;  %9606 = vmatmul.mubr.msk.f32.gmra.mxu1 %vm204_vm1, %v6938_v10  ;;  %v12117_v24 = vadd.f32 %v9351_v21, %v4952_v0 }
 0x30f   : > { %v4956_v42 = vadd.f32 %v9307_v48, %v11982_v22  ;;  %9608 = vmatprep.mubr.msk.f32.mxu1 %vm204_vm1, %v6939_v41  ;;  %v5214_v7 = vpop.f32.mrf.mxu0  ;;  %v6947_v41 = vld [vmem:[#allocation2 + $0x13a] sm:$0xff] }
 0x310   : > { %v4844_v49 = vpop.f32.mrf.mxu1  ;;  %v12121_v26 = vadd.f32 %v5214_v7, %v4951_v36 }
 0x311   : > { %v4955_v30 = vadd.f32 %v4844_v49, %v11987_v25  ;;  %v9354_v15 = vpop.f32.mrf.mxu0  ;;  %v6942_v25 = vld [vmem:[#allocation2 + $0xfa] sm:$0xff] }
 0x312   : > { %v9310_v18 = vpop.f32.mrf.mxu1  ;;  %9609 = vmatmul.mubr.msk.f32.gmra.mxu1 %vm204_vm1, %v6940_v27  ;;  %v12125_v38 = vadd.f32 %v9354_v15, %v4954_v44 }
 0x313   : > { %v4958_v43 = vadd.f32 %v9310_v18, %v11992_v47  ;;  %9611 = vmatprep.mubr.msk.f32.mxu1 %vm204_vm1, %v6941_v16  ;;  %v5224_v5 = vpop.f32.mrf.mxu0  ;;  %v6949_v16 = vld [vmem:[#allocation2 + $0x152] sm:$0xff] }
 0x314   : > { %v4854_v22 = vpop.f32.mrf.mxu1  ;;  %v12129_v32 = vadd.f32 %v5224_v5, %v4953_v54 }
 0x315   : > { %v4957_v6 = vadd.f32 %v4854_v22, %v11997_v61  ;;  %v9357_v12 = vpop.f32.mrf.mxu0  ;;  %v6944_v61 = vld [vmem:[#allocation2 + $0x112] sm:$0xff] }
 0x316   : > { %v9313_v60 = vpop.f32.mrf.mxu1  ;;  %9612 = vmatmul.mubr.msk.f32.gmra.mxu1 %vm204_vm1, %v6942_v25  ;;  %v12133_v13 = vadd.f32 %v9357_v12, %v4956_v42 }
 0x317   : > { %v4960_v0 = vadd.f32 %v9313_v60, %v12002_v4  ;;  %9614 = vmatprep.mubr.msk.f32.mxu1 %vm204_vm1, %v6943_v19  ;;  %v5234_v57 = vpop.f32.mrf.mxu0  ;;  %v6951_v19 = vld [vmem:[#allocation2 + $0x16a] sm:$0xff] }
 0x318   : > { %v4864_v47 = vpop.f32.mrf.mxu1  ;;  %v12137_v56 = vadd.f32 %v5234_v57, %v4955_v30 }
 0x319   : > { %v4959_v36 = vadd.f32 %v4864_v47, %v12007_v58  ;;  %v9360_v40 = vpop.f32.mrf.mxu0  ;;  %v6946_v58 = vld [vmem:[#allocation2 + $0x12a] sm:$0xff] }
 0x31a   : > { %v9316_v28 = vpop.f32.mrf.mxu1  ;;  %9615 = vmatmul.mubr.msk.f32.gmra.mxu1 %vm204_vm1, %v6944_v61  ;;  %v12141_v46 = vadd.f32 %v9360_v40, %v4958_v43 }
 0x31b   : > { %v4962_v44 = vadd.f32 %v9316_v28, %v12012_v51  ;;  %9617 = vmatprep.mubr.msk.f32.mxu1 %vm204_vm1, %v6945_v33  ;;  %v5244_v63 = vpop.f32.mrf.mxu0 }
 0x31c   : > { %v4874_v4 = vpop.f32.mrf.mxu1  ;;  %v12145_v10 = vadd.f32 %v5244_v63, %v4957_v6 }
 0x31d   : > { %v4961_v54 = vadd.f32 %v4874_v4, %v12017_v52  ;;  %v9363_v21 = vpop.f32.mrf.mxu0  ;;  %v6948_v52 = vld [vmem:[#allocation2 + $0x142] sm:$0xff] }
 0x31e   : > { %v9319_v48 = vpop.f32.mrf.mxu1  ;;  %9618 = vmatmul.mubr.msk.f32.gmra.mxu1 %vm204_vm1, %v6946_v58  ;;  %v12149_v49 = vadd.f32 %v9363_v21, %v4960_v0 }
 0x31f   : > { %v4964_v42 = vadd.f32 %v9319_v48, %v12022_v62  ;;  %9620 = vmatprep.mubr.msk.f32.mxu1 %vm204_vm1, %v6947_v41  ;;  %v5254_v7 = vpop.f32.mrf.mxu0  ;;  %v6955_v48 = vld [vmem:[#allocation2 + $0x19a] sm:$0xff] }
 0x320   : > { %v4884_v51 = vpop.f32.mrf.mxu1  ;;  %v12153_v27 = vadd.f32 %v5254_v7, %v4959_v36 }
 0x321   : > { %v4963_v30 = vadd.f32 %v4884_v51, %v12027_v9  ;;  %v9366_v15 = vpop.f32.mrf.mxu0  ;;  %v6950_v9 = vld [vmem:[#allocation2 + $0x15a] sm:$0xff] }
 0x322   : > { %v9322_v18 = vpop.f32.mrf.mxu1  ;;  %9621 = vmatmul.mubr.msk.f32.gmra.mxu1 %vm204_vm1, %v6948_v52  ;;  %v12157_v22 = vadd.f32 %v9366_v15, %v4962_v44 }
 0x323   : > { %v4966_v43 = vadd.f32 %v9322_v18, %v12032_v11  ;;  %9623 = vmatprep.mubr.msk.f32.mxu1 %vm204_vm1, %v6949_v16  ;;  %v5264_v5 = vpop.f32.mrf.mxu0 }
 0x324   : > { %v4894_v62 = vpop.f32.mrf.mxu1  ;;  %v12161_v25 = vadd.f32 %v5264_v5, %v4961_v54 }
 0x325   : > { %v4965_v6 = vadd.f32 %v4894_v62, %v12037_v1  ;;  %v9369_v12 = vpop.f32.mrf.mxu0  ;;  %v6952_v1 = vld [vmem:[#allocation2 + $0x172] sm:$0xff] }
 0x326   : > { %v9325_v60 = vpop.f32.mrf.mxu1  ;;  %9624 = vmatmul.mubr.msk.f32.gmra.mxu1 %vm204_vm1, %v6950_v9  ;;  %v12165_v47 = vadd.f32 %v9369_v12, %v4964_v42 }
 0x327   : > { %v4968_v0 = vadd.f32 %v9325_v60, %v12042_v23  ;;  %9626 = vmatprep.mubr.msk.f32.mxu1 %vm204_vm1, %v6951_v19  ;;  %v5274_v57 = vpop.f32.mrf.mxu0 }
 0x328   : > { %v4904_v11 = vpop.f32.mrf.mxu1  ;;  %v12169_v61 = vadd.f32 %v5274_v57, %v4963_v30 }
 0x329   : > { %v4967_v36 = vadd.f32 %v4904_v11, %v12046_v31  ;;  %v9372_v40 = vpop.f32.mrf.mxu0 }
 0x32a   : > { %v9328_v28 = vpop.f32.mrf.mxu1  ;;  %9627 = vmatmul.mubr.msk.f32.gmra.mxu1 %vm204_vm1, %v6952_v1  ;;  %v12173_v44 = vadd.f32 %v9372_v40, %v4966_v43 }
 0x32b   : > { %v4970_v33 = vadd.f32 %v9328_v28, %v12050_v50  ;;  %9629 = vmatprep.mubr.msk.f32.mxu1 %vm204_vm1, %v11902_v55  ;;  %v5284_v4 = vpop.f32.mrf.mxu0 }
 0x32c   : > { %v4914_v23 = vpop.f32.mrf.mxu1  ;;  %v12178_v54 = vadd.f32 %v5284_v4, %v4965_v6 }
 0x32d   : > { %v4969_v63 = vadd.f32 %v4914_v23, %v12056_v3  ;;  %v9375_v58 = vpop.f32.mrf.mxu0  ;;  %v6956_v3 = vld [vmem:[#allocation2 + $0x1a2] sm:$0xff] }
 0x32e   : > { %v9331_v31 = vpop.f32.mrf.mxu1  ;;  %9630 = vmatmul.mubr.msk.f32.gmra.mxu1 %vm204_vm1, %v11910_v39  ;;  %v12183_v50 = vadd.f32 %v9375_v58, %v4968_v0 }
 0x32f   : > { %v4972_v21 = vadd.f32 %v9331_v31, %v12062_v34  ;;  %9632 = vmatprep.mubr.msk.f32.mxu1 %vm204_vm1, %v6955_v48  ;;  %v5294_v55 = vpop.f32.mrf.mxu0 }
 0x330   : > { %v4924_v41 = vpop.f32.mrf.mxu1  ;;  %v12187_v51 = vadd.f32 %v5294_v55, %v4967_v36 }
 0x331   : > { %v4971_v42 = vadd.f32 %v4924_v41, %v12068_v29  ;;  %v9378_v30 = vpop.f32.mrf.mxu0 }
 0x332   : > { %v9334_v7 = vpop.f32.mrf.mxu1  ;;  %9633 = vmatmul.mubr.msk.f32.gmra.mxu1 %vm204_vm1, %v6956_v3  ;;  %v12191_v52 = vadd.f32 %v9378_v30, %v4970_v33 }
 0x333   : > { %v4974_v39 = vadd.f32 %v9334_v7, %v12074_v14  ;;  %v5304_v18 = vpop.f32.mrf.mxu0 }
 0x334   : > { %v4934_v34 = vpop.f32.mrf.mxu1  ;;  %v12194_v16 = vadd.f32 %v5304_v18, %v4969_v63 }
 0x335   : > { %v4973_v15 = vadd.f32 %v4934_v34, %v12079_v20  ;;  %v9381_v43 = vpop.f32.mrf.mxu0 }
 0x336   : > { %v9389_v62 = vpop.f32.mrf.mxu1  ;;  %v12196_v29 = vadd.f32 %v9381_v43, %v4972_v21 }
 0x337   : > { %v5724_v5 = vadd.f32 %v9389_v62, %v12084_v59  ;;  %v5314_v6 = vpop.f32.mrf.mxu0 }
 0x338   : > { %v5564_v9 = vpop.f32.mrf.mxu1  ;;  %v12199_v60 = vadd.f32 %v5314_v6, %v4971_v42 }
 0x339   : > { %v5723_v14 = vadd.f32 %v5564_v9, %v12089_v8  ;;  %v9384_v12 = vpop.f32.mrf.mxu0 }
 0x33a   : > { %v9392_v19 = vpop.f32.mrf.mxu1  ;;  %v12202_v0 = vadd.f32 %v9384_v12, %v4974_v39 }
 0x33b   : > { %v12205_v20 = vadd.f32 %v9392_v19, %v12093_v37  ;;  %v5324_v11 = vpop.f32.mrf.mxu0 }
 0x33c   : > { %v5574_v57 = vpop.f32.mrf.mxu1  ;;  %v12207_v36 = vadd.f32 %v5324_v11, %v4973_v15 }
 0x33d   : > { %v12210_v1 = vadd.f32 %v5574_v57, %v12097_v45  ;;  %v9439_v28 = vpop.f32.mrf.mxu0 }
 0x33e   : > { %v9395_v59 = vpop.f32.mrf.mxu1  ;;  %v12213_v33 = vadd.f32 %v9439_v28, %v5724_v5 }
 0x33f   : > { %v5728_v40 = vadd.f32 %v9395_v59, %v12101_v17  ;;  %v5954_v23 = vpop.f32.mrf.mxu0 }
 0x340   : > { %v5584_v8 = vpop.f32.mrf.mxu1  ;;  %v12216_v63 = vadd.f32 %v5954_v23, %v5723_v14 }
 0x341   : > { %v5727_v4 = vadd.f32 %v5584_v8, %v12105_v2  ;;  %v12218_v31 = vpop.f32.mrf.mxu0 }
 0x342   : > { %v9398_v37 = vpop.f32.mrf.mxu1 }
 0x343   : > { %v12221_v58 = vadd.f32 %v9398_v37, %v12109_v53  ;;  %v12223_v48 = vpop.f32.mrf.mxu0 }
 0x344   : > { %v5594_v45 = vpop.f32.mrf.mxu1 }
 0x345   : > { %v12226_v21 = vadd.f32 %v5594_v45, %v12113_v35  ;;  %v9445_v41 = vpop.f32.mrf.mxu0 }
 0x346   : > { %v9401_v17 = vpop.f32.mrf.mxu1  ;;  %v12229_v42 = vadd.f32 %v9445_v41, %v5728_v40 }
 0x347   : > { %v5732_v55 = vadd.f32 %v9401_v17, %v12117_v24  ;;  %v5974_v3 = vpop.f32.mrf.mxu0 }
 0x348   : > { %v5604_v2 = vpop.f32.mrf.mxu1  ;;  %v12232_v30 = vadd.f32 %v5974_v3, %v5727_v4 }
 0x349   : > { %v5731_v7 = vadd.f32 %v5604_v2, %v12121_v26  ;;  %v12234_v39 = vpop.f32.mrf.mxu0 }
 0x34a   : > { %v9404_v53 = vpop.f32.mrf.mxu1 }
 0x34b   : > { %v12237_v34 = vadd.f32 %v9404_v53, %v12125_v38  ;;  %v12239_v18 = vpop.f32.mrf.mxu0 }
 0x34c   : > { %v5614_v35 = vpop.f32.mrf.mxu1 }
 0x34d   : > { %v12242_v15 = vadd.f32 %v5614_v35, %v12129_v32  ;;  %v9451_v43 = vpop.f32.mrf.mxu0 }
 0x34e   : > { %v9407_v24 = vpop.f32.mrf.mxu1  ;;  %v12245_v5 = vadd.f32 %v9451_v43, %v5732_v55 }
 0x34f   : > { %v5736_v62 = vadd.f32 %v9407_v24, %v12133_v13  ;;  %v5994_v6 = vpop.f32.mrf.mxu0 }
 0x350   : > { %v5624_v26 = vpop.f32.mrf.mxu1  ;;  %v12248_v14 = vadd.f32 %v5994_v6, %v5731_v7 }
 0x351   : > { %v5735_v9 = vadd.f32 %v5624_v26, %v12137_v56  ;;  %v12250_v12 = vpop.f32.mrf.mxu0 }
 0x352   : > { %v9410_v38 = vpop.f32.mrf.mxu1 }
 0x353   : > { %v12253_v19 = vadd.f32 %v9410_v38, %v12141_v46  ;;  %v12255_v11 = vpop.f32.mrf.mxu0 }
 0x354   : > { %v5634_v32 = vpop.f32.mrf.mxu1 }
 0x355   : > { %v12258_v57 = vadd.f32 %v5634_v32, %v12145_v10  ;;  %v9457_v59 = vpop.f32.mrf.mxu0 }
 0x356   : > { %v9413_v13 = vpop.f32.mrf.mxu1  ;;  %v12261_v40 = vadd.f32 %v9457_v59, %v5736_v62 }
 0x357   : > { %v5740_v28 = vadd.f32 %v9413_v13, %v12149_v49  ;;  %v6014_v8 = vpop.f32.mrf.mxu0 }
 0x358   : > { %v5644_v56 = vpop.f32.mrf.mxu1  ;;  %v12264_v4 = vadd.f32 %v6014_v8, %v5735_v9 }
 0x359   : > { %v5739_v23 = vadd.f32 %v5644_v56, %v12153_v27  ;;  %v12266_v37 = vpop.f32.mrf.mxu0 }
 0x35a   : > { %v9416_v46 = vpop.f32.mrf.mxu1 }
 0x35b   : > { %v12269_v45 = vadd.f32 %v9416_v46, %v12157_v22  ;;  %v12271_v17 = vpop.f32.mrf.mxu0 }
 0x35c   : > { %v5654_v10 = vpop.f32.mrf.mxu1 }
 0x35d   : > { %v12274_v41 = vadd.f32 %v5654_v10, %v12161_v25  ;;  %v9463_v55 = vpop.f32.mrf.mxu0 }
 0x35e   : > { %v9419_v49 = vpop.f32.mrf.mxu1  ;;  %v12277_v3 = vadd.f32 %v9463_v55, %v5740_v28 }
 0x35f   : > { %v5744_v2 = vadd.f32 %v9419_v49, %v12165_v47  ;;  %v6034_v7 = vpop.f32.mrf.mxu0 }
 0x360   : > { %v5664_v27 = vpop.f32.mrf.mxu1  ;;  %v12280_v35 = vadd.f32 %v6034_v7, %v5739_v23 }
 0x361   : > { %v5743_v53 = vadd.f32 %v5664_v27, %v12169_v61  ;;  %v12282_v24 = vpop.f32.mrf.mxu0 }
 0x362   : > { %v9422_v22 = vpop.f32.mrf.mxu1 }
 0x363   : > { %v12285_v43 = vadd.f32 %v9422_v22, %v12173_v44  ;;  %v12287_v62 = vpop.f32.mrf.mxu0 }
 0x364   : > { %v5674_v25 = vpop.f32.mrf.mxu1  ;;  %13064 = vst [vmem:[#allocation101_spill] sm:$0xff] %v12287_v62 }
 0x365   : > { %13063 = vst [vmem:[#allocation86_spill] sm:$0xff] %v12285_v43  ;;  %v12290_v26 = vadd.f32 %v5674_v25, %v12178_v54  ;;  %v9469_v6 = vpop.f32.mrf.mxu0 }
 0x366   : > { %v9425_v47 = vpop.f32.mrf.mxu1  ;;  %v12293_v38 = vadd.f32 %v9469_v6, %v5744_v2 }
 0x367   : > { %13065 = vst [vmem:[#allocation17_spill] sm:$0xff] %v12290_v26  ;;  %v5748_v9 = vadd.f32 %v9425_v47, %v12183_v50  ;;  %v6054_v32 = vpop.f32.mrf.mxu0 }
 0x368   : > { %v5684_v61 = vpop.f32.mrf.mxu1  ;;  %v12296_v59 = vadd.f32 %v6054_v32, %v5743_v53 }
 0x369   : > { %v5747_v13 = vadd.f32 %v5684_v61, %v12187_v51  ;;  %v12298_v28 = vpop.f32.mrf.mxu0 }
 0x36a   : > { %v9428_v44 = vpop.f32.mrf.mxu1  ;;  %13066 = vst [vmem:[#allocation47_spill] sm:$0xff] %v12298_v28 }
 0x36b   : > { %v12301_v56 = vadd.f32 %v9428_v44, %v12191_v52  ;;  %v12303_v8 = vpop.f32.mrf.mxu0 }
 0x36c   : > { %v5694_v54 = vpop.f32.mrf.mxu1  ;;  %13068 = vst [vmem:[#allocation54_spill] sm:$0xff] %v12303_v8 }
 0x36d   : > { %13067 = vst [vmem:[#allocation45_spill] sm:$0xff] %v12301_v56  ;;  %v12306_v23 = vadd.f32 %v5694_v54, %v12194_v16  ;;  %v9475_v46 = vpop.f32.mrf.mxu0 }
 0x36e   : > { %v9431_v50 = vpop.f32.mrf.mxu1  ;;  %v12309_v49 = vadd.f32 %v9475_v46, %v5748_v9 }
 0x36f   : > { %13069 = vst [vmem:[#allocation88_spill] sm:$0xff] %v12306_v23  ;;  %v5752_v10 = vadd.f32 %v9431_v50, %v12196_v29  ;;  %v6074_v55 = vpop.f32.mrf.mxu0 }
 0x370   : > { %v5704_v51 = vpop.f32.mrf.mxu1  ;;  %v12312_v27 = vadd.f32 %v6074_v55, %v5747_v13 }
 0x371   : > { %v5751_v2 = vadd.f32 %v5704_v51, %v12199_v60  ;;  %v12314_v7 = vpop.f32.mrf.mxu0 }
 0x372   : > { %v9434_v52 = vpop.f32.mrf.mxu1  ;;  %13070 = vst [vmem:[#allocation104_spill] sm:$0xff] %v12314_v7 }
 0x373   : > { %v12317_v53 = vadd.f32 %v9434_v52, %v12202_v0  ;;  %v12319_v22 = vpop.f32.mrf.mxu0 }
 0x374   : > { %v5714_v16 = vpop.f32.mrf.mxu1  ;;  %13072 = vst [vmem:[#allocation4_spill] sm:$0xff] %v12319_v22 }
 0x375   : > { %13071 = vst [vmem:[#allocation30_spill] sm:$0xff] %v12317_v53  ;;  %v12322_v25 = vadd.f32 %v5714_v16, %v12207_v36  ;;  %v9481_v29 = vpop.f32.mrf.mxu0 }
 0x376   : > { %v9489_v47 = vpop.f32.mrf.mxu1  ;;  %v6142_v6 = vadd.f32 %v9481_v29, %v5752_v10 }
 0x377   : > { %13073 = vst [vmem:[#allocation24_spill] sm:$0xff] %v12322_v25  ;;  %v12325_v9 = vadd.f32 %v9489_v47, %v12213_v33  ;;  %v6094_v60 = vpop.f32.mrf.mxu0 }
 0x378   : > { %v6344_v61 = vpop.f32.mrf.mxu1  ;;  %v6141_v32 = vadd.f32 %v6094_v60, %v5751_v2 }
 0x379   : > { %v12328_v13 = vadd.f32 %v6344_v61, %v12216_v63  ;;  %v12330_v0 = vpop.f32.mrf.mxu0 }
 0x37a   : > { %13074 = vst [vmem:[#allocation81_spill] sm:$0xff] %v12330_v0  ;;  %v12332_v44 = vpop.f32.mrf.mxu1 }
 0x37b   : > { %v12334_v54 = vpop.f32.mrf.mxu0 }
 0x37c   : > { %13075 = vst [vmem:[#allocation56_spill] sm:$0xff] %v12334_v54  ;;  %v12336_v36 = vpop.f32.mrf.mxu1 }
 0x37d   : > { %v12338_v46 = vpop.f32.mrf.mxu0 }
 0x37e   : > { %v9495_v50 = vpop.f32.mrf.mxu1 }
 0x37f   : > { %v12341_v33 = vadd.f32 %v9495_v50, %v12229_v42  ;;  %v12343_v51 = vpop.f32.mrf.mxu0 }
 0x380   : > { %v6364_v10 = vpop.f32.mrf.mxu1 }
 0x381   : > { %v12346_v63 = vadd.f32 %v6364_v10, %v12232_v30  ;;  %v9542_v2 = vpop.f32.mrf.mxu0 }
 0x382   : > { %v12348_v55 = vpop.f32.mrf.mxu1 }
 0x383   : > { %v6744_v16 = vpop.f32.mrf.mxu0 }
 0x384   : > { %v12350_v52 = vpop.f32.mrf.mxu1 }
 0x385   : > { %v12352_v47 = vpop.f32.mrf.mxu0 }
 0x386   : > { %v9501_v29 = vpop.f32.mrf.mxu1 }
 0x387   : > { %v12355_v60 = vadd.f32 %v9501_v29, %v12245_v5  ;;  %v12357_v61 = vpop.f32.mrf.mxu0 }
 0x388   : > { %v6384_v42 = vpop.f32.mrf.mxu1 }
 0x389   : > { %v12360_v50 = vadd.f32 %v6384_v42, %v12248_v14  ;;  %v12364_v10 = vpop.f32.mrf.mxu0 }
 0x38a   : > { %v12362_v30 = vpop.f32.mrf.mxu1 }
 0x38b   : > { %v12371_v53 = vpop.f32.mrf.mxu0 }
 0x38c   : > { %v12366_v54 = vpop.f32.mrf.mxu1 }
 0x38d   : > { %v12378_v14 = vpop.f32.mrf.mxu0 }
 0x38e   : > { %v9507_v25 = vpop.f32.mrf.mxu1 }
 0x38f   : > { %v12369_v0 = vadd.f32 %v9507_v25, %v12261_v40  ;;  %v12385_v56 = vpop.f32.mrf.mxu0 }
 0x390   : > { %v6404_v5 = vpop.f32.mrf.mxu1 }
 0x391   : > { %v12374_v29 = vadd.f32 %v6404_v5, %v12264_v4  ;;  %v12392_v4 = vpop.f32.mrf.mxu0 }
 0x392   : > { %v12376_v22 = vpop.f32.mrf.mxu1 }
 0x393   : > { %v12399_v43 = vpop.f32.mrf.mxu0 }
 0x394   : > { %v12380_v42 = vpop.f32.mrf.mxu1 }
 0x396   : > { %v9513_v23 = vpop.f32.mrf.mxu1 }
 0x397   : > { %v12383_v7 = vadd.f32 %v9513_v23, %v12277_v3 }
 0x398   : > { %v6424_v40 = vpop.f32.mrf.mxu1 }
 0x399   : > { %13076 = vst [vmem:[#allocation89_spill] sm:$0xff] %v12383_v7  ;;  %v12388_v25 = vadd.f32 %v6424_v40, %v12280_v35  ;;  %v12406_v35 = vpop.f32.mrf.mxu0 }
 0x39a   : > { %v12390_v8 = vpop.f32.mrf.mxu1 }
 0x39b   : > { %13077 = vst [vmem:[#allocation19_spill] sm:$0xff] %v12388_v25  ;;  %13078 = vst [vmem:[#allocation51_spill] sm:$0xff] %v12390_v8 }
 0x39c   : > { %v12394_v5 = vpop.f32.mrf.mxu1 }
 0x39d   : > { %13079 = vst [vmem:[#allocation49_spill] sm:$0xff] %v12394_v5  ;;  %v12413_v5 = vpop.f32.mrf.mxu0 }
 0x39e   : > { %v9519_v26 = vpop.f32.mrf.mxu1 }
 0x39f   : > { %v12397_v28 = vadd.f32 %v9519_v26, %v12293_v38 }
 0x3a0   : > { %v6444_v3 = vpop.f32.mrf.mxu1 }
 0x3a1   : > { %13080 = vst [vmem:[#allocation58_spill] sm:$0xff] %v12397_v28  ;;  %v12402_v23 = vadd.f32 %v6444_v3, %v12296_v59  ;;  %v12420_v59 = vpop.f32.mrf.mxu0 }
 0x3a2   : > { %v12404_v7 = vpop.f32.mrf.mxu1 }
 0x3a3   : > { %13081 = vst [vmem:[#allocation91_spill] sm:$0xff] %v12402_v23  ;;  %13082 = vst [vmem:[#allocation26_spill] sm:$0xff] %v12404_v7 }
 0x3a4   : > { %v12408_v40 = vpop.f32.mrf.mxu1 }
 0x3a5   : > { %13083 = vst [vmem:[#allocation6_spill] sm:$0xff] %v12408_v40  ;;  %v12426_v40 = vpop.f32.mrf.mxu0 }
 0x3a6   : > { %v9525_v25 = vpop.f32.mrf.mxu1 }
 0x3a7   : > { %v12411_v8 = vadd.f32 %v9525_v25, %v12309_v49 }
 0x3a8   : > { %v6464_v26 = vpop.f32.mrf.mxu1 }
 0x3a9   : > { %13084 = vst [vmem:[#allocation29_spill] sm:$0xff] %v12411_v8  ;;  %v12416_v38 = vadd.f32 %v6464_v26, %v12312_v27  ;;  %v12432_v8 = vpop.f32.mrf.mxu0  ;;  %v6116_v26 = vadd.f32 %v12218_v31, %v12205_v20  ;;  %v6893_v20 = vadd.f32 %v12343_v51, %v12328_v13 }
 0x3aa   : > { %v12418_v28 = vpop.f32.mrf.mxu1  ;;  %13091 = vst [vmem:[#allocation94_spill] sm:$0xff] %v12432_v8 }
 0x3ab   : > { %13085 = vst [vmem:[#allocation60_spill] sm:$0xff] %v12416_v38  ;;  %13086 = vst [vmem:[#allocation92_spill] sm:$0xff] %v12418_v28 }
 0x3ac   : > { %v12422_v3 = vpop.f32.mrf.mxu1 }
 0x3ad   : > { %13087 = vst [vmem:[#allocation22_spill] sm:$0xff] %v12422_v3 }
 0x3ae   : > { %v9531_v23 = vpop.f32.mrf.mxu1 }
 0x3af   : > { %v12424_v7 = vadd.f32 %v9531_v23, %v6142_v6  ;;  %v6115_v6 = vadd.f32 %v12223_v48, %v12210_v1  ;;  %v6506_v23 = vadd.f32 %v12332_v44, %v6116_v26  ;;  %v6120_v48 = vadd.f32 %v12234_v39, %v12221_v58 }
 0x3b0   : > { %v6484_v62 = vpop.f32.mrf.mxu1 }
 0x3b1   : > { %13088 = vst [vmem:[#allocation55_spill] sm:$0xff] %v12424_v7  ;;  %v12428_v49 = vadd.f32 %v6484_v62, %v6141_v32  ;;  %v12441_v7 = vpop.f32.mrf.mxu0  ;;  %v6505_v32 = vadd.f32 %v12336_v36, %v6115_v6  ;;  %v6123_v6 = vadd.f32 %v12255_v11, %v12242_v15 }
 0x3b2   : > { %v12430_v25 = vpop.f32.mrf.mxu1 }
 0x3b3   : > { %13089 = vst [vmem:[#allocation53_spill] sm:$0xff] %v12428_v49  ;;  %13090 = vst [vmem:[#allocation62_spill] sm:$0xff] %v12430_v25  ;;  %v6894_v49 = vadd.f32 %v12338_v46, %v12325_v9  ;;  %v6896_v25 = vadd.f32 %v9542_v2, %v6506_v23  ;;  %v6895_v31 = vadd.f32 %v6744_v16, %v6505_v32  ;;  %v12448_v8 = vpop.f32.mrf.mxu0 }
 0x3b4   : > { %v12434_v27 = vpop.f32.mrf.mxu1  ;;  %v6119_v9 = vadd.f32 %v12239_v18, %v12226_v21  ;;  %v6510_v2 = vadd.f32 %v12348_v55, %v6120_v48  ;;  %v6898_v18 = vadd.f32 %v12352_v47, %v12341_v33  ;;  %v6513_v32 = vadd.f32 %v12366_v54, %v6123_v6  ;;  %v13096_v6 = vld [vmem:[#allocation89_spill] sm:$0xff] }
 0x3b5   : > { %13092 = vst [vmem:[#allocation3_spill] sm:$0xff] %v12434_v27  ;;  %v12462_v39 = vpop.f32.mrf.mxu0 }
 0x3b6   : > { %v9589_v38 = vpop.f32.mrf.mxu1  ;;  %v6509_v58 = vadd.f32 %v12350_v52, %v6119_v9  ;;  %v6897_v52 = vadd.f32 %v12357_v61, %v12346_v63  ;;  %v6124_v63 = vadd.f32 %v12250_v12, %v12237_v34  ;;  %v6903_v54 = vadd.f32 %v12399_v43, %v6513_v32  ;;  %v13098_v32 = vld [vmem:[#allocation19_spill] sm:$0xff] }
 0x3b7   : > { %v7284_v3 = vadd.f32 %v9589_v38, %v6894_v49  ;;  %v12478_v49 = vpop.f32.mrf.mxu0 }
 0x3b8   : > { %v7124_v62 = vpop.f32.mrf.mxu1  ;;  %v6514_v34 = vadd.f32 %v12362_v30, %v6124_v63  ;;  %v6901_v30 = vadd.f32 %v12385_v56, %v12360_v50  ;;  %v6128_v56 = vadd.f32 %v12266_v37, %v12253_v19  ;;  %v13095_v63 = vld [vmem:[#allocation49_spill] sm:$0xff] }
 0x3b9   : > { %v7283_v44 = vadd.f32 %v7124_v62, %v6893_v20  ;;  %v12494_v20 = vpop.f32.mrf.mxu0 }
 0x3ba   : > { %v9592_v27 = vpop.f32.mrf.mxu1  ;;  %v6904_v48 = vadd.f32 %v12392_v4, %v6514_v34  ;;  %v6518_v19 = vadd.f32 %v12376_v22, %v6128_v56  ;;  %v6905_v22 = vadd.f32 %v12413_v5, %v12374_v29  ;;  %v6132_v29 = vadd.f32 %v12282_v24, %v12269_v45  ;;  %v13102_v56 = vld [vmem:[#allocation54_spill] sm:$0xff] }
 0x3bb   : > { %v7286_v28 = vadd.f32 %v9592_v27, %v6896_v25 }
 0x3bc   : > { %v7134_v1 = vpop.f32.mrf.mxu1 }
 0x3bd   : > { %v7316_v36 = vmax.f32 %v7284_v3, %v7286_v28  ;;  %v7285_v26 = vadd.f32 %v7134_v1, %v6895_v31  ;;  %v6900_v28 = vadd.f32 %v12364_v10, %v6510_v2  ;;  %v6899_v3 = vadd.f32 %v12371_v53, %v6509_v58 }
 0x3be   : > { %v9595_v46 = vpop.f32.mrf.mxu1  ;;  %v6902_v1 = vadd.f32 %v12378_v14, %v12355_v60 }
 0x3bf   : > { %v7407_v13 = vrot.slane %v7316_v36, 1  ;;  %v7315_v51 = vmax.f32 %v7283_v44, %v7285_v26  ;;  %v7288_v47 = vadd.f32 %v9595_v46, %v6898_v18  ;;  %v6127_v46 = vadd.f32 %v12271_v17, %v12258_v57 }
 0x3c0   : > { %v7144_v21 = vpop.f32.mrf.mxu1  ;;  %v6906_v18 = vadd.f32 %v12406_v35, %v12369_v0 }
 0x3c1   : > { %v7423_v55 = vmax.f32 %v7316_v36, %v7407_v13  ;;  %v7339_v16 = vrot.slane %v7315_v51, 1  ;;  %v7287_v53 = vadd.f32 %v7144_v21, %v6897_v52  ;;  %v12510_v36 = vpop.f32.mrf.mxu0 }
 0x3c2   : > { %v9598_v38 = vpop.f32.mrf.mxu1 }
 0x3c3   : > { %7431 = vst.msk [vmem:[%s12459_s5 + $0x4] sm:$0x1] %vm7363_vm3, %v7423_v55  ;;  %v7355_v33 = vmax.f32 %v7315_v51, %v7339_v16  ;;  %v7290_v10 = vadd.f32 %v9598_v38, %v6900_v28  ;;  %v6517_v51 = vadd.f32 %v12380_v42, %v6127_v46  ;;  %v12526_v58 = vpop.f32.mrf.mxu0  ;;  %v6908_v28 = vadd.f32 %v12420_v59, %v6518_v19 }
 0x3c4   : > { %7439 = vst.msk [vmem:[%s12459_s5 + $0x3] sm:$0x4] %vm7372_vm4, %v7423_v55  ;;  %v7154_v25 = vpop.f32.mrf.mxu1 }
 0x3c5   : > { %7447 = vst.msk [vmem:[%s12459_s5 + $0x2] sm:$0x10] %vm7381_vm5, %v7423_v55  ;;  %7382 = vst.msk [vmem:[%s12459_s5 - $0x2] sm:$0x10] %vm7381_vm5, %v7355_v33  ;;  %v7318_v61 = vmax.f32 %v7288_v47, %v7290_v10  ;;  %v7289_v27 = vadd.f32 %v7154_v25, %v6899_v3  ;;  %v6907_v42 = vadd.f32 %v12426_v40, %v6517_v51  ;;  %v12542_v16 = vpop.f32.mrf.mxu0  ;;  %v13093_v3 = vld [vmem:[#allocation101_spill] sm:$0xff]  ;;  %v13094_v10 = vld [vmem:[#allocation51_spill] sm:$0xff] }
 0x3c6   : > { %7455 = vst.msk [vmem:[%s12459_s5 + $0x1] sm:$0x40] %vm7390_vm6, %v7423_v55  ;;  %7391 = vst.msk [vmem:[%s12459_s5 - $0x3] sm:$0x40] %vm7390_vm6, %v7355_v33  ;;  %v9601_v23 = vpop.f32.mrf.mxu1  ;;  %v6522_v45 = vadd.f32 %v13094_v10, %v6132_v29 }
 0x3c7   : > { %7364 = vst.msk [vmem:[%s12459_s5] sm:$0x1] %vm7363_vm3, %v7355_v33  ;;  %v7408_v12 = vrot.slane %v7318_v61, 1  ;;  %v7317_v62 = vmax.f32 %v7287_v53, %v7289_v27  ;;  %v7292_v14 = vadd.f32 %v9601_v23, %v6902_v1  ;;  %v13097_v23 = vld [vmem:[#allocation94_spill] sm:$0xff] }
 0x3c8   : > { %7373 = vst.msk [vmem:[%s12459_s5 - $0x1] sm:$0x4] %vm7372_vm4, %v7355_v33  ;;  %v7164_v31 = vpop.f32.mrf.mxu1  ;;  %v6131_v33 = vadd.f32 %v13093_v3, %v12274_v41  ;;  %v6910_v34 = vadd.f32 %v13097_v23, %v13096_v6 }
 0x3c9   : > { %v7424_v15 = vmax.f32 %v7318_v61, %v7408_v12  ;;  %v7340_v11 = vrot.slane %v7317_v62, 1  ;;  %v7291_v43 = vadd.f32 %v7164_v31, %v6901_v30  ;;  %v12558_v61 = vpop.f32.mrf.mxu0  ;;  %v6912_v12 = vadd.f32 %v12448_v8, %v6522_v45 }
 0x3ca   : > { %v9604_v44 = vpop.f32.mrf.mxu1  ;;  %v6521_v53 = vadd.f32 %v13095_v63, %v6131_v33  ;;  %v6909_v31 = vadd.f32 %v12441_v7, %v13098_v32  ;;  %v13109_v33 = vld [vmem:[#allocation88_spill] sm:$0xff] }
 0x3cb   : > { %7432 = vst.msk [vmem:[%s12459_s5 + $0xc] sm:$0x1] %vm7363_vm3, %v7424_v15  ;;  %v7356_v60 = vmax.f32 %v7317_v62, %v7340_v11  ;;  %v7294_v4 = vadd.f32 %v9604_v44, %v6904_v48  ;;  %v9578_v30 = vpop.f32.mrf.mxu0 }
 0x3cc   : > { %7440 = vst.msk [vmem:[%s12459_s5 + $0xb] sm:$0x4] %vm7372_vm4, %v7424_v15  ;;  %v7174_v26 = vpop.f32.mrf.mxu1  ;;  %v6911_v48 = vadd.f32 %v12462_v39, %v6521_v53 }
 0x3cd   : > { %7448 = vst.msk [vmem:[%s12459_s5 + $0xa] sm:$0x10] %vm7381_vm5, %v7424_v15  ;;  %7383 = vst.msk [vmem:[%s12459_s5 + $0x6] sm:$0x10] %vm7381_vm5, %v7356_v60  ;;  %v7320_v50 = vmax.f32 %v7292_v14, %v7294_v4  ;;  %v7293_v9 = vadd.f32 %v7174_v26, %v6903_v54  ;;  %v13099_v54 = vld [vmem:[#allocation86_spill] sm:$0xff]  ;;  %v13101_v26 = vld [vmem:[#allocation17_spill] sm:$0xff]  ;;  %v6864_v51 = vpop.f32.mrf.mxu0 }
 0x3ce   : > { %7456 = vst.msk [vmem:[%s12459_s5 + $0x9] sm:$0x40] %vm7390_vm6, %v7424_v15  ;;  %7392 = vst.msk [vmem:[%s12459_s5 + $0x5] sm:$0x40] %vm7390_vm6, %v7356_v60  ;;  %v9607_v2 = vpop.f32.mrf.mxu1 }
 0x3cf   : > { %7365 = vst.msk [vmem:[%s12459_s5 + $0x8] sm:$0x1] %vm7363_vm3, %v7356_v60  ;;  %v7409_v37 = vrot.slane %v7320_v50, 1  ;;  %v7319_v13 = vmax.f32 %v7291_v43, %v7293_v9  ;;  %v7296_v35 = vadd.f32 %v9607_v2, %v6906_v18  ;;  %v6135_v43 = vadd.f32 %v13102_v56, %v13101_v26  ;;  %v13103_v9 = vld [vmem:[#allocation26_spill] sm:$0xff]  ;;  %v13117_v26 = vld [vmem:[#allocation24_spill] sm:$0xff] }
 0x3d0   : > { %7374 = vst.msk [vmem:[%s12459_s5 + $0x7] sm:$0x4] %vm7372_vm4, %v7356_v60  ;;  %v7184_v21 = vpop.f32.mrf.mxu1  ;;  %v13100_v60 = vld [vmem:[#allocation47_spill] sm:$0xff]  ;;  %v13105_v18 = vld [vmem:[#allocation58_spill] sm:$0xff]  ;;  %v13118_v56 = vld [vmem:[#allocation56_spill] sm:$0xff] }
 0x3d1   : > { %v7425_v57 = vmax.f32 %v7320_v50, %v7409_v37  ;;  %v7341_v17 = vrot.slane %v7319_v13, 1  ;;  %v7295_v5 = vadd.f32 %v7184_v21, %v6905_v22  ;;  %v6136_v7 = vadd.f32 %v13100_v60, %v13099_v54  ;;  %v13104_v37 = vld [vmem:[#allocation6_spill] sm:$0xff] }
 0x3d2   : > { %v9610_v55 = vpop.f32.mrf.mxu1  ;;  %v13115_v60 = vld [vmem:[#allocation30_spill] sm:$0xff] }
 0x3d3   : > { %7433 = vst.msk [vmem:[%s12459_s5 + $0x14] sm:$0x1] %vm7363_vm3, %v7425_v57  ;;  %v7357_v0 = vmax.f32 %v7319_v13, %v7341_v17  ;;  %v7298_v59 = vadd.f32 %v9610_v55, %v6908_v28  ;;  %v6526_v46 = vadd.f32 %v13103_v9, %v6136_v7  ;;  %v6525_v13 = vadd.f32 %v13104_v37, %v6135_v43  ;;  %v13106_v55 = vld [vmem:[#allocation91_spill] sm:$0xff]  ;;  %v13116_v7 = vld [vmem:[#allocation81_spill] sm:$0xff]  ;;  %v13119_v9 = vld [vmem:[#allocation62_spill] sm:$0xff] }
 0x3d4   : > { %7441 = vst.msk [vmem:[%s12459_s5 + $0x13] sm:$0x4] %vm7372_vm4, %v7425_v57  ;;  %v7194_v52 = vpop.f32.mrf.mxu1  ;;  %v6914_v28 = vadd.f32 %v12478_v49, %v13105_v18  ;;  %v6143_v43 = vadd.f32 %v13118_v56, %v13117_v26  ;;  %v13120_v37 = vld [vmem:[#allocation3_spill] sm:$0xff] }
 0x3d5   : > { %7449 = vst.msk [vmem:[%s12459_s5 + $0x12] sm:$0x10] %vm7381_vm5, %v7425_v57  ;;  %7384 = vst.msk [vmem:[%s12459_s5 + $0xe] sm:$0x10] %vm7381_vm5, %v7357_v0  ;;  %v7322_v40 = vmax.f32 %v7296_v35, %v7298_v59  ;;  %v7297_v38 = vadd.f32 %v7194_v52, %v6907_v42  ;;  %v6913_v42 = vadd.f32 %v12494_v20, %v13106_v55  ;;  %v9581_v52 = vpop.f32.mrf.mxu0  ;;  %v13121_v18 = vld [vmem:[#allocation55_spill] sm:$0xff]  ;;  %v13122_v55 = vld [vmem:[#allocation53_spill] sm:$0xff] }
 0x3d6   : > { %7457 = vst.msk [vmem:[%s12459_s5 + $0x11] sm:$0x40] %vm7390_vm6, %v7425_v57  ;;  %7393 = vst.msk [vmem:[%s12459_s5 + $0xd] sm:$0x40] %vm7390_vm6, %v7357_v0  ;;  %v9613_v47 = vpop.f32.mrf.mxu1  ;;  %v6916_v57 = vadd.f32 %v12510_v36, %v6526_v46  ;;  %v6915_v35 = vadd.f32 %v12526_v58, %v6525_v13  ;;  %v6533_v13 = vadd.f32 %v13120_v37, %v6143_v43 }
 0x3d7   : > { %7366 = vst.msk [vmem:[%s12459_s5 + $0x10] sm:$0x1] %vm7363_vm3, %v7357_v0  ;;  %v7410_v24 = vrot.slane %v7322_v40, 1  ;;  %v7321_v25 = vmax.f32 %v7295_v5, %v7297_v38  ;;  %v7300_v15 = vadd.f32 %v9613_v47, %v6910_v34  ;;  %v13107_v5 = vld [vmem:[#allocation45_spill] sm:$0xff]  ;;  %v13110_v47 = vld [vmem:[#allocation4_spill] sm:$0xff]  ;;  %v6874_v23 = vpop.f32.mrf.mxu0 }
 0x3d8   : > { %7375 = vst.msk [vmem:[%s12459_s5 + $0xf] sm:$0x4] %vm7372_vm4, %v7357_v0  ;;  %v7204_v27 = vpop.f32.mrf.mxu1  ;;  %v6139_v10 = vadd.f32 %v13110_v47, %v13109_v33 }
 0x3d9   : > { %v7426_v41 = vmax.f32 %v7322_v40, %v7410_v24  ;;  %v7342_v62 = vrot.slane %v7321_v25, 1  ;;  %v7299_v39 = vadd.f32 %v7204_v27, %v6909_v31  ;;  %v13108_v40 = vld [vmem:[#allocation104_spill] sm:$0xff]  ;;  %v13112_v27 = vld [vmem:[#allocation22_spill] sm:$0xff] }
 0x3da   : > { %v9616_v1 = vpop.f32.mrf.mxu1  ;;  %v6140_v20 = vadd.f32 %v13108_v40, %v13107_v5  ;;  %v13111_v24 = vld [vmem:[#allocation92_spill] sm:$0xff]  ;;  %v6529_v6 = vadd.f32 %v13112_v27, %v6139_v10 }
 0x3db   : > { %7434 = vst.msk [vmem:[%s12459_s5 + $0x1c] sm:$0x1] %vm7363_vm3, %v7426_v41  ;;  %v7358_v8 = vmax.f32 %v7321_v25, %v7342_v62  ;;  %v7302_v11 = vadd.f32 %v9616_v1, %v6912_v12  ;;  %v13113_v12 = vld [vmem:[#allocation29_spill] sm:$0xff]  ;;  %v13114_v1 = vld [vmem:[#allocation60_spill] sm:$0xff] }
 0x3dc   : > { %7442 = vst.msk [vmem:[%s12459_s5 + $0x1b] sm:$0x4] %vm7372_vm4, %v7426_v41  ;;  %v7214_v44 = vpop.f32.mrf.mxu1  ;;  %v6530_v25 = vadd.f32 %v13111_v24, %v6140_v20 }
 0x3dd   : > { %7450 = vst.msk [vmem:[%s12459_s5 + $0x1a] sm:$0x10] %vm7381_vm5, %v7426_v41  ;;  %7385 = vst.msk [vmem:[%s12459_s5 + $0x16] sm:$0x10] %vm7381_vm5, %v7358_v8  ;;  %v7324_v14 = vmax.f32 %v7300_v15, %v7302_v11  ;;  %v7301_v4 = vadd.f32 %v7214_v44, %v6911_v48  ;;  %v6917_v48 = vadd.f32 %v12558_v61, %v13114_v1  ;;  %v9584_v44 = vpop.f32.mrf.mxu0 }
 0x3de   : > { %7458 = vst.msk [vmem:[%s12459_s5 + $0x19] sm:$0x40] %vm7390_vm6, %v7426_v41  ;;  %7394 = vst.msk [vmem:[%s12459_s5 + $0x15] sm:$0x40] %vm7390_vm6, %v7358_v8  ;;  %v9619_v50 = vpop.f32.mrf.mxu1  ;;  %v6918_v41 = vadd.f32 %v12542_v16, %v13113_v12  ;;  %v6920_v62 = vadd.f32 %v9578_v30, %v6530_v25  ;;  %v6919_v15 = vadd.f32 %v6864_v51, %v6529_v6 }
 0x3df   : > { %7367 = vst.msk [vmem:[%s12459_s5 + $0x18] sm:$0x1] %vm7363_vm3, %v7358_v8  ;;  %v7411_v2 = vrot.slane %v7324_v14, 1  ;;  %v7323_v19 = vmax.f32 %v7299_v39, %v7301_v4  ;;  %v7304_v36 = vadd.f32 %v9619_v50, %v6914_v28  ;;  %v6144_v39 = vadd.f32 %v13116_v7, %v13115_v60  ;;  %v6884_v51 = vpop.f32.mrf.mxu0 }
 0x3e0   : > { %7376 = vst.msk [vmem:[%s12459_s5 + $0x17] sm:$0x4] %vm7372_vm4, %v7358_v8  ;;  %v7224_v21 = vpop.f32.mrf.mxu1  ;;  %v6922_v28 = vadd.f32 %v9581_v52, %v13121_v18 }
 0x3e1   : > { %v7427_v17 = vmax.f32 %v7324_v14, %v7411_v2  ;;  %v7343_v22 = vrot.slane %v7323_v19, 1  ;;  %v7303_v58 = vadd.f32 %v7224_v21, %v6913_v42  ;;  %v6534_v46 = vadd.f32 %v13119_v9, %v6144_v39 }
 0x3e2   : > { %v9622_v0 = vpop.f32.mrf.mxu1  ;;  %v6921_v42 = vadd.f32 %v6874_v23, %v13122_v55 }
 0x3e3   : > { %7435 = vst.msk [vmem:[%s12459_s5 + $0x24] sm:$0x1] %vm7363_vm3, %v7427_v17  ;;  %v7359_v49 = vmax.f32 %v7323_v19, %v7343_v22  ;;  %v7306_v59 = vadd.f32 %v9622_v0, %v6916_v57  ;;  %v6924_v57 = vadd.f32 %v9584_v44, %v6534_v46 }
 0x3e4   : > { %7443 = vst.msk [vmem:[%s12459_s5 + $0x23] sm:$0x4] %vm7372_vm4, %v7427_v17  ;;  %v7234_v29 = vpop.f32.mrf.mxu1 }
 0x3e5   : > { %7451 = vst.msk [vmem:[%s12459_s5 + $0x22] sm:$0x10] %vm7381_vm5, %v7427_v17  ;;  %7386 = vst.msk [vmem:[%s12459_s5 + $0x1e] sm:$0x10] %vm7381_vm5, %v7359_v49  ;;  %v7326_v38 = vmax.f32 %v7304_v36, %v7306_v59  ;;  %v7305_v3 = vadd.f32 %v7234_v29, %v6915_v35  ;;  %v6923_v35 = vadd.f32 %v6884_v51, %v6533_v13 }
 0x3e6   : > { %7459 = vst.msk [vmem:[%s12459_s5 + $0x21] sm:$0x40] %vm7390_vm6, %v7427_v17  ;;  %7395 = vst.msk [vmem:[%s12459_s5 + $0x1d] sm:$0x40] %vm7390_vm6, %v7359_v49  ;;  %v9625_v45 = vpop.f32.mrf.mxu1 }
 0x3e7   : > { %7368 = vst.msk [vmem:[%s12459_s5 + $0x20] sm:$0x1] %vm7363_vm3, %v7359_v49  ;;  %v7412_v63 = vrot.slane %v7326_v38, 1  ;;  %v7325_v53 = vmax.f32 %v7303_v58, %v7305_v3  ;;  %v7308_v11 = vadd.f32 %v9625_v45, %v6918_v41 }
 0x3e8   : > { %7377 = vst.msk [vmem:[%s12459_s5 + $0x1f] sm:$0x4] %vm7372_vm4, %v7359_v49  ;;  %v7244_v34 = vpop.f32.mrf.mxu1 }
 0x3e9   : > { %v7428_v32 = vmax.f32 %v7326_v38, %v7412_v63  ;;  %v7344_v31 = vrot.slane %v7325_v53, 1  ;;  %v7307_v61 = vadd.f32 %v7244_v34, %v6917_v48 }
 0x3ea   : > { %v9628_v8 = vpop.f32.mrf.mxu1 }
 0x3eb   : > { %7436 = vst.msk [vmem:[%s12459_s5 + $0x2c] sm:$0x1] %vm7363_vm3, %v7428_v32  ;;  %v7360_v16 = vmax.f32 %v7325_v53, %v7344_v31  ;;  %v7310_v30 = vadd.f32 %v9628_v8, %v6920_v62 }
 0x3ec   : > { %7444 = vst.msk [vmem:[%s12459_s5 + $0x2b] sm:$0x4] %vm7372_vm4, %v7428_v32  ;;  %v7254_v54 = vpop.f32.mrf.mxu1 }
 0x3ed   : > { %7452 = vst.msk [vmem:[%s12459_s5 + $0x2a] sm:$0x10] %vm7381_vm5, %v7428_v32  ;;  %7387 = vst.msk [vmem:[%s12459_s5 + $0x26] sm:$0x10] %vm7381_vm5, %v7360_v16  ;;  %v7328_v14 = vmax.f32 %v7308_v11, %v7310_v30  ;;  %v7309_v4 = vadd.f32 %v7254_v54, %v6919_v15 }
 0x3ee   : > { %7460 = vst.msk [vmem:[%s12459_s5 + $0x29] sm:$0x40] %vm7390_vm6, %v7428_v32  ;;  %7396 = vst.msk [vmem:[%s12459_s5 + $0x25] sm:$0x40] %vm7390_vm6, %v7360_v16  ;;  %v9631_v50 = vpop.f32.mrf.mxu1 }
 0x3ef   : > { %7369 = vst.msk [vmem:[%s12459_s5 + $0x28] sm:$0x1] %vm7363_vm3, %v7360_v16  ;;  %v7413_v2 = vrot.slane %v7328_v14, 1  ;;  %v7327_v19 = vmax.f32 %v7307_v61, %v7309_v4  ;;  %v7312_v36 = vadd.f32 %v9631_v50, %v6922_v28 }
 0x3f0   : > { %7378 = vst.msk [vmem:[%s12459_s5 + $0x27] sm:$0x4] %vm7372_vm4, %v7360_v16  ;;  %v7264_v21 = vpop.f32.mrf.mxu1 }
 0x3f1   : > { %v7429_v17 = vmax.f32 %v7328_v14, %v7413_v2  ;;  %v7345_v22 = vrot.slane %v7327_v19, 1  ;;  %v7311_v29 = vadd.f32 %v7264_v21, %v6921_v42 }
 0x3f2   : > { %v9634_v0 = vpop.f32.mrf.mxu1 }
 0x3f3   : > { %7437 = vst.msk [vmem:[%s12459_s5 + $0x34] sm:$0x1] %vm7363_vm3, %v7429_v17  ;;  %v7361_v49 = vmax.f32 %v7327_v19, %v7345_v22  ;;  %v7314_v59 = vadd.f32 %v9634_v0, %v6924_v57 }
 0x3f4   : > { %7445 = vst.msk [vmem:[%s12459_s5 + $0x33] sm:$0x4] %vm7372_vm4, %v7429_v17  ;;  %v7274_v52 = vpop.f32.mrf.mxu1 }
 0x3f5   : > { %7453 = vst.msk [vmem:[%s12459_s5 + $0x32] sm:$0x10] %vm7381_vm5, %v7429_v17  ;;  %7388 = vst.msk [vmem:[%s12459_s5 + $0x2e] sm:$0x10] %vm7381_vm5, %v7361_v49  ;;  %v7330_v5 = vmax.f32 %v7312_v36, %v7314_v59  ;;  %v7313_v40 = vadd.f32 %v7274_v52, %v6923_v35 }
 0x3f6   : > { %7461 = vst.msk [vmem:[%s12459_s5 + $0x31] sm:$0x40] %vm7390_vm6, %v7429_v17  ;;  %7397 = vst.msk [vmem:[%s12459_s5 + $0x2d] sm:$0x40] %vm7390_vm6, %v7361_v49 }
 0x3f7   : > { %7370 = vst.msk [vmem:[%s12459_s5 + $0x30] sm:$0x1] %vm7363_vm3, %v7361_v49  ;;  %v7414_v20 = vrot.slane %v7330_v5, 1  ;;  %v7329_v58 = vmax.f32 %v7311_v29, %v7313_v40 }
 0x3f8   : > { %7379 = vst.msk [vmem:[%s12459_s5 + $0x2f] sm:$0x4] %vm7372_vm4, %v7361_v49 }
 0x3f9   : > { %v7430_v38 = vmax.f32 %v7330_v5, %v7414_v20  ;;  %v7346_v3 = vrot.slane %v7329_v58, 1 }
 0x3fb   : > { %7438 = vst.msk [vmem:[%s12459_s5 + $0x3c] sm:$0x1] %vm7363_vm3, %v7430_v38  ;;  %v7362_v33 = vmax.f32 %v7329_v58, %v7346_v3 }
 0x3fc   : > { %7446 = vst.msk [vmem:[%s12459_s5 + $0x3b] sm:$0x4] %vm7372_vm4, %v7430_v38 }
 0x3fd   : > { %7454 = vst.msk [vmem:[%s12459_s5 + $0x3a] sm:$0x10] %vm7381_vm5, %v7430_v38  ;;  %7389 = vst.msk [vmem:[%s12459_s5 + $0x36] sm:$0x10] %vm7381_vm5, %v7362_v33 }
 0x3fe   : > { %7462 = vst.msk [vmem:[%s12459_s5 + $0x39] sm:$0x40] %vm7390_vm6, %v7430_v38  ;;  %7398 = vst.msk [vmem:[%s12459_s5 + $0x35] sm:$0x40] %vm7390_vm6, %v7362_v33 }
 0x3ff   : > { %7371 = vst.msk [vmem:[%s12459_s5 + $0x38] sm:$0x1] %vm7363_vm3, %v7362_v33 }
 0x400   : > { %7380 = vst.msk [vmem:[%s12459_s5 + $0x37] sm:$0x4] %vm7372_vm4, %v7362_v33 }
 0x401 PF: > { %s13_s12 = sadd.s32 1, %s9649_s12  }
 0x402   : > { %p10_p4 = scmp.ge.s32.totalorder %s13_s12, 4  }
 0x404   :  { %12 = sbr.rel (!%p10_p4) target bundleno = 1 (0x1), region = 81 }

</bundles_post_ra>
